<compile_context>
chip_gen: v7x
topology: tpu7x:2x2x1
jax: 0.10.0
libtpu: 0.0.40
codegen_flags: <defaults>
</compile_context>

<pallas_src>
import functools

import jax
import jax.numpy as jnp
from jax.experimental import pallas as pl
from jax.experimental.pallas import tpu as pltpu

REVIN_EPS = 1e-5
BN_EPS = 1e-5
_VMEM_LIMIT = 64 * 1024 * 1024  # explicit scoped-VMEM budget (fits v7x 64 MiB physical)


def _gelu(x):
    # TODO(synk): PyTorch nn.GELU defaults to exact erf; tanh approximation used here.
    return jax.nn.gelu(x, approximate=True)


# ----------------------------------------------------------------- block pickers
def _dw_offsets(dw_ks):
    """Union of depthwise-conv tap offsets across all layers."""
    off_min = min(-((ks - 1) // 2) for ks in dw_ks)
    off_max = max(ks - 1 - (ks - 1) // 2 for ks in dw_ks)
    return off_min, off_max - off_min + 1


def _pick_samples_per_block(n, p, target):
    """Samples per encoder row block: (s*p) % 8 == 0, and >=2 blocks when possible."""
    cap = min(target, n)
    if n >= 2:
        cap = min(cap, max(1, -(-n // 2)))       # >=2 grid steps -> v7x megacore
    for s in range(cap, 0, -1):
        if (s * p) % 8 == 0:
            return s
    return None                                   # fall back to a single padded block


def _row_blocks(n, target):
    """Row block size (multiple of 8, or == n) and padded row count."""
    if n <= target:
        return n, n
    bn = target - (target % 8) if target % 8 else target
    for cand in range(bn, 7, -8):
        if n % cand == 0:
            return cand, n
    return bn, -(-n // bn) * bn


def _col_block(tw):
    for t in (512, 384, 256, 128):
        if tw > t and tw % t == 0:
            return t
    return tw


# ------------------------------------------------ fused RevIN-norm + patch embed
def _embed_kernel(x_ref, aw_ref, ab_ref, wp_ref, bp_ref, u_ref, m_ref, s_ref,
                  *, P, PLEN, SD, L):
    x = x_ref[...]                                        # (bn, L) f32
    m = jnp.mean(x, axis=1, keepdims=True)
    var = jnp.mean((x - m) ** 2, axis=1, keepdims=True) + REVIN_EPS
    s = jnp.sqrt(var)
    y = (x - m) * jax.lax.rsqrt(var)                      # EUP rsqrt, no full-tile divide
    y = y * aw_ref[...] + ab_ref[...]                     # RevIN affine
    m_ref[...] = m
    s_ref[...] = s

    # ReplicationPad1d((0, SD)) + unfold + W_P (Linear patch_len -> d_model)
    last = y[:, L - 1:L]
    zp = jnp.concatenate([y, jnp.broadcast_to(last, (y.shape[0], SD))], axis=1)
    wp = wp_ref[...]                                      # (PLEN, D) bf16
    bp = bp_ref[...]                                      # (1, D) f32
    D = wp.shape[1]
    for p in range(P):
        patch = zp[:, p * SD: p * SD + PLEN]              # static lane slice
        emb = jnp.dot(patch.astype(jnp.bfloat16), wp,
                      preferred_element_type=jnp.float32) + bp
        u_ref[:, p * D:(p + 1) * D] = emb.astype(u_ref.dtype)


def embed_patches(z, aff_w, aff_b, wp, bp, *, P, PLEN, SD, target_rows=256):
    N, L = z.shape
    D = wp.shape[1]
    bn, Np = _row_blocks(N, target_rows)
    if Np != N:                                           # pad to full row blocks
        z = jnp.pad(z, ((0, Np - N), (0, 0)))
        aff_w = jnp.pad(aff_w, ((0, Np - N), (0, 0)), constant_values=1.0)
        aff_b = jnp.pad(aff_b, ((0, Np - N), (0, 0)))
    row = lambda i: (i, 0)
    cst = lambda i: (0, 0)
    u, m, s = pl.pallas_call(
        functools.partial(_embed_kernel, P=P, PLEN=PLEN, SD=SD, L=L),
        grid=(Np // bn,),
        in_specs=[pl.BlockSpec((bn, L), row),
                  pl.BlockSpec((bn, 1), row),
                  pl.BlockSpec((bn, 1), row),
                  pl.BlockSpec((PLEN, D), cst),
                  pl.BlockSpec((1, D), cst)],
        out_specs=(pl.BlockSpec((bn, P * D), row),
                   pl.BlockSpec((bn, 1), row),
                   pl.BlockSpec((bn, 1), row)),
        out_shape=(jax.ShapeDtypeStruct((Np, P * D), jnp.float32),
                   jax.ShapeDtypeStruct((Np, 1), jnp.float32),
                   jax.ShapeDtypeStruct((Np, 1), jnp.float32)),
        compiler_params=pltpu.CompilerParams(
            dimension_semantics=("parallel",), vmem_limit_bytes=_VMEM_LIMIT),
    )(z, aff_w, aff_b, wp, bp.reshape(1, D))
    if Np != N:
        u, m, s = u[:N], m[:N], s[:N]
    return u, m, s


# -------------------------------------------- layer-streamed ConvTimeNet encoder
# Activations: (rows, d_model) flat tiles (rows = samples * patch_num) held in a VMEM
# scratch across the layer grid axis. The depthwise conv runs along the patch axis via
# pltpu.roll (XLU); a precomputed per-row/per-tap float mask zeroes taps that would
# cross a sample boundary (also protects against the roll's block-edge wrap-around).
def _encoder_layer_kernel(u_ref, mask_ref, dww_ref, vec_ref, b1_ref, w1_ref,
                          w2_ref, res_ref, o_ref, act_ref, *, noff, off_min):
    l = pl.program_id(1)
    nl = pl.num_programs(1)

    @pl.when(l == 0)
    def _():
        act_ref[...] = u_ref[...]

    x = act_ref[...]                                      # (rows, D) f32
    rows = x.shape[0]

    # --- depthwise conv (merged large + re-param kernel), zero 'same' padding.
    # Uniform tap count across layers; unused taps carry zero weights.
    acc = jnp.zeros(x.shape, jnp.float32)
    for c in range(noff):
        off = c + off_min
        sh = (-off) % rows
        src = x if sh == 0 else pltpu.roll(x, shift=sh, axis=0)
        w_k = dww_ref[0, c:c + 1, :]                      # (1, D)
        if off == 0:
            acc = acc + src * w_k
        else:
            acc = acc + (src * mask_ref[:, c:c + 1]) * w_k
    out = _gelu(acc + vec_ref[0, 0:1, :])                 # + dw bias

    # --- add (learnable residual scalar) & eval-mode BatchNorm (folded)
    res0 = res_ref[l, 0]
    res1 = res_ref[l, 1]
    src1 = x + res0 * out
    src1 = src1 * vec_ref[0, 1:2, :] + vec_ref[0, 2:3, :]

    # --- position-wise Conv FFN (1x1 convs == matmuls over d_model, bf16 on MXU)
    h = jnp.dot(src1.astype(jnp.bfloat16), w1_ref[0],
                preferred_element_type=jnp.float32)
    h = _gelu(h + b1_ref[0])
    h2 = jnp.dot(h.astype(jnp.bfloat16), w2_ref[0],
                 preferred_element_type=jnp.float32) + vec_ref[0, 3:4, :]

    y = src1 + res1 * h2
    x_new = y * vec_ref[0, 4:5, :] + vec_ref[0, 5:6, :]
    act_ref[...] = x_new

    @pl.when(l == nl - 1)
    def _():
        o_ref[...] = x_new.astype(o_ref.dtype)


def encoder_fused(u2d, enc, dw_ks, P, target_samples=32):
    """All encoder layers in one pallas_call. u2d: (N*P, D) with N = batch*nvars."""
    R0, D = u2d.shape
    N = R0 // P
    NL, _, Dff = enc['w1'].shape
    NOFF = enc['dw_w'].shape[1]
    off_min, _ = _dw_offsets(dw_ks)

    s = _pick_samples_per_block(N, P, target_samples)
    if s is None:                                         # single block, pad rows to 8x
        gi, R = 1, ((R0 + 7) // 8) * 8
        rows = R
    else:
        rows = s * P
        gi = -(-N // s)
        R = gi * rows
    if R != R0:
        u2d = jnp.pad(u2d, ((0, R - R0), (0, 0)))         # pad rows never feed real rows

    # per-row/per-tap validity mask (replaces in-kernel compares + select)
    p_id = jnp.arange(R, dtype=jnp.int32) % P
    offs = jnp.arange(NOFF, dtype=jnp.int32) + off_min
    pos = p_id[:, None] + offs[None, :]
    mask = ((pos >= 0) & (pos < P)).astype(jnp.float32)   # (R, NOFF)

    row2 = lambda i, l: (i, 0)
    lsel3 = lambda i, l: (l, 0, 0)
    out = pl.pallas_call(
        functools.partial(_encoder_layer_kernel, noff=NOFF, off_min=off_min),
        grid=(gi, NL),
        in_specs=[
            pl.BlockSpec((rows, D), row2),                # activations (fetched once / i)
            pl.BlockSpec((rows, NOFF), row2),             # tap masks
            pl.BlockSpec((1, NOFF, D), lsel3),            # DW kernels, layer-streamed
            pl.BlockSpec((1, 6, D), lsel3),               # packed per-channel vectors
            pl.BlockSpec((1, 1, Dff), lsel3),             # FFN bias 1
            pl.BlockSpec((1, D, Dff), lsel3),             # FFN W1 (bf16)
            pl.BlockSpec((1, Dff, D), lsel3),             # FFN W2 (bf16)
            pl.BlockSpec(memory_space=pltpu.MemorySpace.SMEM),  # res-param scalars
        ],
        out_specs=pl.BlockSpec((rows, D), row2),
        out_shape=jax.ShapeDtypeStruct((R, D), u2d.dtype),
        scratch_shapes=[pltpu.VMEM((rows, D), jnp.float32)],   # resident activations
        compiler_params=pltpu.CompilerParams(
            dimension_semantics=("parallel", "arbitrary"),
            vmem_limit_bytes=_VMEM_LIMIT),
    )(u2d, mask, enc['dw_w'], enc['vecs'], enc['b1'], enc['w1'], enc['w2'],
      enc['res'])
    return out[:R0] if R != R0 else out


# -------------------------------------------- fused flatten head + RevIN denorm
def _head_denorm_kernel(z_ref, w_ref, b_ref, aw_ref, ab_ref, m_ref, s_ref, o_ref):
    o = jnp.dot(z_ref[...].astype(jnp.bfloat16), w_ref[...],
                preferred_element_type=jnp.float32) + b_ref[...]
    inv = pl.reciprocal(aw_ref[...] + REVIN_EPS * REVIN_EPS, approx=True)  # (bm, 1)
    o = (o - ab_ref[...]) * inv
    o = o * s_ref[...] + m_ref[...]
    o_ref[...] = o.astype(o_ref.dtype)


def head_denorm(zf, w, b, aff_w, aff_b, mean, std, target_rows=256):
    N, K = zf.shape
    TW = w.shape[1]
    bm, Np = _row_blocks(N, target_rows)
    if Np != N:
        zf = jnp.pad(zf, ((0, Np - N), (0, 0)))
        aff_w = jnp.pad(aff_w, ((0, Np - N), (0, 0)), constant_values=1.0)
        aff_b = jnp.pad(aff_b, ((0, Np - N), (0, 0)))
        mean = jnp.pad(mean, ((0, Np - N), (0, 0)))
        std = jnp.pad(std, ((0, Np - N), (0, 0)), constant_values=1.0)
    tn = _col_block(TW)                                   # tile head weight over Nout
    rowi = lambda i, j: (i, 0)
    out = pl.pallas_call(
        _head_denorm_kernel,
        grid=(Np // bm, TW // tn),
        in_specs=[pl.BlockSpec((bm, K), rowi),
                  pl.BlockSpec((K, tn), lambda i, j: (0, j)),
                  pl.BlockSpec((1, tn), lambda i, j: (0, j)),
                  pl.BlockSpec((bm, 1), rowi),
                  pl.BlockSpec((bm, 1), rowi),
                  pl.BlockSpec((bm, 1), rowi),
                  pl.BlockSpec((bm, 1), rowi)],
        out_specs=pl.BlockSpec((bm, tn), lambda i, j: (i, j)),
        out_shape=jax.ShapeDtypeStruct((Np, TW), jnp.float32),
        compiler_params=pltpu.CompilerParams(
            dimension_semantics=("parallel", "parallel"),
            vmem_limit_bytes=_VMEM_LIMIT),
    )(zf, w, b.reshape(1, TW), aff_w, aff_b, mean, std)
    return out[:N] if Np != N else out


# -------------------------------------------------------------- full forward
def convtimenet_forward(x, params, cfg):
    B, L, C = x.shape
    PLEN, SD = cfg['patch_len'], cfg['stride']
    PN, D, TW = cfg['patch_num'], cfg['d_model'], cfg['pred_len']
    N = B * C

    # Model.forward: x.permute(0,2,1) -> [B, C, L]; flatten to channel-major rows
    z = jnp.transpose(x, (0, 2, 1)).reshape(N, L)
    aff_w = jnp.tile(params['aff_w'], B).reshape(N, 1)
    aff_b = jnp.tile(params['aff_b'], B).reshape(N, 1)

    # TODO(synk): deformable patch sampling (learned offsets + grid_sample) not
    # reproduced; uniform (zero-offset) unfold patching is used instead.
    # Fused: RevIN norm + ReplicationPad1d((0, stride)) + unfold + W_P embedding.
    u_flat, mean, std = embed_patches(z, aff_w, aff_b, params['wp'], params['bp'],
                                      P=PN, PLEN=PLEN, SD=SD)
    u = u_flat.reshape(N * PN, D)

    # Fused ConvTimeNet encoder: all layers, one kernel, weights streamed per layer.
    u = encoder_fused(u, params['enc'], cfg['dw_ks'], PN)

    # Fused flatten head + RevIN denorm (w_head rows pre-permuted at init so the
    # natural (patch, d_model) flatten order is consumed directly).
    zf = u.reshape(N, PN * D)
    o = head_denorm(zf, params['w_head'], params['b_head'], aff_w, aff_b, mean, std)

    # backbone output [B, C, TW]; Model.forward final permute -> [B, TW, C]
    return jnp.transpose(o.reshape(B, C, TW), (0, 2, 1))


# ------------------------------------------------------------ parameter init
def init_params(key, cfg):
    C, PLEN, D = cfg['enc_in'], cfg['patch_len'], cfg['d_model']
    Dff, PN, TW = cfg['d_ff'], cfg['patch_num'], cfg['pred_len']
    small_ks = cfg['re_param_kernel']
    dw_ks = cfg['dw_ks']
    NL = len(dw_ks)
    off_min, NOFF = _dw_offsets(dw_ks)

    keys = iter(jax.random.split(key, 8 + 4 * NL))

    def nrm(shape, scale=0.02):
        return scale * jax.random.normal(next(keys), shape, jnp.float32)

    # eval-mode BatchNorm1d fold (weight=1, bias=0, running_mean=0, running_var=1)
    gamma, beta = jnp.ones((D,), jnp.float32), jnp.zeros((D,), jnp.float32)
    rmean, rvar = jnp.zeros((D,), jnp.float32), jnp.ones((D,), jnp.float32)
    bn_s = gamma / jnp.sqrt(rvar + BN_EPS)
    bn_b = beta - rmean * bn_s

    dw_w, vecs, b1, w1, w2, res = [], [], [], [], [], []
    for ks in dw_ks:
        large = nrm((ks, D))
        small = nrm((small_ks, D))
        lpad = (ks - small_ks) // 2
        rpad = (ks - small_ks) - lpad
        merged = large + jnp.pad(small, ((lpad, rpad), (0, 0)))   # re-param merge (.eval())
        pad_l = (ks - 1) // 2
        cols = jnp.arange(ks) - pad_l - off_min                   # offset-aligned columns
        dw_w.append(jnp.zeros((NOFF, D), jnp.float32).at[cols].set(merged))
        dwb = jnp.zeros((D,), jnp.float32)
        b2v = jnp.zeros((D,), jnp.float32)
        # packed per-channel table: [dw_b, bn1_s, bn1_b, b2, bn2_s, bn2_b]
        vecs.append(jnp.stack([dwb, bn_s, bn_b, b2v, bn_s, bn_b]))
        b1.append(jnp.zeros((1, Dff), jnp.float32))
        w1.append(nrm((D, Dff)).astype(jnp.bfloat16))
        w2.append(nrm((Dff, D)).astype(jnp.bfloat16))
        res.append(jnp.array([1e-8, 1e-8], jnp.float32))          # SublayerConnection init

    # Head weight generated in the PyTorch flatten order (row = d*PN + p), then
    # row-permuted so the kernel consumes the natural (p*D + d) flatten.
    w_head_torch = nrm((D * PN, TW))
    perm = (jnp.arange(D)[None, :] * PN + jnp.arange(PN)[:, None]).reshape(-1)

    return {
        'aff_w': jnp.ones((C,), jnp.float32),                     # RevIN affine (torch init)
        'aff_b': jnp.zeros((C,), jnp.float32),
        'wp': nrm((PLEN, D)).astype(jnp.bfloat16),                # W_P, stored transposed
        'bp': nrm((D,)),
        'w_head': w_head_torch[perm, :].astype(jnp.bfloat16),     # head, transposed+permuted
        'b_head': nrm((TW,)),
        'enc': {
            'dw_w': jnp.stack(dw_w),       # (NL, NOFF, D) f32
            'vecs': jnp.stack(vecs),       # (NL, 6, D)    f32
            'b1':   jnp.stack(b1),         # (NL, 1, Dff)  f32
            'w1':   jnp.stack(w1),         # (NL, D, Dff)  bf16
            'w2':   jnp.stack(w2),         # (NL, Dff, D)  bf16
            'res':  jnp.stack(res),        # (NL, 2)       f32
        },
    }


if __name__ == "__main__":
    cfg = dict(enc_in=4, seq_len=32, pred_len=16, e_layers=2,
               d_model=32, d_ff=64, patch_len=8, stride=4,
               dw_ks=[7, 13], re_param_kernel=3)
    # patch_num with padding_patch='end'
    cfg['patch_num'] = (cfg['seq_len'] - cfg['patch_len']) // cfg['stride'] + 1 + 1

    key = jax.random.PRNGKey(0)
    kx, kp = jax.random.split(key)
    x = jax.random.normal(kx, (2, cfg['seq_len'], cfg['enc_in']), jnp.float32)
    params = init_params(kp, cfg)

    fwd = jax.jit(functools.partial(convtimenet_forward, cfg=cfg))
    y = fwd(x, params)
    jax.block_until_ready(y)
    assert y.shape == (2, cfg['pred_len'], cfg['enc_in']), y.shape
    assert bool(jnp.all(jnp.isfinite(y)))
    print("KERNEL_OK")
</pallas_src>

<mosaic_0001>
module attributes {stable_mosaic.version = 11 : i64} {
  func.func @_embed_kernel(%arg0: i32, %arg1: memref<8x32xf32, #tpu.memory_space<vmem>>, %arg2: memref<8x1xf32, #tpu.memory_space<vmem>>, %arg3: memref<8x1xf32, #tpu.memory_space<vmem>>, %arg4: memref<8x32xbf16, #tpu.memory_space<vmem>>, %arg5: memref<1x32xf32, #tpu.memory_space<vmem>>, %arg6: memref<8x256xf32, #tpu.memory_space<vmem>>, %arg7: memref<8x1xf32, #tpu.memory_space<vmem>>, %arg8: memref<8x1xf32, #tpu.memory_space<vmem>>) attributes {dimension_semantics = [#tpu.dimension_semantics<parallel>], iteration_bounds = array<i64: 1>, scalar_prefetch = 0 : i64, scratch_operands = 0 : i64, tpu.core_type = #tpu.core_type<tc>, window_params = [{transform_indices = @transform_0, window_bounds = array<i64: 8, 32>}, {transform_indices = @transform_1, window_bounds = array<i64: 8, 1>}, {transform_indices = @transform_2, window_bounds = array<i64: 8, 1>}, {pipeline_mode = #tpu.pipeline_mode<synchronous>, transform_indices = @transform_3, window_bounds = array<i64: 8, 32>}, {pipeline_mode = #tpu.pipeline_mode<synchronous>, transform_indices = @transform_4, window_bounds = array<i64: 1, 32>}, {transform_indices = @transform_5, window_bounds = array<i64: 8, 256>}, {transform_indices = @transform_6, window_bounds = array<i64: 8, 1>}, {transform_indices = @transform_7, window_bounds = array<i64: 8, 1>}]} {
    %c0 = arith.constant 0 : index
    %c0_0 = arith.constant 0 : index
    %0 = vector.load %arg1[%c0, %c0_0] : memref<8x32xf32, #tpu.memory_space<vmem>>, vector<8x32xf32>
    %cst = arith.constant dense<0.000000e+00> : vector<8xf32>
    %1 = vector.multi_reduction <add>, %0, %cst [1] : vector<8x32xf32> to vector<8xf32>
    %2 = vector.shape_cast %1 : vector<8xf32> to vector<8x1xf32>
    %cst_1 = arith.constant 3.200000e+01 : f32
    %3 = vector.broadcast %cst_1 : f32 to vector<8x1xf32>
    %4 = arith.divf %2, %3 : vector<8x1xf32>
    %5 = vector.broadcast %4 : vector<8x1xf32> to vector<8x32xf32>
    %6 = arith.subf %0, %5 : vector<8x32xf32>
    %7 = arith.mulf %6, %6 : vector<8x32xf32>
    %cst_2 = arith.constant dense<0.000000e+00> : vector<8xf32>
    %8 = vector.multi_reduction <add>, %7, %cst_2 [1] : vector<8x32xf32> to vector<8xf32>
    %9 = vector.shape_cast %8 : vector<8xf32> to vector<8x1xf32>
    %cst_3 = arith.constant 3.200000e+01 : f32
    %10 = vector.broadcast %cst_3 : f32 to vector<8x1xf32>
    %11 = arith.divf %9, %10 : vector<8x1xf32>
    %cst_4 = arith.constant 9.99999974E-6 : f32
    %12 = vector.broadcast %cst_4 : f32 to vector<8x1xf32>
    %13 = arith.addf %11, %12 : vector<8x1xf32>
    %14 = math.sqrt %13 : vector<8x1xf32>
    %15 = vector.broadcast %4 : vector<8x1xf32> to vector<8x32xf32>
    %16 = arith.subf %0, %15 : vector<8x32xf32>
    %17 = math.rsqrt %13 : vector<8x1xf32>
    %18 = vector.broadcast %17 : vector<8x1xf32> to vector<8x32xf32>
    %19 = arith.mulf %16, %18 : vector<8x32xf32>
    %c0_5 = arith.constant 0 : index
    %c0_6 = arith.constant 0 : index
    %20 = vector.load %arg2[%c0_5, %c0_6] : memref<8x1xf32, #tpu.memory_space<vmem>>, vector<8x1xf32>
    %21 = vector.broadcast %20 : vector<8x1xf32> to vector<8x32xf32>
    %22 = arith.mulf %19, %21 : vector<8x32xf32>
    %c0_7 = arith.constant 0 : index
    %c0_8 = arith.constant 0 : index
    %23 = vector.load %arg3[%c0_7, %c0_8] : memref<8x1xf32, #tpu.memory_space<vmem>>, vector<8x1xf32>
    %24 = vector.broadcast %23 : vector<8x1xf32> to vector<8x32xf32>
    %25 = arith.addf %22, %24 : vector<8x32xf32>
    %c0_9 = arith.constant 0 : index
    %c0_10 = arith.constant 0 : index
    %26 = vector.load %arg7[%c0_9, %c0_10] : memref<8x1xf32, #tpu.memory_space<vmem>>, vector<8x1xf32>
    tpu.vector_store %arg7[%c0_9, %c0_10], %4 {strides = array<i32>} : memref<8x1xf32, #tpu.memory_space<vmem>>, vector<8x1xf32>,
    %c0_11 = arith.constant 0 : index
    %c0_12 = arith.constant 0 : index
    %27 = vector.load %arg8[%c0_11, %c0_12] : memref<8x1xf32, #tpu.memory_space<vmem>>, vector<8x1xf32>
    tpu.vector_store %arg8[%c0_11, %c0_12], %14 {strides = array<i32>} : memref<8x1xf32, #tpu.memory_space<vmem>>, vector<8x1xf32>,
    %28 = vector.extract_strided_slice %25 {offsets = [0, 31], sizes = [8, 1], strides = [1, 1]} : vector<8x32xf32> to vector<8x1xf32>
    %29 = vector.shape_cast %28 : vector<8x1xf32> to vector<8x1xf32>
    %30 = vector.broadcast %29 : vector<8x1xf32> to vector<8x4xf32>
    %31 = tpu.concatenate %25, %30 in 1 : vector<8x32xf32>, vector<8x4xf32> -> vector<8x36xf32>
    %c0_13 = arith.constant 0 : index
    %c0_14 = arith.constant 0 : index
    %32 = vector.load %arg4[%c0_13, %c0_14] : memref<8x32xbf16, #tpu.memory_space<vmem>>, vector<8x32xbf16>
    %c0_15 = arith.constant 0 : index
    %c0_16 = arith.constant 0 : index
    %33 = vector.load %arg5[%c0_15, %c0_16] : memref<1x32xf32, #tpu.memory_space<vmem>>, vector<1x32xf32>
    %34 = vector.extract_strided_slice %31 {offsets = [0, 0], sizes = [8, 8], strides = [1, 1]} : vector<8x36xf32> to vector<8x8xf32>
    %35 = arith.truncf %34 : vector<8x8xf32> to vector<8x8xbf16>
    %cst_17 = arith.constant dense<0.000000e+00> : vector<8x32xf32>
    %36 = tpu.matmul %35, %32, %cst_17 {dimension_numbers = #tpu.dot_dimension_numbers<[1], [0], [0], [1], [0, 0, 1, 1], [], []>} : vector<8x8xbf16>, vector<8x32xbf16>, vector<8x32xf32> -> vector<8x32xf32>
    %37 = vector.broadcast %33 : vector<1x32xf32> to vector<8x32xf32>
    %38 = arith.addf %36, %37 : vector<8x32xf32>
    %c0_18 = arith.constant 0 : index
    %c0_19 = arith.constant 0 : index
    %39 = vector.load %arg6[%c0_18, %c0_19] : memref<8x256xf32, #tpu.memory_space<vmem>>, vector<8x32xf32>
    tpu.vector_store %arg6[%c0_18, %c0_19], %38 {strides = array<i32>} : memref<8x256xf32, #tpu.memory_space<vmem>>, vector<8x32xf32>,
    %40 = vector.extract_strided_slice %31 {offsets = [0, 4], sizes = [8, 8], strides = [1, 1]} : vector<8x36xf32> to vector<8x8xf32>
    %41 = arith.truncf %40 : vector<8x8xf32> to vector<8x8xbf16>
    %cst_20 = arith.constant dense<0.000000e+00> : vector<8x32xf32>
    %42 = tpu.matmul %41, %32, %cst_20 {dimension_numbers = #tpu.dot_dimension_numbers<[1], [0], [0], [1], [0, 0, 1, 1], [], []>} : vector<8x8xbf16>, vector<8x32xbf16>, vector<8x32xf32> -> vector<8x32xf32>
    %43 = vector.broadcast %33 : vector<1x32xf32> to vector<8x32xf32>
    %44 = arith.addf %42, %43 : vector<8x32xf32>
    %c0_21 = arith.constant 0 : index
    %c32 = arith.constant 32 : index
    %45 = vector.load %arg6[%c0_21, %c32] : memref<8x256xf32, #tpu.memory_space<vmem>>, vector<8x32xf32>
    tpu.vector_store %arg6[%c0_21, %c32], %44 {strides = array<i32>} : memref<8x256xf32, #tpu.memory_space<vmem>>, vector<8x32xf32>,
    %46 = vector.extract_strided_slice %31 {offsets = [0, 8], sizes = [8, 8], strides = [1, 1]} : vector<8x36xf32> to vector<8x8xf32>
    %47 = arith.truncf %46 : vector<8x8xf32> to vector<8x8xbf16>
    %cst_22 = arith.constant dense<0.000000e+00> : vector<8x32xf32>
    %48 = tpu.matmul %47, %32, %cst_22 {dimension_numbers = #tpu.dot_dimension_numbers<[1], [0], [0], [1], [0, 0, 1, 1], [], []>} : vector<8x8xbf16>, vector<8x32xbf16>, vector<8x32xf32> -> vector<8x32xf32>
    %49 = vector.broadcast %33 : vector<1x32xf32> to vector<8x32xf32>
    %50 = arith.addf %48, %49 : vector<8x32xf32>
    %c0_23 = arith.constant 0 : index
    %c64 = arith.constant 64 : index
    %51 = vector.load %arg6[%c0_23, %c64] : memref<8x256xf32, #tpu.memory_space<vmem>>, vector<8x32xf32>
    tpu.vector_store %arg6[%c0_23, %c64], %50 {strides = array<i32>} : memref<8x256xf32, #tpu.memory_space<vmem>>, vector<8x32xf32>,
    %52 = vector.extract_strided_slice %31 {offsets = [0, 12], sizes = [8, 8], strides = [1, 1]} : vector<8x36xf32> to vector<8x8xf32>
    %53 = arith.truncf %52 : vector<8x8xf32> to vector<8x8xbf16>
    %cst_24 = arith.constant dense<0.000000e+00> : vector<8x32xf32>
    %54 = tpu.matmul %53, %32, %cst_24 {dimension_numbers = #tpu.dot_dimension_numbers<[1], [0], [0], [1], [0, 0, 1, 1], [], []>} : vector<8x8xbf16>, vector<8x32xbf16>, vector<8x32xf32> -> vector<8x32xf32>
    %55 = vector.broadcast %33 : vector<1x32xf32> to vector<8x32xf32>
    %56 = arith.addf %54, %55 : vector<8x32xf32>
    %c0_25 = arith.constant 0 : index
    %c96 = arith.constant 96 : index
    %57 = vector.load %arg6[%c0_25, %c96] : memref<8x256xf32, #tpu.memory_space<vmem>>, vector<8x32xf32>
    tpu.vector_store %arg6[%c0_25, %c96], %56 {strides = array<i32>} : memref<8x256xf32, #tpu.memory_space<vmem>>, vector<8x32xf32>,
    %58 = vector.extract_strided_slice %31 {offsets = [0, 16], sizes = [8, 8], strides = [1, 1]} : vector<8x36xf32> to vector<8x8xf32>
    %59 = arith.truncf %58 : vector<8x8xf32> to vector<8x8xbf16>
    %cst_26 = arith.constant dense<0.000000e+00> : vector<8x32xf32>
    %60 = tpu.matmul %59, %32, %cst_26 {dimension_numbers = #tpu.dot_dimension_numbers<[1], [0], [0], [1], [0, 0, 1, 1], [], []>} : vector<8x8xbf16>, vector<8x32xbf16>, vector<8x32xf32> -> vector<8x32xf32>
    %61 = vector.broadcast %33 : vector<1x32xf32> to vector<8x32xf32>
    %62 = arith.addf %60, %61 : vector<8x32xf32>
    %c0_27 = arith.constant 0 : index
    %c128 = arith.constant 128 : index
    %63 = vector.load %arg6[%c0_27, %c128] : memref<8x256xf32, #tpu.memory_space<vmem>>, vector<8x32xf32>
    tpu.vector_store %arg6[%c0_27, %c128], %62 {strides = array<i32>} : memref<8x256xf32, #tpu.memory_space<vmem>>, vector<8x32xf32>,
    %64 = vector.extract_strided_slice %31 {offsets = [0, 20], sizes = [8, 8], strides = [1, 1]} : vector<8x36xf32> to vector<8x8xf32>
    %65 = arith.truncf %64 : vector<8x8xf32> to vector<8x8xbf16>
    %cst_28 = arith.constant dense<0.000000e+00> : vector<8x32xf32>
    %66 = tpu.matmul %65, %32, %cst_28 {dimension_numbers = #tpu.dot_dimension_numbers<[1], [0], [0], [1], [0, 0, 1, 1], [], []>} : vector<8x8xbf16>, vector<8x32xbf16>, vector<8x32xf32> -> vector<8x32xf32>
    %67 = vector.broadcast %33 : vector<1x32xf32> to vector<8x32xf32>
    %68 = arith.addf %66, %67 : vector<8x32xf32>
    %c0_29 = arith.constant 0 : index
    %c160 = arith.constant 160 : index
    %69 = vector.load %arg6[%c0_29, %c160] : memref<8x256xf32, #tpu.memory_space<vmem>>, vector<8x32xf32>
    tpu.vector_store %arg6[%c0_29, %c160], %68 {strides = array<i32>} : memref<8x256xf32, #tpu.memory_space<vmem>>, vector<8x32xf32>,
    %70 = vector.extract_strided_slice %31 {offsets = [0, 24], sizes = [8, 8], strides = [1, 1]} : vector<8x36xf32> to vector<8x8xf32>
    %71 = arith.truncf %70 : vector<8x8xf32> to vector<8x8xbf16>
    %cst_30 = arith.constant dense<0.000000e+00> : vector<8x32xf32>
    %72 = tpu.matmul %71, %32, %cst_30 {dimension_numbers = #tpu.dot_dimension_numbers<[1], [0], [0], [1], [0, 0, 1, 1], [], []>} : vector<8x8xbf16>, vector<8x32xbf16>, vector<8x32xf32> -> vector<8x32xf32>
    %73 = vector.broadcast %33 : vector<1x32xf32> to vector<8x32xf32>
    %74 = arith.addf %72, %73 : vector<8x32xf32>
    %c0_31 = arith.constant 0 : index
    %c192 = arith.constant 192 : index
    %75 = vector.load %arg6[%c0_31, %c192] : memref<8x256xf32, #tpu.memory_space<vmem>>, vector<8x32xf32>
    tpu.vector_store %arg6[%c0_31, %c192], %74 {strides = array<i32>} : memref<8x256xf32, #tpu.memory_space<vmem>>, vector<8x32xf32>,
    %76 = vector.extract_strided_slice %31 {offsets = [0, 28], sizes = [8, 8], strides = [1, 1]} : vector<8x36xf32> to vector<8x8xf32>
    %77 = arith.truncf %76 : vector<8x8xf32> to vector<8x8xbf16>
    %cst_32 = arith.constant dense<0.000000e+00> : vector<8x32xf32>
    %78 = tpu.matmul %77, %32, %cst_32 {dimension_numbers = #tpu.dot_dimension_numbers<[1], [0], [0], [1], [0, 0, 1, 1], [], []>} : vector<8x8xbf16>, vector<8x32xbf16>, vector<8x32xf32> -> vector<8x32xf32>
    %79 = vector.broadcast %33 : vector<1x32xf32> to vector<8x32xf32>
    %80 = arith.addf %78, %79 : vector<8x32xf32>
    %c0_33 = arith.constant 0 : index
    %c224 = arith.constant 224 : index
    %81 = vector.load %arg6[%c0_33, %c224] : memref<8x256xf32, #tpu.memory_space<vmem>>, vector<8x32xf32>
    tpu.vector_store %arg6[%c0_33, %c224], %80 {strides = array<i32>} : memref<8x256xf32, #tpu.memory_space<vmem>>, vector<8x32xf32>,
    return
  }
  func.func @transform_0(%arg0: i32) -> (i32, i32) {
    %c0_i32 = arith.constant 0 : i32
    %c0_i32_0 = arith.constant 0 : i32
    return %arg0, %c0_i32 : i32, i32
  }
  func.func @transform_1(%arg0: i32) -> (i32, i32) {
    %c0_i32 = arith.constant 0 : i32
    %c0_i32_0 = arith.constant 0 : i32
    return %arg0, %c0_i32 : i32, i32
  }
  func.func @transform_2(%arg0: i32) -> (i32, i32) {
    %c0_i32 = arith.constant 0 : i32
    %c0_i32_0 = arith.constant 0 : i32
    return %arg0, %c0_i32 : i32, i32
  }
  func.func @transform_3(%arg0: i32) -> (i32, i32) {
    %c0_i32 = arith.constant 0 : i32
    %c0_i32_0 = arith.constant 0 : i32
    %c0_i32_1 = arith.constant 0 : i32
    return %c0_i32, %c0_i32_0 : i32, i32
  }
  func.func @transform_4(%arg0: i32) -> (i32, i32) {
    %c0_i32 = arith.constant 0 : i32
    %c0_i32_0 = arith.constant 0 : i32
    %c0_i32_1 = arith.constant 0 : i32
    return %c0_i32, %c0_i32_0 : i32, i32
  }
  func.func @transform_5(%arg0: i32) -> (i32, i32) {
    %c0_i32 = arith.constant 0 : i32
    %c0_i32_0 = arith.constant 0 : i32
    return %arg0, %c0_i32 : i32, i32
  }
  func.func @transform_6(%arg0: i32) -> (i32, i32) {
    %c0_i32 = arith.constant 0 : i32
    %c0_i32_0 = arith.constant 0 : i32
    return %arg0, %c0_i32 : i32, i32
  }
  func.func @transform_7(%arg0: i32) -> (i32, i32) {
    %c0_i32 = arith.constant 0 : i32
    %c0_i32_0 = arith.constant 0 : i32
    return %arg0, %c0_i32 : i32, i32
  }
}

module attributes {stable_mosaic.version = 11 : i64} {
  func.func @_encoder_layer_kernel(%arg0: i32, %arg1: i32, %arg2: memref<32x32xf32, #tpu.memory_space<vmem>>, %arg3: memref<32x13xf32, #tpu.memory_space<vmem>>, %arg4: memref<1x13x32xf32, #tpu.memory_space<vmem>>, %arg5: memref<1x6x32xf32, #tpu.memory_space<vmem>>, %arg6: memref<1x1x64xf32, #tpu.memory_space<vmem>>, %arg7: memref<1x32x64xbf16, #tpu.memory_space<vmem>>, %arg8: memref<1x64x32xbf16, #tpu.memory_space<vmem>>, %arg9: memref<2x2xf32, #tpu.memory_space<smem>>, %arg10: memref<32x32xf32, #tpu.memory_space<vmem>>, %arg11: memref<32x32xf32, #tpu.memory_space<vmem>>) attributes {dimension_semantics = [#tpu.dimension_semantics<parallel>, #tpu.dimension_semantics<arbitrary>], iteration_bounds = array<i64: 2, 2>, scalar_prefetch = 0 : i64, scratch_operands = 1 : i64, tpu.core_type = #tpu.core_type<tc>, window_params = [{transform_indices = @transform_0, window_bounds = array<i64: 32, 32>}, {transform_indices = @transform_1, window_bounds = array<i64: 32, 13>}, {transform_indices = @transform_2, window_bounds = array<i64: 1, 13, 32>}, {transform_indices = @transform_3, window_bounds = array<i64: 1, 6, 32>}, {transform_indices = @transform_4, window_bounds = array<i64: 1, 1, 64>}, {transform_indices = @transform_5, window_bounds = array<i64: 1, 32, 64>}, {transform_indices = @transform_6, window_bounds = array<i64: 1, 64, 32>}, {transform_indices = @transform_7, window_bounds = array<i64: 2, 2>}, {transform_indices = @transform_8, window_bounds = array<i64: 32, 32>}]} {
    %c0_i32 = arith.constant 0 : i32
    %0 = arith.cmpi eq, %arg1, %c0_i32 : i32
    %1 = arith.extui %0 : i1 to i32
    %c0_i32_0 = arith.constant 0 : i32
    %2 = arith.cmpi ne, %1, %c0_i32_0 : i32
    scf.if %2 {
      %c0_96 = arith.constant 0 : index
      %c0_97 = arith.constant 0 : index
      %194 = vector.load %arg2[%c0_96, %c0_97] : memref<32x32xf32, #tpu.memory_space<vmem>>, vector<32x32xf32>
      %c0_98 = arith.constant 0 : index
      %c0_99 = arith.constant 0 : index
      %195 = vector.load %arg11[%c0_98, %c0_99] : memref<32x32xf32, #tpu.memory_space<vmem>>, vector<32x32xf32>
      tpu.vector_store %arg11[%c0_98, %c0_99], %194 {strides = array<i32>} : memref<32x32xf32, #tpu.memory_space<vmem>>, vector<32x32xf32>,
    } else {
    }
    %c0 = arith.constant 0 : index
    %c0_1 = arith.constant 0 : index
    %3 = vector.load %arg11[%c0, %c0_1] : memref<32x32xf32, #tpu.memory_space<vmem>>, vector<32x32xf32>
    %cst = arith.constant 0.000000e+00 : f32
    %4 = vector.broadcast %cst : f32 to vector<32x32xf32>
    %c6_i32 = arith.constant 6 : i32
    %5 = tpu.dynamic_rotate %3 by %c6_i32 dim 0 : vector<32x32xf32>, i32 -> vector<32x32xf32>
    %c0_2 = arith.constant 0 : index
    %c0_3 = arith.constant 0 : index
    %c0_4 = arith.constant 0 : index
    %6 = vector.load %arg4[%c0_2, %c0_3, %c0_4] : memref<1x13x32xf32, #tpu.memory_space<vmem>>, vector<1x1x32xf32>
    %7 = vector.shape_cast %6 : vector<1x1x32xf32> to vector<1x32xf32>
    %c0_5 = arith.constant 0 : index
    %c0_6 = arith.constant 0 : index
    %8 = vector.load %arg3[%c0_5, %c0_6] : memref<32x13xf32, #tpu.memory_space<vmem>>, vector<32x1xf32>
    %9 = vector.broadcast %8 : vector<32x1xf32> to vector<32x32xf32>
    %10 = arith.mulf %5, %9 : vector<32x32xf32>
    %11 = vector.broadcast %7 : vector<1x32xf32> to vector<32x32xf32>
    %12 = arith.mulf %10, %11 : vector<32x32xf32>
    %13 = arith.addf %4, %12 : vector<32x32xf32>
    %c5_i32 = arith.constant 5 : i32
    %14 = tpu.dynamic_rotate %3 by %c5_i32 dim 0 : vector<32x32xf32>, i32 -> vector<32x32xf32>
    %c0_7 = arith.constant 0 : index
    %c1 = arith.constant 1 : index
    %c0_8 = arith.constant 0 : index
    %15 = vector.load %arg4[%c0_7, %c1, %c0_8] : memref<1x13x32xf32, #tpu.memory_space<vmem>>, vector<1x1x32xf32>
    %16 = vector.shape_cast %15 : vector<1x1x32xf32> to vector<1x32xf32>
    %c0_9 = arith.constant 0 : index
    %c1_10 = arith.constant 1 : index
    %17 = vector.load %arg3[%c0_9, %c1_10] : memref<32x13xf32, #tpu.memory_space<vmem>>, vector<32x1xf32>
    %18 = vector.broadcast %17 : vector<32x1xf32> to vector<32x32xf32>
    %19 = arith.mulf %14, %18 : vector<32x32xf32>
    %20 = vector.broadcast %16 : vector<1x32xf32> to vector<32x32xf32>
    %21 = arith.mulf %19, %20 : vector<32x32xf32>
    %22 = arith.addf %13, %21 : vector<32x32xf32>
    %c4_i32 = arith.constant 4 : i32
    %23 = tpu.dynamic_rotate %3 by %c4_i32 dim 0 : vector<32x32xf32>, i32 -> vector<32x32xf32>
    %c0_11 = arith.constant 0 : index
    %c2 = arith.constant 2 : index
    %c0_12 = arith.constant 0 : index
    %24 = vector.load %arg4[%c0_11, %c2, %c0_12] : memref<1x13x32xf32, #tpu.memory_space<vmem>>, vector<1x1x32xf32>
    %25 = vector.shape_cast %24 : vector<1x1x32xf32> to vector<1x32xf32>
    %c0_13 = arith.constant 0 : index
    %c2_14 = arith.constant 2 : index
    %26 = vector.load %arg3[%c0_13, %c2_14] : memref<32x13xf32, #tpu.memory_space<vmem>>, vector<32x1xf32>
    %27 = vector.broadcast %26 : vector<32x1xf32> to vector<32x32xf32>
    %28 = arith.mulf %23, %27 : vector<32x32xf32>
    %29 = vector.broadcast %25 : vector<1x32xf32> to vector<32x32xf32>
    %30 = arith.mulf %28, %29 : vector<32x32xf32>
    %31 = arith.addf %22, %30 : vector<32x32xf32>
    %c3_i32 = arith.constant 3 : i32
    %32 = tpu.dynamic_rotate %3 by %c3_i32 dim 0 : vector<32x32xf32>, i32 -> vector<32x32xf32>
    %c0_15 = arith.constant 0 : index
    %c3 = arith.constant 3 : index
    %c0_16 = arith.constant 0 : index
    %33 = vector.load %arg4[%c0_15, %c3, %c0_16] : memref<1x13x32xf32, #tpu.memory_space<vmem>>, vector<1x1x32xf32>
    %34 = vector.shape_cast %33 : vector<1x1x32xf32> to vector<1x32xf32>
    %c0_17 = arith.constant 0 : index
    %c3_18 = arith.constant 3 : index
    %35 = vector.load %arg3[%c0_17, %c3_18] : memref<32x13xf32, #tpu.memory_space<vmem>>, vector<32x1xf32>
    %36 = vector.broadcast %35 : vector<32x1xf32> to vector<32x32xf32>
    %37 = arith.mulf %32, %36 : vector<32x32xf32>
    %38 = vector.broadcast %34 : vector<1x32xf32> to vector<32x32xf32>
    %39 = arith.mulf %37, %38 : vector<32x32xf32>
    %40 = arith.addf %31, %39 : vector<32x32xf32>
    %c2_i32 = arith.constant 2 : i32
    %41 = tpu.dynamic_rotate %3 by %c2_i32 dim 0 : vector<32x32xf32>, i32 -> vector<32x32xf32>
    %c0_19 = arith.constant 0 : index
    %c4 = arith.constant 4 : index
    %c0_20 = arith.constant 0 : index
    %42 = vector.load %arg4[%c0_19, %c4, %c0_20] : memref<1x13x32xf32, #tpu.memory_space<vmem>>, vector<1x1x32xf32>
    %43 = vector.shape_cast %42 : vector<1x1x32xf32> to vector<1x32xf32>
    %c0_21 = arith.constant 0 : index
    %c4_22 = arith.constant 4 : index
    %44 = vector.load %arg3[%c0_21, %c4_22] : memref<32x13xf32, #tpu.memory_space<vmem>>, vector<32x1xf32>
    %45 = vector.broadcast %44 : vector<32x1xf32> to vector<32x32xf32>
    %46 = arith.mulf %41, %45 : vector<32x32xf32>
    %47 = vector.broadcast %43 : vector<1x32xf32> to vector<32x32xf32>
    %48 = arith.mulf %46, %47 : vector<32x32xf32>
    %49 = arith.addf %40, %48 : vector<32x32xf32>
    %c1_i32 = arith.constant 1 : i32
    %50 = tpu.dynamic_rotate %3 by %c1_i32 dim 0 : vector<32x32xf32>, i32 -> vector<32x32xf32>
    %c0_23 = arith.constant 0 : index
    %c5 = arith.constant 5 : index
    %c0_24 = arith.constant 0 : index
    %51 = vector.load %arg4[%c0_23, %c5, %c0_24] : memref<1x13x32xf32, #tpu.memory_space<vmem>>, vector<1x1x32xf32>
    %52 = vector.shape_cast %51 : vector<1x1x32xf32> to vector<1x32xf32>
    %c0_25 = arith.constant 0 : index
    %c5_26 = arith.constant 5 : index
    %53 = vector.load %arg3[%c0_25, %c5_26] : memref<32x13xf32, #tpu.memory_space<vmem>>, vector<32x1xf32>
    %54 = vector.broadcast %53 : vector<32x1xf32> to vector<32x32xf32>
    %55 = arith.mulf %50, %54 : vector<32x32xf32>
    %56 = vector.broadcast %52 : vector<1x32xf32> to vector<32x32xf32>
    %57 = arith.mulf %55, %56 : vector<32x32xf32>
    %58 = arith.addf %49, %57 : vector<32x32xf32>
    %c0_27 = arith.constant 0 : index
    %c6 = arith.constant 6 : index
    %c0_28 = arith.constant 0 : index
    %59 = vector.load %arg4[%c0_27, %c6, %c0_28] : memref<1x13x32xf32, #tpu.memory_space<vmem>>, vector<1x1x32xf32>
    %60 = vector.shape_cast %59 : vector<1x1x32xf32> to vector<1x32xf32>
    %61 = vector.broadcast %60 : vector<1x32xf32> to vector<32x32xf32>
    %62 = arith.mulf %3, %61 : vector<32x32xf32>
    %63 = arith.addf %58, %62 : vector<32x32xf32>
    %c31_i32 = arith.constant 31 : i32
    %64 = tpu.dynamic_rotate %3 by %c31_i32 dim 0 : vector<32x32xf32>, i32 -> vector<32x32xf32>
    %c0_29 = arith.constant 0 : index
    %c7 = arith.constant 7 : index
    %c0_30 = arith.constant 0 : index
    %65 = vector.load %arg4[%c0_29, %c7, %c0_30] : memref<1x13x32xf32, #tpu.memory_space<vmem>>, vector<1x1x32xf32>
    %66 = vector.shape_cast %65 : vector<1x1x32xf32> to vector<1x32xf32>
    %c0_31 = arith.constant 0 : index
    %c7_32 = arith.constant 7 : index
    %67 = vector.load %arg3[%c0_31, %c7_32] : memref<32x13xf32, #tpu.memory_space<vmem>>, vector<32x1xf32>
    %68 = vector.broadcast %67 : vector<32x1xf32> to vector<32x32xf32>
    %69 = arith.mulf %64, %68 : vector<32x32xf32>
    %70 = vector.broadcast %66 : vector<1x32xf32> to vector<32x32xf32>
    %71 = arith.mulf %69, %70 : vector<32x32xf32>
    %72 = arith.addf %63, %71 : vector<32x32xf32>
    %c30_i32 = arith.constant 30 : i32
    %73 = tpu.dynamic_rotate %3 by %c30_i32 dim 0 : vector<32x32xf32>, i32 -> vector<32x32xf32>
    %c0_33 = arith.constant 0 : index
    %c8 = arith.constant 8 : index
    %c0_34 = arith.constant 0 : index
    %74 = vector.load %arg4[%c0_33, %c8, %c0_34] : memref<1x13x32xf32, #tpu.memory_space<vmem>>, vector<1x1x32xf32>
    %75 = vector.shape_cast %74 : vector<1x1x32xf32> to vector<1x32xf32>
    %c0_35 = arith.constant 0 : index
    %c8_36 = arith.constant 8 : index
    %76 = vector.load %arg3[%c0_35, %c8_36] : memref<32x13xf32, #tpu.memory_space<vmem>>, vector<32x1xf32>
    %77 = vector.broadcast %76 : vector<32x1xf32> to vector<32x32xf32>
    %78 = arith.mulf %73, %77 : vector<32x32xf32>
    %79 = vector.broadcast %75 : vector<1x32xf32> to vector<32x32xf32>
    %80 = arith.mulf %78, %79 : vector<32x32xf32>
    %81 = arith.addf %72, %80 : vector<32x32xf32>
    %c29_i32 = arith.constant 29 : i32
    %82 = tpu.dynamic_rotate %3 by %c29_i32 dim 0 : vector<32x32xf32>, i32 -> vector<32x32xf32>
    %c0_37 = arith.constant 0 : index
    %c9 = arith.constant 9 : index
    %c0_38 = arith.constant 0 : index
    %83 = vector.load %arg4[%c0_37, %c9, %c0_38] : memref<1x13x32xf32, #tpu.memory_space<vmem>>, vector<1x1x32xf32>
    %84 = vector.shape_cast %83 : vector<1x1x32xf32> to vector<1x32xf32>
    %c0_39 = arith.constant 0 : index
    %c9_40 = arith.constant 9 : index
    %85 = vector.load %arg3[%c0_39, %c9_40] : memref<32x13xf32, #tpu.memory_space<vmem>>, vector<32x1xf32>
    %86 = vector.broadcast %85 : vector<32x1xf32> to vector<32x32xf32>
    %87 = arith.mulf %82, %86 : vector<32x32xf32>
    %88 = vector.broadcast %84 : vector<1x32xf32> to vector<32x32xf32>
    %89 = arith.mulf %87, %88 : vector<32x32xf32>
    %90 = arith.addf %81, %89 : vector<32x32xf32>
    %c28_i32 = arith.constant 28 : i32
    %91 = tpu.dynamic_rotate %3 by %c28_i32 dim 0 : vector<32x32xf32>, i32 -> vector<32x32xf32>
    %c0_41 = arith.constant 0 : index
    %c10 = arith.constant 10 : index
    %c0_42 = arith.constant 0 : index
    %92 = vector.load %arg4[%c0_41, %c10, %c0_42] : memref<1x13x32xf32, #tpu.memory_space<vmem>>, vector<1x1x32xf32>
    %93 = vector.shape_cast %92 : vector<1x1x32xf32> to vector<1x32xf32>
    %c0_43 = arith.constant 0 : index
    %c10_44 = arith.constant 10 : index
    %94 = vector.load %arg3[%c0_43, %c10_44] : memref<32x13xf32, #tpu.memory_space<vmem>>, vector<32x1xf32>
    %95 = vector.broadcast %94 : vector<32x1xf32> to vector<32x32xf32>
    %96 = arith.mulf %91, %95 : vector<32x32xf32>
    %97 = vector.broadcast %93 : vector<1x32xf32> to vector<32x32xf32>
    %98 = arith.mulf %96, %97 : vector<32x32xf32>
    %99 = arith.addf %90, %98 : vector<32x32xf32>
    %c27_i32 = arith.constant 27 : i32
    %100 = tpu.dynamic_rotate %3 by %c27_i32 dim 0 : vector<32x32xf32>, i32 -> vector<32x32xf32>
    %c0_45 = arith.constant 0 : index
    %c11 = arith.constant 11 : index
    %c0_46 = arith.constant 0 : index
    %101 = vector.load %arg4[%c0_45, %c11, %c0_46] : memref<1x13x32xf32, #tpu.memory_space<vmem>>, vector<1x1x32xf32>
    %102 = vector.shape_cast %101 : vector<1x1x32xf32> to vector<1x32xf32>
    %c0_47 = arith.constant 0 : index
    %c11_48 = arith.constant 11 : index
    %103 = vector.load %arg3[%c0_47, %c11_48] : memref<32x13xf32, #tpu.memory_space<vmem>>, vector<32x1xf32>
    %104 = vector.broadcast %103 : vector<32x1xf32> to vector<32x32xf32>
    %105 = arith.mulf %100, %104 : vector<32x32xf32>
    %106 = vector.broadcast %102 : vector<1x32xf32> to vector<32x32xf32>
    %107 = arith.mulf %105, %106 : vector<32x32xf32>
    %108 = arith.addf %99, %107 : vector<32x32xf32>
    %c26_i32 = arith.constant 26 : i32
    %109 = tpu.dynamic_rotate %3 by %c26_i32 dim 0 : vector<32x32xf32>, i32 -> vector<32x32xf32>
    %c0_49 = arith.constant 0 : index
    %c12 = arith.constant 12 : index
    %c0_50 = arith.constant 0 : index
    %110 = vector.load %arg4[%c0_49, %c12, %c0_50] : memref<1x13x32xf32, #tpu.memory_space<vmem>>, vector<1x1x32xf32>
    %111 = vector.shape_cast %110 : vector<1x1x32xf32> to vector<1x32xf32>
    %c0_51 = arith.constant 0 : index
    %c12_52 = arith.constant 12 : index
    %112 = vector.load %arg3[%c0_51, %c12_52] : memref<32x13xf32, #tpu.memory_space<vmem>>, vector<32x1xf32>
    %113 = vector.broadcast %112 : vector<32x1xf32> to vector<32x32xf32>
    %114 = arith.mulf %109, %113 : vector<32x32xf32>
    %115 = vector.broadcast %111 : vector<1x32xf32> to vector<32x32xf32>
    %116 = arith.mulf %114, %115 : vector<32x32xf32>
    %117 = arith.addf %108, %116 : vector<32x32xf32>
    %c0_53 = arith.constant 0 : index
    %c0_54 = arith.constant 0 : index
    %c0_55 = arith.constant 0 : index
    %118 = vector.load %arg5[%c0_53, %c0_54, %c0_55] : memref<1x6x32xf32, #tpu.memory_space<vmem>>, vector<1x1x32xf32>
    %119 = vector.shape_cast %118 : vector<1x1x32xf32> to vector<1x32xf32>
    %120 = vector.broadcast %119 : vector<1x32xf32> to vector<32x32xf32>
    %121 = arith.addf %117, %120 : vector<32x32xf32>
    %122 = arith.mulf %121, %121 : vector<32x32xf32>
    %123 = arith.mulf %121, %122 : vector<32x32xf32>
    %cst_56 = arith.constant 4.471500e-02 : f32
    %124 = vector.broadcast %cst_56 : f32 to vector<32x32xf32>
    %125 = arith.mulf %124, %123 : vector<32x32xf32>
    %126 = arith.addf %121, %125 : vector<32x32xf32>
    %cst_57 = arith.constant 0.797884583 : f32
    %127 = vector.broadcast %cst_57 : f32 to vector<32x32xf32>
    %128 = arith.mulf %127, %126 : vector<32x32xf32>
    %129 = math.tanh %128 : vector<32x32xf32>
    %cst_58 = arith.constant 1.000000e+00 : f32
    %130 = vector.broadcast %cst_58 : f32 to vector<32x32xf32>
    %131 = arith.addf %130, %129 : vector<32x32xf32>
    %cst_59 = arith.constant 5.000000e-01 : f32
    %132 = vector.broadcast %cst_59 : f32 to vector<32x32xf32>
    %133 = arith.mulf %132, %131 : vector<32x32xf32>
    %134 = arith.mulf %121, %133 : vector<32x32xf32>
    %135 = arith.index_cast %arg1 : i32 to index
    %c0_60 = arith.constant 0 : index
    %136 = memref.load %arg9[%135, %c0_60] : memref<2x2xf32, #tpu.memory_space<smem>>
    %137 = arith.index_cast %arg1 : i32 to index
    %c1_61 = arith.constant 1 : index
    %138 = memref.load %arg9[%137, %c1_61] : memref<2x2xf32, #tpu.memory_space<smem>>
    %139 = vector.broadcast %136 : f32 to vector<32x32xf32>
    %140 = arith.mulf %139, %134 : vector<32x32xf32>
    %141 = arith.addf %3, %140 : vector<32x32xf32>
    %c0_62 = arith.constant 0 : index
    %c1_63 = arith.constant 1 : index
    %c0_64 = arith.constant 0 : index
    %142 = vector.load %arg5[%c0_62, %c1_63, %c0_64] : memref<1x6x32xf32, #tpu.memory_space<vmem>>, vector<1x1x32xf32>
    %143 = vector.shape_cast %142 : vector<1x1x32xf32> to vector<1x32xf32>
    %144 = vector.broadcast %143 : vector<1x32xf32> to vector<32x32xf32>
    %145 = arith.mulf %141, %144 : vector<32x32xf32>
    %c0_65 = arith.constant 0 : index
    %c2_66 = arith.constant 2 : index
    %c0_67 = arith.constant 0 : index
    %146 = vector.load %arg5[%c0_65, %c2_66, %c0_67] : memref<1x6x32xf32, #tpu.memory_space<vmem>>, vector<1x1x32xf32>
    %147 = vector.shape_cast %146 : vector<1x1x32xf32> to vector<1x32xf32>
    %148 = vector.broadcast %147 : vector<1x32xf32> to vector<32x32xf32>
    %149 = arith.addf %145, %148 : vector<32x32xf32>
    %150 = arith.truncf %149 : vector<32x32xf32> to vector<32x32xbf16>
    %c0_68 = arith.constant 0 : index
    %c0_69 = arith.constant 0 : index
    %c0_70 = arith.constant 0 : index
    %151 = vector.load %arg7[%c0_68, %c0_69, %c0_70] : memref<1x32x64xbf16, #tpu.memory_space<vmem>>, vector<1x32x64xbf16>
    %152 = vector.shape_cast %151 : vector<1x32x64xbf16> to vector<32x64xbf16>
    %cst_71 = arith.constant dense<0.000000e+00> : vector<32x64xf32>
    %153 = tpu.matmul %150, %152, %cst_71 {dimension_numbers = #tpu.dot_dimension_numbers<[1], [0], [0], [1], [0, 0, 1, 1], [], []>} : vector<32x32xbf16>, vector<32x64xbf16>, vector<32x64xf32> -> vector<32x64xf32>
    %c0_72 = arith.constant 0 : index
    %c0_73 = arith.constant 0 : index
    %c0_74 = arith.constant 0 : index
    %154 = vector.load %arg6[%c0_72, %c0_73, %c0_74] : memref<1x1x64xf32, #tpu.memory_space<vmem>>, vector<1x1x64xf32>
    %155 = vector.shape_cast %154 : vector<1x1x64xf32> to vector<1x64xf32>
    %156 = vector.broadcast %155 : vector<1x64xf32> to vector<32x64xf32>
    %157 = arith.addf %153, %156 : vector<32x64xf32>
    %158 = arith.mulf %157, %157 : vector<32x64xf32>
    %159 = arith.mulf %157, %158 : vector<32x64xf32>
    %cst_75 = arith.constant 4.471500e-02 : f32
    %160 = vector.broadcast %cst_75 : f32 to vector<32x64xf32>
    %161 = arith.mulf %160, %159 : vector<32x64xf32>
    %162 = arith.addf %157, %161 : vector<32x64xf32>
    %cst_76 = arith.constant 0.797884583 : f32
    %163 = vector.broadcast %cst_76 : f32 to vector<32x64xf32>
    %164 = arith.mulf %163, %162 : vector<32x64xf32>
    %165 = math.tanh %164 : vector<32x64xf32>
    %cst_77 = arith.constant 1.000000e+00 : f32
    %166 = vector.broadcast %cst_77 : f32 to vector<32x64xf32>
    %167 = arith.addf %166, %165 : vector<32x64xf32>
    %cst_78 = arith.constant 5.000000e-01 : f32
    %168 = vector.broadcast %cst_78 : f32 to vector<32x64xf32>
    %169 = arith.mulf %168, %167 : vector<32x64xf32>
    %170 = arith.mulf %157, %169 : vector<32x64xf32>
    %171 = arith.truncf %170 : vector<32x64xf32> to vector<32x64xbf16>
    %c0_79 = arith.constant 0 : index
    %c0_80 = arith.constant 0 : index
    %c0_81 = arith.constant 0 : index
    %172 = vector.load %arg8[%c0_79, %c0_80, %c0_81] : memref<1x64x32xbf16, #tpu.memory_space<vmem>>, vector<1x64x32xbf16>
    %173 = vector.shape_cast %172 : vector<1x64x32xbf16> to vector<64x32xbf16>
    %cst_82 = arith.constant dense<0.000000e+00> : vector<32x32xf32>
    %174 = tpu.matmul %171, %173, %cst_82 {dimension_numbers = #tpu.dot_dimension_numbers<[1], [0], [0], [1], [0, 0, 1, 1], [], []>} : vector<32x64xbf16>, vector<64x32xbf16>, vector<32x32xf32> -> vector<32x32xf32>
    %c0_83 = arith.constant 0 : index
    %c3_84 = arith.constant 3 : index
    %c0_85 = arith.constant 0 : index
    %175 = vector.load %arg5[%c0_83, %c3_84, %c0_85] : memref<1x6x32xf32, #tpu.memory_space<vmem>>, vector<1x1x32xf32>
    %176 = vector.shape_cast %175 : vector<1x1x32xf32> to vector<1x32xf32>
    %177 = vector.broadcast %176 : vector<1x32xf32> to vector<32x32xf32>
    %178 = arith.addf %174, %177 : vector<32x32xf32>
    %179 = vector.broadcast %138 : f32 to vector<32x32xf32>
    %180 = arith.mulf %179, %178 : vector<32x32xf32>
    %181 = arith.addf %149, %180 : vector<32x32xf32>
    %c0_86 = arith.constant 0 : index
    %c4_87 = arith.constant 4 : index
    %c0_88 = arith.constant 0 : index
    %182 = vector.load %arg5[%c0_86, %c4_87, %c0_88] : memref<1x6x32xf32, #tpu.memory_space<vmem>>, vector<1x1x32xf32>
    %183 = vector.shape_cast %182 : vector<1x1x32xf32> to vector<1x32xf32>
    %184 = vector.broadcast %183 : vector<1x32xf32> to vector<32x32xf32>
    %185 = arith.mulf %181, %184 : vector<32x32xf32>
    %c0_89 = arith.constant 0 : index
    %c5_90 = arith.constant 5 : index
    %c0_91 = arith.constant 0 : index
    %186 = vector.load %arg5[%c0_89, %c5_90, %c0_91] : memref<1x6x32xf32, #tpu.memory_space<vmem>>, vector<1x1x32xf32>
    %187 = vector.shape_cast %186 : vector<1x1x32xf32> to vector<1x32xf32>
    %188 = vector.broadcast %187 : vector<1x32xf32> to vector<32x32xf32>
    %189 = arith.addf %185, %188 : vector<32x32xf32>
    %c0_92 = arith.constant 0 : index
    %c0_93 = arith.constant 0 : index
    %190 = vector.load %arg11[%c0_92, %c0_93] : memref<32x32xf32, #tpu.memory_space<vmem>>, vector<32x32xf32>
    tpu.vector_store %arg11[%c0_92, %c0_93], %189 {strides = array<i32>} : memref<32x32xf32, #tpu.memory_space<vmem>>, vector<32x32xf32>,
    %c1_i32_94 = arith.constant 1 : i32
    %191 = arith.cmpi eq, %arg1, %c1_i32_94 : i32
    %192 = arith.extui %191 : i1 to i32
    %c0_i32_95 = arith.constant 0 : i32
    %193 = arith.cmpi ne, %192, %c0_i32_95 : i32
    scf.if %193 {
      %c0_96 = arith.constant 0 : index
      %c0_97 = arith.constant 0 : index
      %194 = vector.load %arg10[%c0_96, %c0_97] : memref<32x32xf32, #tpu.memory_space<vmem>>, vector<32x32xf32>
      tpu.vector_store %arg10[%c0_96, %c0_97], %189 {strides = array<i32>} : memref<32x32xf32, #tpu.memory_space<vmem>>, vector<32x32xf32>,
    } else {
    }
    return
  }
  func.func @transform_0(%arg0: i32, %arg1: i32) -> (i32, i32) {
    %c0_i32 = arith.constant 0 : i32
    %c0_i32_0 = arith.constant 0 : i32
    return %arg0, %c0_i32 : i32, i32
  }
  func.func @transform_1(%arg0: i32, %arg1: i32) -> (i32, i32) {
    %c0_i32 = arith.constant 0 : i32
    %c0_i32_0 = arith.constant 0 : i32
    return %arg0, %c0_i32 : i32, i32
  }
  func.func @transform_2(%arg0: i32, %arg1: i32) -> (i32, i32, i32) {
    %c0_i32 = arith.constant 0 : i32
    %c0_i32_0 = arith.constant 0 : i32
    %c0_i32_1 = arith.constant 0 : i32
    return %arg1, %c0_i32, %c0_i32_0 : i32, i32, i32
  }
  func.func @transform_3(%arg0: i32, %arg1: i32) -> (i32, i32, i32) {
    %c0_i32 = arith.constant 0 : i32
    %c0_i32_0 = arith.constant 0 : i32
    %c0_i32_1 = arith.constant 0 : i32
    return %arg1, %c0_i32, %c0_i32_0 : i32, i32, i32
  }
  func.func @transform_4(%arg0: i32, %arg1: i32) -> (i32, i32, i32) {
    %c0_i32 = arith.constant 0 : i32
    %c0_i32_0 = arith.constant 0 : i32
    %c0_i32_1 = arith.constant 0 : i32
    return %arg1, %c0_i32, %c0_i32_0 : i32, i32, i32
  }
  func.func @transform_5(%arg0: i32, %arg1: i32) -> (i32, i32, i32) {
    %c0_i32 = arith.constant 0 : i32
    %c0_i32_0 = arith.constant 0 : i32
    %c0_i32_1 = arith.constant 0 : i32
    return %arg1, %c0_i32, %c0_i32_0 : i32, i32, i32
  }
  func.func @transform_6(%arg0: i32, %arg1: i32) -> (i32, i32, i32) {
    %c0_i32 = arith.constant 0 : i32
    %c0_i32_0 = arith.constant 0 : i32
    %c0_i32_1 = arith.constant 0 : i32
    return %arg1, %c0_i32, %c0_i32_0 : i32, i32, i32
  }
  func.func @transform_7(%arg0: i32, %arg1: i32) -> (i32, i32) {
    %c0_i32 = arith.constant 0 : i32
    %c0_i32_0 = arith.constant 0 : i32
    %c0_i32_1 = arith.constant 0 : i32
    return %c0_i32, %c0_i32_0 : i32, i32
  }
  func.func @transform_8(%arg0: i32, %arg1: i32) -> (i32, i32) {
    %c0_i32 = arith.constant 0 : i32
    %c0_i32_0 = arith.constant 0 : i32
    return %arg0, %c0_i32 : i32, i32
  }
}

module attributes {stable_mosaic.version = 11 : i64} {
  func.func @_head_denorm_kernel(%arg0: i32, %arg1: i32, %arg2: memref<8x256xf32, #tpu.memory_space<vmem>>, %arg3: memref<256x16xbf16, #tpu.memory_space<vmem>>, %arg4: memref<1x16xf32, #tpu.memory_space<vmem>>, %arg5: memref<8x1xf32, #tpu.memory_space<vmem>>, %arg6: memref<8x1xf32, #tpu.memory_space<vmem>>, %arg7: memref<8x1xf32, #tpu.memory_space<vmem>>, %arg8: memref<8x1xf32, #tpu.memory_space<vmem>>, %arg9: memref<8x16xf32, #tpu.memory_space<vmem>>) attributes {dimension_semantics = [#tpu.dimension_semantics<parallel>, #tpu.dimension_semantics<parallel>], iteration_bounds = array<i64: 1, 1>, scalar_prefetch = 0 : i64, scratch_operands = 0 : i64, tpu.core_type = #tpu.core_type<tc>, window_params = [{transform_indices = @transform_0, window_bounds = array<i64: 8, 256>}, {transform_indices = @transform_1, window_bounds = array<i64: 256, 16>}, {transform_indices = @transform_2, window_bounds = array<i64: 1, 16>}, {transform_indices = @transform_3, window_bounds = array<i64: 8, 1>}, {transform_indices = @transform_4, window_bounds = array<i64: 8, 1>}, {transform_indices = @transform_5, window_bounds = array<i64: 8, 1>}, {transform_indices = @transform_6, window_bounds = array<i64: 8, 1>}, {transform_indices = @transform_7, window_bounds = array<i64: 8, 16>}]} {
    %c0 = arith.constant 0 : index
    %c0_0 = arith.constant 0 : index
    %0 = vector.load %arg2[%c0, %c0_0] : memref<8x256xf32, #tpu.memory_space<vmem>>, vector<8x256xf32>
    %1 = arith.truncf %0 : vector<8x256xf32> to vector<8x256xbf16>
    %c0_1 = arith.constant 0 : index
    %c0_2 = arith.constant 0 : index
    %2 = vector.load %arg3[%c0_1, %c0_2] : memref<256x16xbf16, #tpu.memory_space<vmem>>, vector<256x16xbf16>
    %cst = arith.constant dense<0.000000e+00> : vector<8x16xf32>
    %3 = tpu.matmul %1, %2, %cst {dimension_numbers = #tpu.dot_dimension_numbers<[1], [0], [0], [1], [0, 0, 1, 1], [], []>} : vector<8x256xbf16>, vector<256x16xbf16>, vector<8x16xf32> -> vector<8x16xf32>
    %c0_3 = arith.constant 0 : index
    %c0_4 = arith.constant 0 : index
    %4 = vector.load %arg4[%c0_3, %c0_4] : memref<1x16xf32, #tpu.memory_space<vmem>>, vector<1x16xf32>
    %5 = vector.broadcast %4 : vector<1x16xf32> to vector<8x16xf32>
    %6 = arith.addf %3, %5 : vector<8x16xf32>
    %c0_5 = arith.constant 0 : index
    %c0_6 = arith.constant 0 : index
    %7 = vector.load %arg5[%c0_5, %c0_6] : memref<8x1xf32, #tpu.memory_space<vmem>>, vector<8x1xf32>
    %cst_7 = arith.constant 1.000000e-10 : f32
    %8 = vector.broadcast %cst_7 : f32 to vector<8x1xf32>
    %9 = arith.addf %7, %8 : vector<8x1xf32>
    %10 = tpu.reciprocal %9 {approx = true} : vector<8x1xf32> -> vector<8x1xf32>
    %c0_8 = arith.constant 0 : index
    %c0_9 = arith.constant 0 : index
    %11 = vector.load %arg6[%c0_8, %c0_9] : memref<8x1xf32, #tpu.memory_space<vmem>>, vector<8x1xf32>
    %12 = vector.broadcast %11 : vector<8x1xf32> to vector<8x16xf32>
    %13 = arith.subf %6, %12 : vector<8x16xf32>
    %14 = vector.broadcast %10 : vector<8x1xf32> to vector<8x16xf32>
    %15 = arith.mulf %13, %14 : vector<8x16xf32>
    %c0_10 = arith.constant 0 : index
    %c0_11 = arith.constant 0 : index
    %16 = vector.load %arg8[%c0_10, %c0_11] : memref<8x1xf32, #tpu.memory_space<vmem>>, vector<8x1xf32>
    %17 = vector.broadcast %16 : vector<8x1xf32> to vector<8x16xf32>
    %18 = arith.mulf %15, %17 : vector<8x16xf32>
    %c0_12 = arith.constant 0 : index
    %c0_13 = arith.constant 0 : index
    %19 = vector.load %arg7[%c0_12, %c0_13] : memref<8x1xf32, #tpu.memory_space<vmem>>, vector<8x1xf32>
    %20 = vector.broadcast %19 : vector<8x1xf32> to vector<8x16xf32>
    %21 = arith.addf %18, %20 : vector<8x16xf32>
    %c0_14 = arith.constant 0 : index
    %c0_15 = arith.constant 0 : index
    %22 = vector.load %arg9[%c0_14, %c0_15] : memref<8x16xf32, #tpu.memory_space<vmem>>, vector<8x16xf32>
    tpu.vector_store %arg9[%c0_14, %c0_15], %21 {strides = array<i32>} : memref<8x16xf32, #tpu.memory_space<vmem>>, vector<8x16xf32>,
    return
  }
  func.func @transform_0(%arg0: i32, %arg1: i32) -> (i32, i32) {
    %c0_i32 = arith.constant 0 : i32
    %c0_i32_0 = arith.constant 0 : i32
    return %arg0, %c0_i32 : i32, i32
  }
  func.func @transform_1(%arg0: i32, %arg1: i32) -> (i32, i32) {
    %c0_i32 = arith.constant 0 : i32
    %c0_i32_0 = arith.constant 0 : i32
    return %c0_i32, %arg1 : i32, i32
  }
  func.func @transform_2(%arg0: i32, %arg1: i32) -> (i32, i32) {
    %c0_i32 = arith.constant 0 : i32
    %c0_i32_0 = arith.constant 0 : i32
    return %c0_i32, %arg1 : i32, i32
  }
  func.func @transform_3(%arg0: i32, %arg1: i32) -> (i32, i32) {
    %c0_i32 = arith.constant 0 : i32
    %c0_i32_0 = arith.constant 0 : i32
    return %arg0, %c0_i32 : i32, i32
  }
  func.func @transform_4(%arg0: i32, %arg1: i32) -> (i32, i32) {
    %c0_i32 = arith.constant 0 : i32
    %c0_i32_0 = arith.constant 0 : i32
    return %arg0, %c0_i32 : i32, i32
  }
  func.func @transform_5(%arg0: i32, %arg1: i32) -> (i32, i32) {
    %c0_i32 = arith.constant 0 : i32
    %c0_i32_0 = arith.constant 0 : i32
    return %arg0, %c0_i32 : i32, i32
  }
  func.func @transform_6(%arg0: i32, %arg1: i32) -> (i32, i32) {
    %c0_i32 = arith.constant 0 : i32
    %c0_i32_0 = arith.constant 0 : i32
    return %arg0, %c0_i32 : i32, i32
  }
  func.func @transform_7(%arg0: i32, %arg1: i32) -> (i32, i32) {
    %c0_i32 = arith.constant 0 : i32
    return %arg0, %arg1 : i32, i32
  }
}

</mosaic_0001>

<bundles_post_ra>
// kernel: tile.18
= control target key start
LH: loop header
LB: loop body
LE: loop exit
PB: predicated region body
PF: predicated region fallthrough
CT: control target
= control target key end

     0   :  { %s22_s0 = inlined_call_operand.vmem [shape: f32[4], index: 0, kind: input, shape index: {}]   ;;  %s23_s1 = inlined_call_operand.vmem [shape: f32[2,4], index: 1, kind: output, shape index: {}]  }
   0x1   :  { %v4_v0 = vld [vmem:[%s22_s0] ss:$0 sm:$0xff] }
   0x2   :  { %5 = vst [vmem:[%s23_s1] sm:$0x3] %v4_v0 }

// kernel: tile.0
= control target key start
LH: loop header
LB: loop body
LE: loop exit
PB: predicated region body
PF: predicated region fallthrough
CT: control target
= control target key end

     0   :  { %s95_s0 = inlined_call_operand.vmem [shape: f32[2,4], index: 0, kind: input, shape index: {}]   ;;  %s96_s1 = inlined_call_operand.hbm [shape: f32[8,1], index: 1, kind: output, shape index: {}]  }
   0x1   :  { %v5_v0 = vld [vmem:[%s95_s0] sm:$0x3] }
   0x2   :  { %6 = vst [vmem:[#allocation2] sm:$0x3] %v5_v0 }
   0x3   :  { %2 = vsyncpa [#allocation1], 0  ;;  %s66_s0 = smov 127   ;;  %s67_s8 = smov 125   ;;  %vm8_vm0 = vcmask 7168  }
   0x4   :  { %s68_s9 = smov 126   ;;  %s69_s10 = smov [#allocation0]  }
   0x5   :  { %s32_s11 = sshll.u32 %s69_s10, 4  ;;  %s33_s11 = int_to_ptr.vmem [resolvable:$true] %s32_s11 }
   0x6   :  { %s42_s12 = scalar_lea.vmem %s33_s11, 128  ;;  %p47_p1 = scmp.lt.s32.totalorder %s33_s11, %s33_s11 }
   0x7   :  { %p43_p0 = scmp.ne.s32.totalorder %s33_s11, %s42_s12  ;;  %p48_p2 = scmp.lt.s32.totalorder %s42_s12, %s42_s12 }
   0x9   :  { %v10_v1 = vld [vmem:[#allocation2] sm:$0x3]   ;;  %p49_p3 = por %p48_p2, %p47_p1 }
   0xa   :  { %v22_v2 = vld [vmem:[#allocation2] sm:$0x3]   ;;  %11 = vrot.lane.b32.xlu0 %v10_v1, %s66_s0 }
   0xb   :  { %23 = vrot.lane.b32.xlu1 %v22_v2, %s67_s8  ;;  %v7_v3 = vld [vmem:[#allocation2] sm:$0x3]   ;;  %p50_p4 = pnand %p49_p3, %p43_p0 }
   0xc   :  { %v16_v4 = vld [vmem:[#allocation2] sm:$0x3]   ;;  %9 = vst.msk [vmem:[#allocation0] ss:$4 sm:$0x3] %vm8_vm0, %v7_v3  }
   0xe   :  { %17 = vrot.lane.b32.xlu0 %v16_v4, %s68_s9 }
  0x7c   :  { %v12_v5 = vpop.permute.xlu0 %11  }
  0x7d   :  { %v24_v6 = vpop.permute.xlu1 %23   ;;  %15 = vst.msk [vmem:[#allocation0 + $0x1] ss:$4 sm:$0x3] %vm8_vm0, %v12_v5  }
  0x7e   :  { %27 = vst.msk [vmem:[#allocation0 + $0x3] ss:$4 sm:$0x3] %vm8_vm0, %v24_v6  }
  0x80   :  { %v18_v7 = vpop.permute.xlu0 %17  }
  0x81   :  { %21 = vst.msk [vmem:[#allocation0 + $0x2] ss:$4 sm:$0x3] %vm8_vm0, %v18_v7  }
  0x82   :  { %53 = shalt.err (!%p50_p4)
}
  0x83   :  { %s54_s15 = scalar_lea.hbm %s96_s1, 128 }
  0x84   :  { %p55_p5 = scmp.ne.s32.totalorder %s96_s1, %s54_s15  ;;  %p58_p6 = scmp.lt.u32.totalorder %s54_s15, %s96_s1 }
  0x86   :  { %p60_p7 = pnand %p58_p6, %p55_p5 }
  0x88   :  { %63 = shalt.err (!%p60_p7)
}
  0x89   :  { %35 = dma.vmem_to_hbm [thread:$0]  %s33_s11, 128, %s96_s1, [#allocation1]  }
  0x8a   :  { %64 = dma.done.wait [#allocation1], 128  }
  0x8b   :  { %65 = vsyncadd [#allocation1], 4294967168 }
  0x8c   :  { %37 = vsyncpa [#allocation1], 1 }

// kernel: convtimenet_forward.5
= control target key start
LH: loop header
LB: loop body
LE: loop exit
PB: predicated region body
PF: predicated region fallthrough
CT: control target
= control target key end

     0   :  { %12 = vsyncpa [#allocation3], 0  ;;  %s743_s0 = inlined_call_operand.hbm [shape: f32[8,256], index: 0, kind: input, shape index: {}]   ;;  %s744_s1 = inlined_call_operand.hbm [shape: bf16[256,16], index: 1, kind: input, shape index: {}]   ;;  %s745_s2 = inlined_call_operand.hbm [shape: f32[1,16], index: 2, kind: input, shape index: {}]   ;;  %s746_s3 = inlined_call_operand.hbm [shape: f32[8,1], index: 3, kind: input, shape index: {}]   ;;  %s747_s4 = inlined_call_operand.hbm [shape: f32[8,1], index: 4, kind: input, shape index: {}]   ;;  %s748_s5 = inlined_call_operand.hbm [shape: f32[8,1], index: 5, kind: input, shape index: {}]   ;;  %s749_s6 = inlined_call_operand.hbm [shape: f32[8,1], index: 6, kind: input, shape index: {}]   ;;  %s750_s7 = inlined_call_operand.hbm [shape: f32[8,16], index: 7, kind: output, shape index: {}]  }
   0x1   :  { %13 = vsyncpa [#allocation6], 0 }
   0x2   :  { %14 = vsyncpa [#allocation9], 0 }
   0x3   :  { %15 = vsyncpa [#allocation12], 0 }
   0x4   :  { %16 = vsyncpa [#allocation4], 0  ;;  %s596_s24 = smov [#allocation5]   ;;  %s410_s28 = scalar_lea.hbm %s744_s1, 2048 }
   0x5   :  { %s32_s25 = sshll.u32 %s596_s24, 4  ;;  %p411_p0 = scmp.ne.s32.totalorder %s744_s1, %s410_s28  ;;  %s33_s25 = int_to_ptr.vmem [resolvable:$true] %s32_s25 }
   0x6   :  { %p414_p1 = scmp.lt.u32.totalorder %s410_s28, %s744_s1 }
   0x8   :  { %p416_p2 = pnand %p414_p1, %p411_p0 }
   0xa   :  { %419 = shalt.err (!%p416_p2)
}
   0xb   :  { %s420_s10 = scalar_lea.vmem %s33_s25, 2048  ;;  %p425_p4 = scmp.lt.s32.totalorder %s33_s25, %s33_s25 }
   0xc   :  { %p421_p3 = scmp.ne.s32.totalorder %s33_s25, %s420_s10  ;;  %p426_p5 = scmp.lt.s32.totalorder %s420_s10, %s420_s10 }
   0xe   :  { %p427_p6 = por %p426_p5, %p425_p4 }
  0x10   :  { %p428_p7 = pnand %p427_p6, %p421_p3 }
  0x12   :  { %431 = shalt.err (!%p428_p7)
}
  0x13   :  { %s597_s11 = smov 64   ;;  %s598_s12 = smov 4  }
  0x14   :  { %38 = dma.hbm_to_vmem [thread:$0]  %s744_s1, 2048, %s33_s25, [#allocation6], %s597_s11, %s597_s11, %s598_s12  }
  0x15   :  { %s599_s15 = smov [#allocation8]   ;;  %s600_s17 = smov [#allocation11]  }
  0x16   :  { %s55_s16 = sshll.u32 %s599_s15, 4  ;;  %s75_s18 = sshll.u32 %s600_s17, 4  ;;  %s56_s16 = int_to_ptr.vmem [resolvable:$true] %s55_s16  ;;  %s76_s18 = int_to_ptr.vmem [resolvable:$true] %s75_s18 }
  0x17   :  { %s432_s21 = scalar_lea.hbm %s746_s3, 128 }
  0x18   :  { %p433_p8 = scmp.ne.s32.totalorder %s746_s3, %s432_s21  ;;  %p436_p9 = scmp.lt.u32.totalorder %s432_s21, %s746_s3 }
  0x1a   :  { %p438_p10 = pnand %p436_p9, %p433_p8 }
  0x1c   :  { %441 = shalt.err (!%p438_p10)
}
  0x1d   :  { %s442_s1 = scalar_lea.vmem %s56_s16, 128  ;;  %p447_p12 = scmp.lt.s32.totalorder %s56_s16, %s56_s16 }
  0x1e   :  { %p443_p11 = scmp.ne.s32.totalorder %s56_s16, %s442_s1  ;;  %p448_p13 = scmp.lt.s32.totalorder %s442_s1, %s442_s1 }
  0x20   :  { %p449_p0 = por %p448_p13, %p447_p12 }
  0x22   :  { %p450_p1 = pnand %p449_p0, %p443_p11 }
  0x24   :  { %453 = shalt.err (!%p450_p1)
}
  0x25   :  { %58 = dma.hbm_to_vmem [thread:$0]  %s746_s3, 128, %s56_s16, [#allocation9]  }
  0x26   :  { %s454_s30 = scalar_lea.hbm %s748_s5, 128 }
  0x27   :  { %p455_p2 = scmp.ne.s32.totalorder %s748_s5, %s454_s30  ;;  %p458_p3 = scmp.lt.u32.totalorder %s454_s30, %s748_s5 }
  0x29   :  { %p460_p4 = pnand %p458_p3, %p455_p2 }
  0x2b   :  { %463 = shalt.err (!%p460_p4)
}
  0x2c   :  { %s464_s12 = scalar_lea.vmem %s76_s18, 128  ;;  %p469_p6 = scmp.lt.s32.totalorder %s76_s18, %s76_s18 }
  0x2d   :  { %p465_p5 = scmp.ne.s32.totalorder %s76_s18, %s464_s12  ;;  %p470_p7 = scmp.lt.s32.totalorder %s464_s12, %s464_s12 }
  0x2f   :  { %p471_p8 = por %p470_p7, %p469_p6 }
  0x31   :  { %p472_p9 = pnand %p471_p8, %p465_p5 }
  0x33   :  { %475 = shalt.err (!%p472_p9)
}
  0x34   :  { %78 = dma.hbm_to_vmem [thread:$0]  %s748_s5, 128, %s76_s18, [#allocation12]  }
  0x35   :  { %s601_s14 = smov [#allocation2]   ;;  %s602_s16 = smov [#allocation7]  }
  0x36   :  { %s23_s15 = sshll.u32 %s601_s14, 4  ;;  %s45_s17 = sshll.u32 %s602_s16, 4  ;;  %s24_s15 = int_to_ptr.vmem [resolvable:$true] %s23_s15  ;;  %s46_s17 = int_to_ptr.vmem [resolvable:$true] %s45_s17 }
  0x37   :  { %s476_s21 = scalar_lea.hbm %s743_s0, 256 }
  0x38   :  { %p477_p10 = scmp.ne.s32.totalorder %s743_s0, %s476_s21  ;;  %p480_p11 = scmp.lt.u32.totalorder %s476_s21, %s743_s0 }
  0x3a   :  { %p482_p12 = pnand %p480_p11, %p477_p10 }
  0x3c   :  { %485 = shalt.err (!%p482_p12)
}
  0x3d   :  { %s486_s5 = scalar_lea.vmem %s24_s15, 256  ;;  %p491_p0 = scmp.lt.s32.totalorder %s24_s15, %s24_s15 }
  0x3e   :  { %p487_p13 = scmp.ne.s32.totalorder %s24_s15, %s486_s5  ;;  %p492_p1 = scmp.lt.s32.totalorder %s486_s5, %s486_s5 }
  0x40   :  { %p493_p2 = por %p492_p1, %p491_p0 }
  0x42   :  { %p494_p3 = pnand %p493_p2, %p487_p13 }
  0x44   :  { %497 = shalt.err (!%p494_p3)
}
  0x45   :  { %26 = dma.hbm_to_vmem [thread:$0]  %s743_s0, 256, %s24_s15, [#allocation3]  }
  0x46   :  { %s498_s28 = scalar_lea.hbm %s745_s2, 16 }
  0x47   :  { %p499_p4 = scmp.ne.s32.totalorder %s745_s2, %s498_s28  ;;  %p502_p5 = scmp.lt.u32.totalorder %s498_s28, %s745_s2 }
  0x49   :  { %p504_p6 = pnand %p502_p5, %p499_p4 }
  0x4b   :  { %507 = shalt.err (!%p504_p6)
}
  0x4c   :  { %s508_s10 = scalar_lea.vmem %s46_s17, 16  ;;  %s512_s11 = scalar_lea.vmem %s46_s17, 32 }
  0x4d   :  { %p509_p7 = scmp.ne.s32.totalorder %s46_s17, %s508_s10  ;;  %p513_p8 = scmp.lt.s32.totalorder %s46_s17, %s46_s17 }
  0x4e   :  { %p514_p9 = scmp.lt.s32.totalorder %s512_s11, %s508_s10 }
  0x50   :  { %p515_p10 = por %p514_p9, %p513_p8 }
  0x52   :  { %p516_p11 = pnand %p515_p10, %p509_p7 }
  0x54   :  { %519 = shalt.err (!%p516_p11)
}
  0x55   :  { %48 = dma.hbm_to_vmem [thread:$0]  %s745_s2, 16, %s46_s17, [#allocation6]  }
  0x56   :  { %s603_s3 = smov [#allocation10]   ;;  %s604_s14 = smov [#allocation13]  }
  0x57   :  { %s65_s13 = sshll.u32 %s603_s3, 4  ;;  %s85_s15 = sshll.u32 %s604_s14, 4  ;;  %s66_s13 = int_to_ptr.vmem [resolvable:$true] %s65_s13  ;;  %s86_s15 = int_to_ptr.vmem [resolvable:$true] %s85_s15 }
  0x58   :  { %s520_s20 = scalar_lea.hbm %s747_s4, 128 }
  0x59   :  { %p521_p12 = scmp.ne.s32.totalorder %s747_s4, %s520_s20  ;;  %p524_p13 = scmp.lt.u32.totalorder %s520_s20, %s747_s4 }
  0x5b   :  { %p526_p0 = pnand %p524_p13, %p521_p12 }
  0x5d   :  { %529 = shalt.err (!%p526_p0)
}
  0x5e   :  { %s530_s2 = scalar_lea.vmem %s66_s13, 128  ;;  %p535_p2 = scmp.lt.s32.totalorder %s66_s13, %s66_s13 }
  0x5f   :  { %p531_p1 = scmp.ne.s32.totalorder %s66_s13, %s530_s2  ;;  %p536_p3 = scmp.lt.s32.totalorder %s530_s2, %s530_s2 }
  0x61   :  { %p537_p4 = por %p536_p3, %p535_p2 }
  0x63   :  { %p538_p5 = pnand %p537_p4, %p531_p1 }
  0x65   :  { %541 = shalt.err (!%p538_p5)
}
  0x66   :  { %68 = dma.hbm_to_vmem [thread:$0]  %s747_s4, 128, %s66_s13, [#allocation9]  }
  0x67   :  { %s542_s1 = scalar_lea.hbm %s749_s6, 128 }
  0x68   :  { %p543_p6 = scmp.ne.s32.totalorder %s749_s6, %s542_s1  ;;  %p546_p7 = scmp.lt.u32.totalorder %s542_s1, %s749_s6 }
  0x6a   :  { %p548_p8 = pnand %p546_p7, %p543_p6 }
  0x6c   :  { %551 = shalt.err (!%p548_p8)
}
  0x6d   :  { %s552_s30 = scalar_lea.vmem %s86_s15, 128  ;;  %p557_p10 = scmp.lt.s32.totalorder %s86_s15, %s86_s15 }
  0x6e   :  { %p553_p9 = scmp.ne.s32.totalorder %s86_s15, %s552_s30  ;;  %p558_p11 = scmp.lt.s32.totalorder %s552_s30, %s552_s30 }
  0x70   :  { %p559_p12 = por %p558_p11, %p557_p10 }
  0x72   :  { %p560_p13 = pnand %p559_p12, %p553_p9 }
  0x74   :  { %563 = shalt.err (!%p560_p13)
}
  0x75   :  { %88 = dma.hbm_to_vmem [thread:$0]  %s749_s6, 128, %s86_s15, [#allocation12]  }
  0x76   :  { %586 = dma.done.wait [#allocation3], 256  }
  0x77   :  { %587 = vsyncadd [#allocation3], 4294967040 }
  0x78   :  { %588 = dma.done.wait [#allocation6], 2064  }
  0x79   :  { %589 = vsyncadd [#allocation6], 4294965232 }
  0x7a   :  { %590 = dma.done.wait [#allocation9], 256  }
  0x7b   :  { %591 = vsyncadd [#allocation9], 4294967040 }
  0x7c   :  { %592 = dma.done.wait [#allocation12], 256  }
  0x7d   :  { %593 = vsyncadd [#allocation12], 4294967040  ;;  %v605_v0 = vmov 0   ;;  %v392_v1 = vld [vmem:[#allocation5 + $0x40] sm:$0xff]   ;;  %v394_v3 = vld [vmem:[#allocation5 + $0x48] sm:$0xff]   ;;  %s606_s6 = smov [#allocation14]  }
  0x7e   :  { %390 = vset.pattern.permute.xlu0 %v605_v0  ;;  %391 = vset.pattern.permute.xlu1 %v605_v0  ;;  %v393_v2 = vld [vmem:[#allocation5] sm:$0xff]   ;;  %v395_v4 = vld [vmem:[#allocation5 + $0x8] sm:$0xff]   ;;  %v396_v5 = vld [vmem:[#allocation5 + $0x50] sm:$0xff]   ;;  %s328_s9 = sshll.u32 %s606_s6, 4  ;;  %vm320_vm0 = vcmask 130048   ;;  %s329_s9 = int_to_ptr.vmem [resolvable:$true] %s328_s9 }
  0x7f   :  { %357 = vmatprep.subr.bf16.mxu0 %v392_v1  ;;  %v397_v6 = vld [vmem:[#allocation5 + $0x10] sm:$0xff]   ;;  %v398_v7 = vld [vmem:[#allocation5 + $0x58] sm:$0xff]   ;;  %v400_v9 = vld [vmem:[#allocation5 + $0x60] sm:$0xff]   ;;  %s564_s10 = scalar_lea.vmem %s329_s9, 128  ;;  %p569_p1 = scmp.lt.s32.totalorder %s329_s9, %s329_s9 }
  0x80   :  { %358 = vmatpush3.bf16.msra.mxu0 %v393_v2  ;;  %v399_v8 = vld [vmem:[#allocation5 + $0x18] sm:$0xff]   ;;  %v401_v10 = vld [vmem:[#allocation5 + $0x20] sm:$0xff]   ;;  %v402_v11 = vld [vmem:[#allocation5 + $0x68] sm:$0xff]   ;;  %p565_p0 = scmp.ne.s32.totalorder %s329_s9, %s564_s10  ;;  %p570_p2 = scmp.lt.s32.totalorder %s564_s10, %s564_s10 }
  0x81   :  { %359 = vmatprep.subr.bf16.mxu0 %v394_v3  ;;  %v112_v12 = vld [vmem:[#allocation2 + $0x8] sm:$0xff]  ;;  %v293_v13 = vld [vmem:[#allocation10] sm:$0xff]  ;;  %v290_v16 = vld [vmem:[#allocation8] sm:$0xff] }
  0x82   :  { %v114_v14 = vpack.c.bf16 %v112_v12, %v112_v12  ;;  %296 = vperm.xlu0 %390, %v293_v13   ;;  %v306_v15 = vld [vmem:[#allocation13] sm:$0xff]  ;;  %v291_v17 = vadd.f32 1e-10, %v290_v16  ;;  %v403_v18 = vld [vmem:[#allocation5 + $0x28] sm:$0xff]   ;;  %v313_v19 = vld [vmem:[#allocation11] sm:$0xff]  ;;  %p571_p3 = por %p570_p2, %p569_p1 }
  0x83   :  { %309 = vperm.xlu1 %391, %v306_v15   ;;  %v404_v20 = vld [vmem:[#allocation5 + $0x70] sm:$0xff]   ;;  %v406_v22 = vld [vmem:[#allocation5 + $0x78] sm:$0xff]   ;;  %v340_v29 = vld [vmem:[#allocation7] ss:$0 sm:$0xff] }
  0x84   :  { %360 = vmatpush3.bf16.msra.mxu0 %v395_v4  ;;  %282 = vmatprep.mubr.bf16.mxu0 %v114_v14  ;;  %408 = vrcp.f32 %v291_v17  ;;  %v405_v21 = vld [vmem:[#allocation5 + $0x30] sm:$0xff]   ;;  %v407_v23 = vld [vmem:[#allocation5 + $0x38] sm:$0xff]   ;;  %p572_p4 = pnand %p571_p3, %p565_p0 }
  0x85   :  { %361 = vmatprep.subr.bf16.mxu0 %v396_v5  ;;  %v111_v24 = vld [vmem:[#allocation2] sm:$0xff] }
  0x86   :  { %v113_v26 = vpack.c.bf16 %v111_v24, %v111_v24 }
  0x87   :  { %316 = vperm.xlu1 %391, %v313_v19  }
  0x88   :  { %362 = vmatpush3.bf16.msra.mxu0 %v397_v6 }
  0x89   :  { %363 = vmatprep.subr.bf16.mxu0 %v398_v7 }
  0x8c   :  { %364 = vmatpush3.bf16.msra.mxu0 %v399_v8 }
  0x8d   :  { %365 = vmatprep.subr.bf16.mxu0 %v400_v9 }
  0x8e   :  { %v409_v25 = vpop.eup %408 }
  0x8f   :  { %302 = vperm.xlu0 %390, %v409_v25  }
  0x90   :  { %366 = vmatpush3.bf16.msra.mxu0 %v401_v10 }
  0x91   :  { %367 = vmatprep.subr.bf16.mxu0 %v402_v11 }
  0x94   :  { %368 = vmatpush3.bf16.msra.mxu0 %v403_v18 }
  0x95   :  { %369 = vmatprep.subr.bf16.mxu0 %v404_v20 }
  0x98   :  { %370 = vmatpush3.bf16.msra.mxu0 %v405_v21 }
  0x99   :  { %371 = vmatprep.subr.bf16.mxu0 %v406_v22 }
  0x9c   :  { %372 = vmatpush3.bf16.msra.mxu0 %v407_v23 }
  0x9f   :  { %283 = vmatmul.mubr.bf16.vlgmr.msra.gmra.mrb[0].mxu0 %v113_v26 }
 0x101   :  { %v297_v28 = vpop.permute.xlu0 %296 }
 0x102   :  { %v310_v35 = vpop.permute.xlu1 %309 }
 0x106   :  { %v317_v40 = vpop.permute.xlu1 %316 }
 0x10e   :  { %v303_v37 = vpop.permute.xlu0 %302 }
 0x172   :  { %v373_v27 = vpop.f32.mrb[0].mxu0 }
 0x173   :  { %v374_v30 = vpop.f32.mrb[1].mxu0 }
 0x174   :  { %v375_v31 = vadd.f32 %v374_v30, %v373_v27  ;;  %v376_v32 = vpop.f32.mrb[2].mxu0 }
 0x175   :  { %v377_v33 = vpop.f32.mrb[3].mxu0 }
 0x176   :  { %v285_v34 = vadd.f32 %v375_v31, %v340_v29 }
 0x178   :  { %v299_v36 = vsub.f32 %v285_v34, %v297_v28 }
 0x17a   :  { %v305_v38 = vmul.f32 %v303_v37, %v299_v36 }
 0x17c   :  { %v312_v39 = vmul.f32 %v310_v35, %v305_v38 }
 0x17e   :  { %v319_v41 = vadd.f32 %v317_v40, %v312_v39 }
 0x180   :  { %321 = vst.msk [vmem:[#allocation14] sm:$0xff] %vm320_vm0, %v319_v41 }
 0x181   :  { %575 = shalt.err (!%p572_p4)
}
 0x182   :  { %s576_s12 = scalar_lea.hbm %s750_s7, 128 }
 0x183   :  { %p577_p5 = scmp.ne.s32.totalorder %s750_s7, %s576_s12  ;;  %p580_p6 = scmp.lt.u32.totalorder %s576_s12, %s750_s7 }
 0x185   :  { %p582_p7 = pnand %p580_p6, %p577_p5 }
 0x187   :  { %585 = shalt.err (!%p582_p7)
}
 0x188   :  { %331 = dma.vmem_to_hbm [thread:$0]  %s329_s9, 128, %s750_s7, [#allocation4]  }
 0x189   :  { %594 = dma.done.wait [#allocation4], 128  }
 0x18a   :  { %595 = vsyncadd [#allocation4], 4294967168 }
 0x18b   :  { %335 = vsyncpa [#allocation3], 1 }
 0x18c   :  { %336 = vsyncpa [#allocation6], 1 }
 0x18d   :  { %337 = vsyncpa [#allocation9], 1 }
 0x18e   :  { %338 = vsyncpa [#allocation12], 1 }
 0x18f   :  { %339 = vsyncpa [#allocation4], 1 }

// kernel: convtimenet_forward.3
= control target key start
LH: loop header
LB: loop body
LE: loop exit
PB: predicated region body
PF: predicated region fallthrough
CT: control target
= control target key end

     0   :  { %13 = vsyncpa [#allocation3], 0  ;;  %s1080_s0 = inlined_call_operand.hbm [shape: f32[8,32], index: 0, kind: input, shape index: {}]   ;;  %s1081_s1 = inlined_call_operand.hbm [shape: f32[8,1], index: 1, kind: input, shape index: {}]   ;;  %s1082_s2 = inlined_call_operand.hbm [shape: f32[8,1], index: 2, kind: input, shape index: {}]   ;;  %s1083_s3 = inlined_call_operand.hbm [shape: bf16[8,32], index: 3, kind: input, shape index: {}]   ;;  %s1084_s4 = inlined_call_operand.hbm [shape: f32[1,32], index: 4, kind: input, shape index: {}]   ;;  %s1085_s5 = inlined_call_operand.hbm [shape: f32[8,256], index: 5, kind: output, shape index: {0}]   ;;  %s1086_s6 = inlined_call_operand.hbm [shape: f32[8,1], index: 6, kind: output, shape index: {1}]   ;;  %s1087_s7 = inlined_call_operand.hbm [shape: f32[8,1], index: 7, kind: output, shape index: {2}]  }
   0x1   :  { %14 = vsyncpa [#allocation6], 0 }
   0x2   :  { %15 = vsyncpa [#allocation9], 0 }
   0x3   :  { %16 = vsyncpa [#allocation4], 0 }
   0x4   :  { %17 = vsyncpa [#allocation13], 0  ;;  %s867_s24 = smov [#allocation5]   ;;  %s868_s26 = smov [#allocation8]  }
   0x5   :  { %s34_s25 = sshll.u32 %s867_s24, 4  ;;  %s54_s27 = sshll.u32 %s868_s26, 4  ;;  %s35_s25 = int_to_ptr.vmem [resolvable:$true] %s34_s25  ;;  %s55_s27 = int_to_ptr.vmem [resolvable:$true] %s54_s27 }
   0x6   :  { %s681_s30 = scalar_lea.hbm %s1081_s1, 128 }
   0x7   :  { %p682_p0 = scmp.ne.s32.totalorder %s1081_s1, %s681_s30  ;;  %p685_p1 = scmp.lt.u32.totalorder %s681_s30, %s1081_s1 }
   0x9   :  { %p687_p2 = pnand %p685_p1, %p682_p0 }
   0xb   :  { %690 = shalt.err (!%p687_p2)
}
   0xc   :  { %s691_s12 = scalar_lea.vmem %s35_s25, 128  ;;  %p696_p4 = scmp.lt.s32.totalorder %s35_s25, %s35_s25 }
   0xd   :  { %p692_p3 = scmp.ne.s32.totalorder %s35_s25, %s691_s12  ;;  %p697_p5 = scmp.lt.s32.totalorder %s691_s12, %s691_s12 }
   0xf   :  { %p698_p6 = por %p697_p5, %p696_p4 }
  0x11   :  { %p699_p7 = pnand %p698_p6, %p692_p3 }
  0x13   :  { %702 = shalt.err (!%p699_p7)
}
  0x14   :  { %37 = dma.hbm_to_vmem [thread:$0]  %s1081_s1, 128, %s35_s25, [#allocation6]  }
  0x15   :  { %s703_s17 = scalar_lea.hbm %s1083_s3, 64 }
  0x16   :  { %p704_p8 = scmp.ne.s32.totalorder %s1083_s3, %s703_s17  ;;  %p707_p9 = scmp.lt.u32.totalorder %s703_s17, %s1083_s3 }
  0x18   :  { %p709_p10 = pnand %p707_p9, %p704_p8 }
  0x1a   :  { %712 = shalt.err (!%p709_p10)
}
  0x1b   :  { %s713_s22 = scalar_lea.vmem %s55_s27, 64  ;;  %p718_p12 = scmp.lt.s32.totalorder %s55_s27, %s55_s27 }
  0x1c   :  { %p714_p11 = scmp.ne.s32.totalorder %s55_s27, %s713_s22  ;;  %p719_p13 = scmp.lt.s32.totalorder %s713_s22, %s713_s22 }
  0x1e   :  { %p720_p0 = por %p719_p13, %p718_p12 }
  0x20   :  { %p721_p1 = pnand %p720_p0, %p714_p11 }
  0x22   :  { %724 = shalt.err (!%p721_p1)
}
  0x23   :  { %57 = dma.hbm_to_vmem [thread:$0]  %s1083_s3, 64, %s55_s27, [#allocation9]  }
  0x24   :  { %s869_s24 = smov [#allocation2]   ;;  %s870_s26 = smov [#allocation7]  }
  0x25   :  { %s24_s25 = sshll.u32 %s869_s24, 4  ;;  %s44_s28 = sshll.u32 %s870_s26, 4  ;;  %s25_s25 = int_to_ptr.vmem [resolvable:$true] %s24_s25  ;;  %s45_s28 = int_to_ptr.vmem [resolvable:$true] %s44_s28 }
  0x26   :  { %s725_s8 = scalar_lea.hbm %s1080_s0, 128 }
  0x27   :  { %p726_p2 = scmp.ne.s32.totalorder %s1080_s0, %s725_s8  ;;  %p729_p3 = scmp.lt.u32.totalorder %s725_s8, %s1080_s0 }
  0x29   :  { %p731_p4 = pnand %p729_p3, %p726_p2 }
  0x2b   :  { %734 = shalt.err (!%p731_p4)
}
  0x2c   :  { %s735_s3 = scalar_lea.vmem %s25_s25, 128  ;;  %p740_p6 = scmp.lt.s32.totalorder %s25_s25, %s25_s25 }
  0x2d   :  { %p736_p5 = scmp.ne.s32.totalorder %s25_s25, %s735_s3  ;;  %p741_p7 = scmp.lt.s32.totalorder %s735_s3, %s735_s3 }
  0x2f   :  { %p742_p8 = por %p741_p7, %p740_p6 }
  0x31   :  { %p743_p9 = pnand %p742_p8, %p736_p5 }
  0x33   :  { %746 = shalt.err (!%p743_p9)
}
  0x34   :  { %27 = dma.hbm_to_vmem [thread:$0]  %s1080_s0, 128, %s25_s25, [#allocation3]  }
  0x35   :  { %s747_s16 = scalar_lea.hbm %s1082_s2, 128 }
  0x36   :  { %p748_p10 = scmp.ne.s32.totalorder %s1082_s2, %s747_s16  ;;  %p751_p11 = scmp.lt.u32.totalorder %s747_s16, %s1082_s2 }
  0x38   :  { %p753_p12 = pnand %p751_p11, %p748_p10 }
  0x3a   :  { %756 = shalt.err (!%p753_p12)
}
  0x3b   :  { %s757_s21 = scalar_lea.vmem %s45_s28, 128  ;;  %p762_p0 = scmp.lt.s32.totalorder %s45_s28, %s45_s28 }
  0x3c   :  { %p758_p13 = scmp.ne.s32.totalorder %s45_s28, %s757_s21  ;;  %p763_p1 = scmp.lt.s32.totalorder %s757_s21, %s757_s21 }
  0x3e   :  { %p764_p2 = por %p763_p1, %p762_p0 }
  0x40   :  { %p765_p3 = pnand %p764_p2, %p758_p13 }
  0x42   :  { %768 = shalt.err (!%p765_p3)
}
  0x43   :  { %47 = dma.hbm_to_vmem [thread:$0]  %s1082_s2, 128, %s45_s28, [#allocation6]  }
  0x44   :  { %s871_s1 = smov [#allocation10]   ;;  %s769_s26 = scalar_lea.hbm %s1084_s4, 16 }
  0x45   :  { %s64_s23 = sshll.u32 %s871_s1, 4  ;;  %p770_p4 = scmp.ne.s32.totalorder %s1084_s4, %s769_s26  ;;  %s65_s23 = int_to_ptr.vmem [resolvable:$true] %s64_s23 }
  0x46   :  { %p773_p5 = scmp.lt.u32.totalorder %s769_s26, %s1084_s4 }
  0x48   :  { %p775_p6 = pnand %p773_p5, %p770_p4 }
  0x4a   :  { %778 = shalt.err (!%p775_p6)
}
  0x4b   :  { %s779_s10 = scalar_lea.vmem %s65_s23, 16  ;;  %s783_s2 = scalar_lea.vmem %s65_s23, 32 }
  0x4c   :  { %p780_p7 = scmp.ne.s32.totalorder %s65_s23, %s779_s10  ;;  %p784_p8 = scmp.lt.s32.totalorder %s65_s23, %s65_s23 }
  0x4d   :  { %p785_p9 = scmp.lt.s32.totalorder %s783_s2, %s779_s10 }
  0x4f   :  { %p786_p10 = por %p785_p9, %p784_p8 }
  0x51   :  { %p787_p11 = pnand %p786_p10, %p780_p7 }
  0x53   :  { %790 = shalt.err (!%p787_p11)
}
  0x54   :  { %67 = dma.hbm_to_vmem [thread:$0]  %s1084_s4, 16, %s65_s23, [#allocation9]  }
  0x55   :  { %857 = dma.done.wait [#allocation3], 128  }
  0x56   :  { %858 = vsyncadd [#allocation3], 4294967168 }
  0x57   :  { %859 = dma.done.wait [#allocation6], 256  }
  0x58   :  { %860 = vsyncadd [#allocation6], 4294967040 }
  0x59   :  { %861 = dma.done.wait [#allocation9], 80  }
  0x5a   :  { %862 = vsyncadd [#allocation9], 4294967216  ;;  %vm85_vm0 = vcmask 261120   ;;  %v84_v0 = vld [vmem:[#allocation2] sm:$0xff]  ;;  %v107_v2 = vld [vmem:[#allocation5] sm:$0xff]  ;;  %v872_v3 = vmov 0  }
  0x5b   :  { %v86_v1 = vsel %vm85_vm0, %v84_v0, 0.0  ;;  %677 = vset.pattern.permute.xlu1 %v872_v3  ;;  %v114_v4 = vld [vmem:[#allocation7] sm:$0xff]  ;;  %vm121_vm1 = vcmask 7168   ;;  %v873_v10 = vmov 31   ;;  %v874_v11 = vmov 0.0   ;;  %s876_s4 = smov 124  }
  0x5c   :  { %87 = vadd.xlane.f32.xlu0 %v86_v1  ;;  %110 = vperm.xlu1 %677, %v107_v2   ;;  %v130_v25 = vld [vmem:[#allocation8] sm:$0xf]  ;;  %vm143_vm4 = vcmask 1043456   ;;  %vm875_vm5 = vmmov 0   ;;  %vm139_vm6 = vcmask 64512   ;;  %s877_s12 = smov 120  }
  0x5d   :  { %678 = vset.pattern.permute.xlu0 %v873_v10  ;;  %607 = vmatprep.subr.bf16.mxu0 %v874_v11  ;;  %v145_v26 = vsel %vm143_vm4, %v130_v25, 0  ;;  %s878_s3 = smov 116   ;;  %s879_s27 = smov 112   ;;  %v1026_v37 = vld [vmem:[#allocation10] ss:$0 sm:$0xff] }
  0x5e   :  { %613 = vmatprep.subr.bf16.mxu1 %v874_v11  ;;  %608 = vmatpush3.bf16.msra.mxu0 %v145_v26  ;;  %s880_s13 = smov 108   ;;  %s881_s14 = smov 104  }
  0x5f   :  { %619 = vmatprep.subr.bf16.mxu0 %v874_v11  ;;  %614 = vmatpush3.bf16.msra.mxu1 %v145_v26  ;;  %s882_s15 = smov 100   ;;  %s883_s16 = smov 32  }
  0x60   :  { %117 = vperm.xlu1 %677, %v114_v4   ;;  %609 = vmatprep.mubr.msk.bf16.mxu0 %vm875_vm5, %v874_v11  ;;  %s884_s17 = smov 64   ;;  %s885_s18 = smov 96  }
  0x61   :  { %615 = vmatprep.mubr.msk.bf16.mxu1 %vm875_vm5, %v874_v11  ;;  %625 = vmatprep.subr.bf16.mxu1 %v874_v11  ;;  %s886_s19 = smov [#allocation12]  }
  0x62   :  { %s554_s20 = sshll.u32 %s886_s19, 4  ;;  %s555_s20 = int_to_ptr.vmem [resolvable:$true] %s554_s20 }
  0x63   :  { %s791_s21 = scalar_lea.vmem %s555_s20, 128  ;;  %p796_p13 = scmp.lt.s32.totalorder %s555_s20, %s555_s20 }
  0x64   :  { %p792_p12 = scmp.ne.s32.totalorder %s555_s20, %s791_s21  ;;  %p797_p0 = scmp.lt.s32.totalorder %s791_s21, %s791_s21 }
  0x66   :  { %p798_p1 = por %p797_p0, %p796_p13 }
  0x68   :  { %p799_p2 = pnand %p798_p1, %p792_p12 }
  0xdb   :  { %v111_v15 = vpop.permute.xlu1 %110 }
  0xdf   :  { %v118_v22 = vpop.permute.xlu1 %117 }
  0xe9   :  { %v88_v5 = vpop.xlane.xlu0 %87 }
  0xea   :  { %v90_v6 = vmul.f32 0.03125, %v88_v5 }
  0xec   :  { %v91_v7 = vsub.f32 %v84_v0, %v90_v6  ;;  %122 = vst.msk [vmem:[#allocation12] sm:$0xff] %vm121_vm1, %v90_v6 }
  0xee   :  { %v92_v8 = vmul.f32 %v91_v7, %v91_v7 }
  0xf0   :  { %v93_v9 = vsel %vm85_vm0, %v92_v8, 0.0 }
  0xf1   :  { %94 = vadd.xlane.f32.xlu0 %v93_v9 }
 0x17e   :  { %v95_v12 = vpop.xlane.xlu0 %94 }
 0x17f   :  { %v96_v13 = vmul.f32 0.03125, %v95_v12 }
 0x181   :  { %v97_v14 = vadd.f32 1e-05, %v96_v13 }
 0x183   :  { %679 = vrsqrt.f32 %v97_v14  ;;  %vm100_vm2 = vcmp.eq.f32.partialorder %v97_v14, inf  ;;  %v103_v19 = vand.u32 2147483648, %v97_v14  ;;  %vm102_vm3 = vcmp.eq.f32.partialorder %v97_v14, 0.0 }
 0x18d   :  { %v680_v16 = vpop.eup %679 }
 0x18e   :  { %v106_v17 = vmul.f32 %v680_v16, %v91_v7  ;;  %v99_v18 = vmul.f32 %v680_v16, %v97_v14 }
 0x190   :  { %v113_v20 = vmul.f32 %v111_v15, %v106_v17  ;;  %v101_v21 = vsel %vm100_vm2, %v97_v14, %v99_v18 }
 0x191   :  { %v104_v23 = vsel %vm102_vm3, %v103_v19, %v101_v21 }
 0x192   :  { %v120_v24 = vadd.f32 %v118_v22, %v113_v20  ;;  %123 = vst.msk [vmem:[#allocation14] sm:$0xff] %vm121_vm1, %v104_v23 }
 0x194   :  { %126 = vperm.xlu0 %678, %v120_v24  }
 0x213   :  { %v127_v27 = vpop.permute.xlu0 %126 }
 0x214   :  { %v129_v28 = vsel %vm85_vm0, %v120_v24, %v127_v27 }
 0x215   :  { %v132_v29 = vpack.c.bf16 %v129_v28, %v129_v28 }
 0x217   :  { %189 = vrot.lane.b32.xlu1 %v132_v29, %s876_s4  ;;  %610 = vmatmul.mubr.msk.bf16.vlgmr.msra.gmra.mrb[0].mxu0 %vm139_vm6, %v132_v29 }
 0x218   :  { %620 = vmatpush3.bf16.msra.mxu0 %v145_v26  ;;  %621 = vmatprep.mubr.msk.bf16.mxu0 %vm875_vm5, %v874_v11 }
 0x219   :  { %631 = vmatprep.subr.bf16.mxu0 %v874_v11 }
 0x21b   :  { %240 = vrot.lane.b32.xlu1 %v132_v29, %s877_s12 }
 0x21f   :  { %291 = vrot.lane.b32.xlu1 %v132_v29, %s878_s3 }
 0x223   :  { %342 = vrot.lane.b32.xlu1 %v132_v29, %s879_s27 }
 0x227   :  { %388 = vrot.lane.b32.xlu1 %v132_v29, %s880_s13 }
 0x22b   :  { %438 = vrot.lane.b32.xlu1 %v132_v29, %s881_s14 }
 0x22f   :  { %488 = vrot.lane.b32.xlu1 %v132_v29, %s882_s15 }
 0x289   :  { %v190_v30 = vpop.permute.xlu1 %189 }
 0x28a   :  { %616 = vmatmul.mubr.msk.bf16.vlgmr.msra.gmra.mrb[0].mxu1 %vm139_vm6, %v190_v30 }
 0x28b   :  { %626 = vmatpush3.bf16.msra.mxu1 %v145_v26  ;;  %627 = vmatprep.mubr.msk.bf16.mxu1 %vm875_vm5, %v874_v11 }
 0x28c   :  { %637 = vmatprep.subr.bf16.mxu1 %v874_v11 }
 0x28d   :  { %v241_v31 = vpop.permute.xlu1 %240 }
 0x28e   :  { %622 = vmatmul.mubr.msk.bf16.vlgmr.msra.gmra.mrb[4].mxu0 %vm139_vm6, %v241_v31 }
 0x28f   :  { %632 = vmatpush3.bf16.msra.mxu0 %v145_v26  ;;  %633 = vmatprep.mubr.msk.bf16.mxu0 %vm875_vm5, %v874_v11 }
 0x290   :  { %643 = vmatprep.subr.bf16.mxu0 %v874_v11 }
 0x291   :  { %v292_v32 = vpop.permute.xlu1 %291 }
 0x292   :  { %628 = vmatmul.mubr.msk.bf16.vlgmr.msra.gmra.mrb[4].mxu1 %vm139_vm6, %v292_v32 }
 0x293   :  { %638 = vmatpush3.bf16.msra.mxu1 %v145_v26  ;;  %639 = vmatprep.mubr.msk.bf16.mxu1 %vm875_vm5, %v874_v11 }
 0x294   :  { %649 = vmatprep.subr.bf16.mxu1 %v874_v11 }
 0x295   :  { %v343_v33 = vpop.permute.xlu1 %342 }
 0x296   :  { %634 = vmatmul.mubr.msk.bf16.vlgmr.msra.gmra.mrb[8].mxu0 %vm139_vm6, %v343_v33 }
 0x297   :  { %644 = vmatpush3.bf16.msra.mxu0 %v145_v26  ;;  %645 = vmatprep.mubr.msk.bf16.mxu0 %vm875_vm5, %v874_v11 }
 0x299   :  { %v389_v34 = vpop.permute.xlu1 %388 }
 0x29a   :  { %640 = vmatmul.mubr.msk.bf16.vlgmr.msra.gmra.mrb[8].mxu1 %vm139_vm6, %v389_v34 }
 0x29b   :  { %650 = vmatpush3.bf16.msra.mxu1 %v145_v26  ;;  %651 = vmatprep.mubr.msk.bf16.mxu1 %vm875_vm5, %v874_v11 }
 0x29d   :  { %v439_v35 = vpop.permute.xlu1 %438 }
 0x29e   :  { %646 = vmatmul.mubr.msk.bf16.vlgmr.msra.gmra.mrb[12].mxu0 %vm139_vm6, %v439_v35 }
 0x2a1   :  { %v489_v36 = vpop.permute.xlu1 %488 }
 0x2a2   :  { %652 = vmatmul.mubr.msk.bf16.vlgmr.msra.gmra.mrb[12].mxu1 %vm139_vm6, %v489_v36 }
 0x2ea   :  { %v181_v38 = vpop.f32.mrb[0].mxu0 }
 0x2eb   :  { %v182_v39 = vadd.f32 %v1026_v37, %v181_v38  ;;  %v611_v40 = vpop.f32.mrb[1].mxu0 }
 0x2ec   :  { %v184_v41 = vpop.f32.mrb[2].mxu0 }
 0x2ed   :  { %187 = vst.msk [vmem:[#allocation11] sm:$0xff] %vm85_vm0, %v182_v39  ;;  %v612_v42 = vpop.f32.mrb[3].mxu0 }
 0x35d   :  { %v228_v43 = vpop.f32.mrb[0].mxu1 }
 0x35e   :  { %v229_v44 = vadd.f32 %v1026_v37, %v228_v43  ;;  %v617_v45 = vpop.f32.mrb[1].mxu1 }
 0x35f   :  { %v231_v46 = vpop.f32.mrb[2].mxu1 }
 0x360   :  { %235 = vrot.lane.b32.xlu1 %v229_v44, %s883_s16  ;;  %v618_v47 = vpop.f32.mrb[3].mxu1 }
 0x361   :  { %v279_v48 = vpop.f32.mrb[4].mxu0 }
 0x362   :  { %v280_v49 = vadd.f32 %v1026_v37, %v279_v48  ;;  %v623_v50 = vpop.f32.mrb[5].mxu0 }
 0x363   :  { %v282_v51 = vpop.f32.mrb[6].mxu0 }
 0x364   :  { %286 = vrot.lane.b32.xlu1 %v280_v49, %s884_s17  ;;  %v624_v52 = vpop.f32.mrb[7].mxu0 }
 0x365   :  { %v330_v53 = vpop.f32.mrb[4].mxu1 }
 0x366   :  { %v331_v54 = vadd.f32 %v1026_v37, %v330_v53  ;;  %v629_v55 = vpop.f32.mrb[5].mxu1 }
 0x367   :  { %v333_v56 = vpop.f32.mrb[6].mxu1 }
 0x368   :  { %337 = vrot.lane.b32.xlu0 %v331_v54, %s885_s18  ;;  %v630_v57 = vpop.f32.mrb[7].mxu1 }
 0x369   :  { %v381_v58 = vpop.f32.mrb[8].mxu0 }
 0x36a   :  { %v382_v59 = vadd.f32 %v1026_v37, %v381_v58  ;;  %v635_v60 = vpop.f32.mrb[9].mxu0 }
 0x36b   :  { %v384_v61 = vpop.f32.mrb[10].mxu0 }
 0x36c   :  { %802 = shalt.err (!%p799_p2)
}
 0x36d   :  { %s803_s1 = scalar_lea.hbm %s1086_s6, 128 }
 0x36e   :  { %p804_p3 = scmp.ne.s32.totalorder %s1086_s6, %s803_s1  ;;  %p807_p4 = scmp.lt.u32.totalorder %s803_s1, %s1086_s6 }
 0x370   :  { %p809_p5 = pnand %p807_p4, %p804_p3 }
 0x372   :  { %812 = shalt.err (!%p809_p5)
}
 0x373   :  { %557 = dma.vmem_to_hbm [thread:$0]  %s555_s20, 128, %s1086_s6, [#allocation13]   ;;  %387 = vst.msk [vmem:[#allocation11 + $0x8] sm:$0xff] %vm85_vm0, %v382_v59  ;;  %v636_v62 = vpop.f32.mrb[11].mxu0  ;;  %v427_v63 = vpop.f32.mrb[8].mxu1 }
 0x374   :  { %s887_s8 = smov [#allocation14]   ;;  %v428_v0 = vadd.f32 %v1026_v37, %v427_v63  ;;  %v641_v1 = vpop.f32.mrb[9].mxu1 }
 0x375   :  { %s564_s9 = sshll.u32 %s887_s8, 4  ;;  %v430_v2 = vpop.f32.mrb[10].mxu1  ;;  %s565_s9 = int_to_ptr.vmem [resolvable:$true] %s564_s9 }
 0x376   :  { %s813_s10 = scalar_lea.vmem %s565_s9, 128  ;;  %p818_p7 = scmp.lt.s32.totalorder %s565_s9, %s565_s9 }
 0x377   :  { %p814_p6 = scmp.ne.s32.totalorder %s565_s9, %s813_s10  ;;  %p819_p8 = scmp.lt.s32.totalorder %s813_s10, %s813_s10 }
 0x379   :  { %p820_p9 = por %p819_p8, %p818_p7 }
 0x37b   :  { %p821_p10 = pnand %p820_p9, %p814_p6 }
 0x37d   :  { %824 = shalt.err (!%p821_p10)
}
 0x37e   :  { %s825_s28 = scalar_lea.hbm %s1087_s7, 128 }
 0x37f   :  { %p826_p11 = scmp.ne.s32.totalorder %s1087_s7, %s825_s28  ;;  %p829_p12 = scmp.lt.u32.totalorder %s825_s28, %s1087_s7 }
 0x381   :  { %p831_p13 = pnand %p829_p12, %p826_p11 }
 0x383   :  { %834 = shalt.err (!%p831_p13)
}
 0x384   :  { %567 = dma.vmem_to_hbm [thread:$0]  %s565_s9, 128, %s1087_s7, [#allocation13]   ;;  %v642_v3 = vpop.f32.mrb[11].mxu1  ;;  %434 = vrot.lane.b32.xlu1 %v428_v0, %s883_s16  ;;  %v477_v4 = vpop.f32.mrb[12].mxu0  ;;  %vm238_vm7 = vcmask 523520   ;;  %vm289_vm8 = vcmask 785920  }
 0x385   :  { %v478_v5 = vadd.f32 %v1026_v37, %v477_v4  ;;  %v647_v6 = vpop.f32.mrb[13].mxu0  ;;  %v527_v9 = vpop.f32.mrb[12].mxu1  ;;  %vm340_vm9 = vcmask 1048320   ;;  %s888_s7 = smov [#allocation11]  }
 0x386   :  { %v480_v7 = vpop.f32.mrb[14].mxu0  ;;  %v528_v10 = vadd.f32 %v1026_v37, %v527_v9  ;;  %v653_v11 = vpop.f32.mrb[13].mxu1  ;;  %s544_s14 = sshll.u32 %s888_s7, 4  ;;  %s545_s14 = int_to_ptr.vmem [resolvable:$true] %s544_s14 }
 0x387   :  { %v648_v8 = vpop.f32.mrb[15].mxu0  ;;  %v530_v12 = vpop.f32.mrb[14].mxu1  ;;  %s835_s15 = scalar_lea.vmem %s545_s14, 256  ;;  %p840_p1 = scmp.lt.s32.totalorder %s545_s14, %s545_s14 }
 0x388   :  { %484 = vrot.lane.b32.xlu1 %v478_v5, %s884_s17  ;;  %v654_v13 = vpop.f32.mrb[15].mxu1  ;;  %p836_p0 = scmp.ne.s32.totalorder %s545_s14, %s835_s15  ;;  %p841_p2 = scmp.lt.s32.totalorder %s835_s15, %s835_s15 }
 0x38a   :  { %p842_p3 = por %p841_p2, %p840_p1 }
 0x38c   :  { %534 = vrot.lane.b32.xlu1 %v528_v10, %s885_s18  ;;  %p843_p4 = pnand %p842_p3, %p836_p0 }
 0x3d2   :  { %v236_v14 = vpop.permute.xlu1 %235 }
 0x3d3   :  { %239 = vst.msk [vmem:[#allocation11] sm:$0xff] %vm238_vm7, %v236_v14 }
 0x3d6   :  { %v287_v15 = vpop.permute.xlu1 %286 }
 0x3d7   :  { %290 = vst.msk [vmem:[#allocation11] sm:$0xff] %vm289_vm8, %v287_v15 }
 0x3da   :  { %v338_v16 = vpop.permute.xlu0 %337 }
 0x3db   :  { %341 = vst.msk [vmem:[#allocation11] sm:$0xff] %vm340_vm9, %v338_v16 }
 0x3f6   :  { %v435_v17 = vpop.permute.xlu1 %434 }
 0x3f7   :  { %437 = vst.msk [vmem:[#allocation11 + $0x8] sm:$0xff] %vm238_vm7, %v435_v17 }
 0x3fa   :  { %v485_v18 = vpop.permute.xlu1 %484 }
 0x3fb   :  { %487 = vst.msk [vmem:[#allocation11 + $0x8] sm:$0xff] %vm289_vm8, %v485_v18 }
 0x3fe   :  { %v535_v19 = vpop.permute.xlu1 %534 }
 0x3ff   :  { %537 = vst.msk [vmem:[#allocation11 + $0x8] sm:$0xff] %vm340_vm9, %v535_v19 }
 0x400   :  { %846 = shalt.err (!%p843_p4)
}
 0x401   :  { %s847_s18 = scalar_lea.hbm %s1085_s5, 256 }
 0x402   :  { %p848_p5 = scmp.ne.s32.totalorder %s1085_s5, %s847_s18  ;;  %p851_p6 = scmp.lt.u32.totalorder %s847_s18, %s1085_s5 }
 0x404   :  { %p853_p7 = pnand %p851_p6, %p848_p5 }
 0x406   :  { %856 = shalt.err (!%p853_p7)
}
 0x407   :  { %547 = dma.vmem_to_hbm [thread:$0]  %s545_s14, 256, %s1085_s5, [#allocation4]  }
 0x408   :  { %863 = dma.done.wait [#allocation4], 256  }
 0x409   :  { %864 = vsyncadd [#allocation4], 4294967040 }
 0x40a   :  { %865 = dma.done.wait [#allocation13], 256  }
 0x40b   :  { %866 = vsyncadd [#allocation13], 4294967040 }
 0x40c   :  { %577 = vsyncpa [#allocation3], 1 }
 0x40d   :  { %578 = vsyncpa [#allocation6], 1 }
 0x40e   :  { %579 = vsyncpa [#allocation9], 1 }
 0x40f   :  { %580 = vsyncpa [#allocation4], 1 }
 0x410   :  { %581 = vsyncpa [#allocation13], 1 }

// kernel: convtimenet_forward.4
= control target key start
LH: loop header
LB: loop body
LE: loop exit
PB: predicated region body
PF: predicated region fallthrough
CT: control target
= control target key end

     0   :  { %s3454_s0 = inlined_call_operand.hbm [shape: f32[64,32], index: 0, kind: input, shape index: {}]   ;;  %s3455_s1 = inlined_call_operand.hbm [shape: f32[64,13], index: 1, kind: input, shape index: {}]   ;;  %s3456_s2 = inlined_call_operand.hbm [shape: f32[2,13,32], index: 2, kind: input, shape index: {}]   ;;  %s3457_s3 = inlined_call_operand.hbm [shape: f32[2,6,32], index: 3, kind: input, shape index: {}]   ;;  %s3458_s4 = inlined_call_operand.hbm [shape: f32[2,1,64], index: 4, kind: input, shape index: {}]   ;;  %s3459_s5 = inlined_call_operand.hbm [shape: bf16[2,32,64], index: 5, kind: input, shape index: {}]   ;;  %s3460_s6 = inlined_call_operand.hbm [shape: bf16[2,64,32], index: 6, kind: input, shape index: {}]   ;;  %s3461_s7 = inlined_call_operand.hbm [shape: f32[2,2], index: 7, kind: input, shape index: {}]   ;;  %s3462_s8 = inlined_call_operand.hbm [shape: f32[64,32], index: 8, kind: output, shape index: {}]  }
   0x1   :  { %3512 = sst [smem:[#allocation52_spill]] %s3454_s0 }
   0x2   :  { %3513 = sst [smem:[#allocation53_spill]] %s3455_s1 }
   0x3   :  { %3514 = sst [smem:[#allocation54_spill]] %s3456_s2 }
   0x4   :  { %3515 = sst [smem:[#allocation55_spill]] %s3457_s3 }
   0x5   :  { %3516 = sst [smem:[#allocation56_spill]] %s3458_s4 }
   0x6   :  { %3517 = sst [smem:[#allocation57_spill]] %s3459_s5 }
   0x7   :  { %3518 = sst [smem:[#allocation58_spill]] %s3460_s6 }
   0x8   :  { %3519 = sst [smem:[#allocation59_spill]] %s3461_s7 }
   0x9   :  { %3520 = sst [smem:[#allocation60_spill]] %s3462_s8 }
   0xa   :  { %13 = vsyncpa [#allocation4], 0 }
   0xb   :  { %15 = vsyncpa [#allocation4 + $0x1], 0 }
   0xc   :  { %16 = vsyncpa [#allocation8], 0 }
   0xd   :  { %18 = vsyncpa [#allocation8 + $0x1], 0 }
   0xe   :  { %19 = vsyncpa [#allocation11], 0 }
   0xf   :  { %21 = vsyncpa [#allocation11 + $0x1], 0 }
  0x10   :  { %22 = vsyncpa [#allocation14], 0 }
  0x11   :  { %24 = vsyncpa [#allocation14 + $0x1], 0 }
  0x12   :  { %25 = vsyncpa [#allocation6], 0 }
  0x13   :  { %26 = vsyncpa [#allocation5], 0 }
  0x14   :  { %28 = vsyncpa [#allocation5 + $0x1], 0  ;;  %s2389_s27 = smov 0   ;;  %s2391_s28 = smov 0  }
  0x15   :  { %s2393_s29 = smov 0   ;;  %s2395_s30 = smov 0  }
  0x16   :  { %s2397_s9 = smov 0   ;;  %s2399_s10 = smov 0  }
  0x17   :  { %s2401_s11 = smov 0   ;;  %s2403_s12 = smov 0  }
  0x18   :  { %s2405_s13 = smov 0   ;;  %s2407_s14 = smov 0  }
  0x19   :  { %s2409_s15 = smov 0  }
  0x1a LB: > { %3521 = sst [smem:[#allocation25_spill]] %s2283_s29  ;;  %p3466_p0 = scmp.ne.s32.totalorder %s2295_s10, %s2291_s9  ;;  %s2315_s15 = sphi %s2409_s15, %s34_s15   ;;  %s2311_s14 = sphi %s2407_s14, %s3635_s14   ;;  %s2307_s13 = sphi %s2405_s13, %s3634_s13   ;;  %s2303_s12 = sphi %s2403_s12, %s3625_s12   ;;  %s2299_s11 = sphi %s2401_s11, %s3633_s11   ;;  %s2295_s10 = sphi %s2399_s10, %s3632_s10   ;;  %s2291_s9 = sphi %s2397_s9, %s3631_s9   ;;  %s2287_s30 = sphi %s2395_s30, %s3630_s30   ;;  %s2283_s29 = sphi %s2393_s29, %s3623_s29   ;;  %s2279_s28 = sphi %s2391_s28, %s3629_s28   ;;  %s2275_s27 = sphi %s2389_s27, %s3628_s27  }
  0x1b   : > { %3522 = sst [smem:[#allocation26_spill]] %s2299_s11  ;;  %p61_p1 = scmp.eq.s32.totalorder %s2315_s15, 0 }
  0x1c   : > { %3523 = sst [smem:[#allocation27_spill]] %s2303_s12  ;;  %p3467_p2 = scmp.lt.s32.totalorder %s2315_s15, 4 }
  0x1d   : > { %3524 = sst [smem:[#allocation28_spill]] %s2311_s14  ;;  %p62_p3 = por %p61_p1, %p3466_p0 }
  0x1e   : > { %s3463_s18 = sand.u32 1, %s2295_s10   ;;  %s3464_s20 = sshll.u32 %s2311_s14, 9 }
  0x1f   : > { %s2458_s19 = sshll.u32 %s3463_s18, 5  ;;  %p2463_p4 = pnand %p3467_p2, %p62_p3 }
  0x20   : > { %s2468_s22 = sand.u32 1, %s2315_s15   ;;  %s3526_s1 = sld [smem:[#allocation53_spill]] }
  0x21   : > { %s3525_s21 = scalar_select %p2463_p4, 1, 0 }
  0x22   : > { %s327_s26 = scalar_lea.vmem [#allocation7], %s2458_s19  ;;  %s3468_s17 = scalar_lea.sflag [#allocation8], %s2468_s22 }
  0x23   : > { %s334_s18 = sshll.u32 %s327_s26, 4  ;;  %p3479_p6 = pneg %p2463_p4  ;;  %s2478_s18 = int_to_ptr.vmem [resolvable:$true] %s334_s18 }
  0x26   : > { %s2475_s25 = scalar_lea.hbm %s3526_s1, %s3464_s20  ;;  %s1955_s20 = scalar_lea.hbm %s3526_s1, 1024 }
  0x27   : > { %s1950_s16 = scalar_lea.hbm %s2475_s25, 512  ;;  %p1956_p9 = scmp.lt.u32.totalorder %s2475_s25, %s3526_s1 }
  0x28   : > { %p1951_p5 = scmp.ne.s32.totalorder %s2475_s25, %s1950_s16  ;;  %p1957_p10 = scmp.lt.u32.totalorder %s1955_s20, %s1950_s16 }
  0x29   : > { %p1959_p12 = scmp.lt.u32.totalorder %s1950_s16, %s2475_s25 }
  0x2a   : > { %p1953_p7 = pnand %p3479_p6, %p1951_p5  ;;  %p1958_p11 = por %p1957_p10, %p1956_p9 }
  0x2c   : > { %p1954_p8 = pneg %p1953_p7  ;;  %p1960_p13 = por %p1959_p12, %p1958_p11 }
  0x2e   : > { %p1961_p3 = pnand %p1960_p13, %p1954_p8 }
  0x30   : > { %1964 = shalt.err (!%p1961_p3)
}
  0x31   : > { %s1965_s26 = scalar_lea.vmem %s2478_s18, 512  ;;  %s2317_s23 = smov [#allocation7]  }
  0x32   : > { %p1966_p5 = scmp.ne.s32.totalorder %s2478_s18, %s1965_s26  ;;  %s1970_s24 = sshll.u32 %s2317_s23, 4  ;;  %s1971_s24 = int_to_ptr.vmem [resolvable:$false] %s1970_s24 }
  0x33   : > { %s1972_s8 = scalar_lea.vmem %s1971_s24, 1024  ;;  %p1973_p2 = scmp.lt.s32.totalorder %s2478_s18, %s1971_s24 }
  0x34   : > { %p1968_p7 = pnand %p1966_p5, %p3479_p6  ;;  %p1974_p9 = scmp.lt.s32.totalorder %s1972_s8, %s1965_s26 }
  0x36   : > { %p1969_p0 = pneg %p1968_p7  ;;  %p1975_p10 = por %p1974_p9, %p1973_p2 }
  0x38   : > { %p1976_p11 = pnand %p1975_p10, %p1969_p0 }
  0x3a   : > { %1979 = shalt.err (!%p1976_p11)
}
  0x3b   : > { %s3469_s12 = smov 128   ;;  %s3471_s16 = smov 8  }
  0x3c   : > { %1772 = dma.hbm_to_vmem [thread:$0]  (!%p2463_p4), %s2475_s25, 512, %s2478_s18, %s3468_s17, %s3469_s12, %s3469_s12, %s3471_s16  }
  0x3d   : > { %s43_s20 = sadd.s32 1, %s2307_s13  ;;  %s105_s26 = sadd.s32 1, %s2283_s29 }
  0x3e   : > { %p44_p0 = scmp.ge.s32.totalorder %s43_s20, 2  ;;  %p112_p2 = scmp.ne.s32.totalorder %s2283_s29, %s2279_s28 }
  0x3f   : > { %s2516_s23 = sand.u32 1, %s2283_s29   ;;  %s3528_s24 = sadd.s32 1, %s2311_s14 }
  0x40   : > { %s3637_s20 = smov (%p44_p0, %s43_s20), 0  ;;  %s3639_s24 = smov (!%p44_p0, %s3528_s24), %s2311_s14 }
  0x41   : > { %3527 = sst [smem:[#allocation29_spill]] %s3637_s20  ;;  %s102_s8 = ssub.s32 %s2307_s13, %s3637_s20 }
  0x42   : > { %p114_p8 = por %p112_p2, %p61_p1  ;;  %p48_p12 = scmp.ge.s32.totalorder %s3639_s24, 2 }
  0x43   : > { %p103_p13 = scmp.eq.s32.totalorder %s102_s8, 0  ;;  %p3529_p3 = scmp.lt.s32.totalorder %s2315_s15, 4 }
  0x44   : > { %s1650_s25 = sshll.u32 %s2516_s23, 3  ;;  %s3641_s24 = smov (%p48_p12, %s3639_s24), 0 }
  0x45   : > { %p2529_p5 = pnand %p3529_p3, %p114_p8  ;;  %3531 = sst [smem:[#allocation30_spill]] %s3641_s24 }
  0x46   : > { %s2537_s17 = scalar_select %p103_p13, %s2283_s29, %s105_s26  }
  0x47   : > { %s3530_s18 = scalar_select %p2529_p5, 1, 0 }
  0x48   : > { %3532 = sst [smem:[#allocation31_spill]] %s2537_s17  ;;  %s50_s12 = ssub.s32 %s2311_s14, %s3641_s24 }
  0x49   : > { %p51_p7 = scmp.eq.s32.totalorder %s50_s12, 0  ;;  %s1651_s16 = sshll.u32 %s2307_s13, 7 }
  0x4a   : > { %s369_s1 = scalar_lea.vmem [#allocation10], %s1650_s25  ;;  %s3533_s11 = sadd.s32 1, %s2295_s10 }
  0x4b   : > { %s376_s20 = sshll.u32 %s369_s1, 4  ;;  %s3535_s3 = sld [smem:[#allocation55_spill]]  ;;  %s2552_s20 = int_to_ptr.vmem [resolvable:$true] %s376_s20 }
  0x4c   : > { %s2545_s6 = scalar_select %p51_p7, %s2295_s10, %s3533_s11  }
  0x4d   : > { %s3488_s26 = scalar_lea.sflag [#allocation11], %s2468_s22  ;;  %p2559_p9 = pneg %p2529_p5 }
  0x4e   : > { %3534 = sst [smem:[#allocation32_spill]] %s2545_s6 }
  0x4f   : > { %s3536_s1 = scalar_select %p2559_p9, 1, 0 }
  0x51   : > { %s2550_s7 = scalar_lea.hbm %s3535_s3, %s1651_s16  ;;  %s1985_s12 = scalar_lea.hbm %s3535_s3, 256 }
  0x52   : > { %s1980_s24 = scalar_lea.hbm %s2550_s7, 128  ;;  %p1986_p0 = scmp.lt.u32.totalorder %s2550_s7, %s3535_s3 }
  0x53   : > { %p1981_p1 = scmp.ne.s32.totalorder %s2550_s7, %s1980_s24  ;;  %p1987_p2 = scmp.lt.u32.totalorder %s1985_s12, %s1980_s24 }
  0x54   : > { %p1989_p12 = scmp.lt.u32.totalorder %s1980_s24, %s2550_s7 }
  0x55   : > { %p1983_p10 = pnand %p2559_p9, %p1981_p1  ;;  %p1988_p8 = por %p1987_p2, %p1986_p0 }
  0x57   : > { %p1984_p11 = pneg %p1983_p10  ;;  %p1990_p13 = por %p1989_p12, %p1988_p8 }
  0x59   : > { %p1991_p3 = pnand %p1990_p13, %p1984_p11 }
  0x5b   : > { %1994 = shalt.err (!%p1991_p3)
}
  0x5c   : > { %s1995_s8 = scalar_lea.vmem %s2552_s20, 128  ;;  %s2320_s4 = smov [#allocation10]  }
  0x5d   : > { %p1996_p7 = scmp.ne.s32.totalorder %s2552_s20, %s1995_s8  ;;  %s2000_s11 = sshll.u32 %s2320_s4, 4  ;;  %s2001_s11 = int_to_ptr.vmem [resolvable:$false] %s2000_s11 }
  0x5e   : > { %s2002_s16 = scalar_lea.vmem %s2001_s11, 256  ;;  %p2003_p6 = scmp.lt.s32.totalorder %s2552_s20, %s2001_s11 }
  0x5f   : > { %p1998_p1 = pnand %p1996_p7, %p2559_p9  ;;  %p2004_p4 = scmp.lt.s32.totalorder %s2002_s16, %s1995_s8 }
  0x61   : > { %p1999_p10 = pneg %p1998_p1  ;;  %p2005_p0 = por %p2004_p4, %p2003_p6 }
  0x63   : > { %p2006_p2 = pnand %p2005_p0, %p1999_p10 }
  0x65   : > { %2009 = shalt.err (!%p2006_p2)
}
  0x66   : > { %1778 = dma.hbm_to_vmem [thread:$0]  (!%p2529_p5), %s2550_s7, 128, %s2552_s20, %s3488_s26  }
  0x67   : > { %s1647_s12 = sshll.u32 %s2516_s23, 4  ;;  %s1708_s25 = sshll.u32 %s2307_s13, 8 }
  0x68   : > { %s3537_s2 = sld [smem:[#allocation54_spill]]  ;;  %s348_s16 = scalar_lea.vmem [#allocation9], %s1647_s12 }
  0x69   : > { %s355_s3 = sshll.u32 %s348_s16, 4  ;;  %s3538_s5 = sld [smem:[#allocation57_spill]]  ;;  %s2592_s3 = int_to_ptr.vmem [resolvable:$true] %s355_s3 }
  0x6a   : > { %s404_s7 = scalar_lea.vmem [#allocation13], %s1647_s12  ;;  %s3485_s4 = scalar_lea.sflag [#allocation14], %s2468_s22 }
  0x6b   : > { %s411_s20 = sshll.u32 %s404_s7, 4  ;;  %s2599_s20 = int_to_ptr.vmem [resolvable:$true] %s411_s20 }
  0x6e   : > { %s2590_s11 = scalar_lea.hbm %s3537_s2, %s1708_s25 }
  0x6f   : > { %s2597_s29 = scalar_lea.hbm %s3538_s5, %s1708_s25  ;;  %s2015_s6 = scalar_lea.hbm %s3538_s5, 512 }
  0x70   : > { %s2010_s8 = scalar_lea.hbm %s2597_s29, 256  ;;  %p2016_p8 = scmp.lt.u32.totalorder %s2597_s29, %s3538_s5 }
  0x71   : > { %p2011_p4 = scmp.ne.s32.totalorder %s2597_s29, %s2010_s8  ;;  %p2017_p12 = scmp.lt.u32.totalorder %s2015_s6, %s2010_s8 }
  0x72   : > { %p2019_p3 = scmp.lt.u32.totalorder %s2010_s8, %s2597_s29 }
  0x73   : > { %p2013_p6 = pnand %p2011_p4, %p2559_p9  ;;  %p2018_p13 = por %p2017_p12, %p2016_p8 }
  0x75   : > { %p2014_p11 = pneg %p2013_p6  ;;  %p2020_p7 = por %p2019_p3, %p2018_p13 }
  0x77   : > { %p2021_p1 = pnand %p2020_p7, %p2014_p11 }
  0x79   : > { %2024 = shalt.err (!%p2021_p1)
}
  0x7a   : > { %s2025_s12 = scalar_lea.vmem %s2599_s20, 256  ;;  %s2321_s24 = smov [#allocation13]  }
  0x7b   : > { %p2026_p10 = scmp.ne.s32.totalorder %s2599_s20, %s2025_s12  ;;  %s2030_s7 = sshll.u32 %s2321_s24, 4  ;;  %s2031_s7 = int_to_ptr.vmem [resolvable:$false] %s2030_s7 }
  0x7c   : > { %s2032_s16 = scalar_lea.vmem %s2031_s7, 512  ;;  %p2033_p4 = scmp.lt.s32.totalorder %s2599_s20, %s2031_s7 }
  0x7d   : > { %p2028_p0 = pnand %p2026_p10, %p2559_p9  ;;  %p2034_p6 = scmp.lt.s32.totalorder %s2032_s16, %s2025_s12 }
  0x7f   : > { %p2029_p2 = pneg %p2028_p0  ;;  %p2035_p8 = por %p2034_p6, %p2033_p4 }
  0x81   : > { %p2036_p12 = pnand %p2035_p8, %p2029_p2 }
  0x83   : > { %2039 = shalt.err (!%p2036_p12)
}
  0x84   : > { %s3486_s8 = smov 64   ;;  %s3487_s6 = smov 4  }
  0x85   : > { %1784 = dma.hbm_to_vmem [thread:$0]  (!%p2529_p5), %s2597_s29, 256, %s2599_s20, %s3485_s4, %s3486_s8, %s3486_s8, %s3487_s6  }
  0x86   : > { %s2629_s17 = sadd.s32 4294967295, %s2315_s15   ;;  %s1637_s25 = sadd.s32 4294967294, %s2315_s15  }
  0x87   : > { %p66_p11 = scmp.ne.s32.totalorder %s2291_s9, %s2287_s30  ;;  %p3491_p13 = scmp.eq.s32.totalorder %s2629_s17, 0 }
  0x88   : > { %p118_p3 = scmp.ne.s32.totalorder %s2279_s28, %s2275_s27  ;;  %p267_p7 = scmp.eq.s32.totalorder %s2629_s17, 3 }
  0x89   : > { %p2640_p1 = por %p3491_p13, %p66_p11  ;;  %p273_p10 = scmp.eq.s32.totalorder %s1637_s25, 3 }
  0x8a   : > { %p2646_p0 = por %p118_p3, %p3491_p13  ;;  %p3541_p2 = scmp.ne.s32.totalorder %s2295_s10, %s2291_s9 }
  0x8b   : > { %s3539_s12 = scalar_select %p2640_p1, 1, 0 }
  0x8c   : > { %s3540_s29 = scalar_select %p2646_p0, 1, 0 }
  0x8d   : > { %p2653_p4 = por %p267_p7, %p3541_p2  ;;  %p2657_p6 = por %p273_p10, %p66_p11 }
  0x8e   : > { %p1638_p8 = scmp.ge.s32.totalorder %s2315_s15, 1  ;;  %p280_p12 = scmp.lt.s32.totalorder %s2315_s15, 5 }
  0x8f   : > { %s3542_s20 = scalar_select %p2653_p4, 1, 0 }
  0x90   : > { %s3543_s27 = scalar_select %p2657_p6, 1, 0 }
  0x91   : > { %p2663_p5 = pnand %p1638_p8, %p280_p12  ;;  %s3546_s7 = sshll.u32 %s2311_s14, 9 }
  0x92   : > { %3544 = sst [smem:[#allocation33_spill]] %s3543_s27  ;;  %s3547_s0 = sld [smem:[#allocation52_spill]] }
  0x93   : > { %s3545_s24 = scalar_select %p2663_p5, 1, 0 }
  0x94   : > { %s306_s8 = scalar_lea.vmem [#allocation3], %s2458_s19  ;;  %s3548_s26 = sand.u32 1, %s2295_s10  }
  0x95   : > { %s313_s6 = sshll.u32 %s306_s8, 4  ;;  %s2681_s5 = scalar_lea.sflag [#allocation4], %s3548_s26  ;;  %s2677_s6 = int_to_ptr.vmem [resolvable:$true] %s313_s6 }
  0x96   : > { %p3549_p7 = scmp.ne.s32.totalorder %s3525_s21, 0 }
  0x98   : > { %s2672_s4 = scalar_lea.hbm %s3547_s0, %s3546_s7  ;;  %p3550_p10 = pneg %p3549_p7 }
  0x99   : > { %s2040_s14 = scalar_lea.hbm %s2672_s4, 512  ;;  %s2045_s25 = scalar_lea.hbm %s3547_s0, 1024 }
  0x9a   : > { %p2041_p3 = scmp.ne.s32.totalorder %s2672_s4, %s2040_s14  ;;  %p2046_p12 = scmp.lt.u32.totalorder %s2672_s4, %s3547_s0 }
  0x9b   : > { %p2047_p11 = scmp.lt.u32.totalorder %s2045_s25, %s2040_s14  ;;  %p2049_p6 = scmp.lt.u32.totalorder %s2040_s14, %s2672_s4 }
  0x9c   : > { %p2043_p2 = pnand %p2041_p3, %p3550_p10 }
  0x9d   : > { %p2048_p13 = por %p2047_p11, %p2046_p12 }
  0x9e   : > { %p2044_p8 = pneg %p2043_p2 }
  0x9f   : > { %p2050_p4 = por %p2049_p6, %p2048_p13 }
  0xa1   : > { %p2051_p0 = pnand %p2050_p4, %p2044_p8 }
  0xa3   : > { %2054 = shalt.err (!%p2051_p0)
}
  0xa4   : > { %s2055_s26 = scalar_lea.vmem %s2677_s6, 512  ;;  %s2324_s8 = smov [#allocation3]  }
  0xa5   : > { %p2056_p3 = scmp.ne.s32.totalorder %s2677_s6, %s2055_s26  ;;  %s2060_s7 = sshll.u32 %s2324_s8, 4  ;;  %s2061_s7 = int_to_ptr.vmem [resolvable:$false] %s2060_s7 }
  0xa6   : > { %s2062_s27 = scalar_lea.vmem %s2061_s7, 1024  ;;  %p2063_p9 = scmp.lt.s32.totalorder %s2677_s6, %s2061_s7 }
  0xa7   : > { %p2058_p2 = pnand %p2056_p3, %p3550_p10  ;;  %p2064_p11 = scmp.lt.s32.totalorder %s2062_s27, %s2055_s26 }
  0xa9   : > { %p2059_p1 = pneg %p2058_p2  ;;  %p2065_p12 = por %p2064_p11, %p2063_p9 }
  0xab   : > { %p2066_p13 = pnand %p2065_p12, %p2059_p1 }
  0xad   : > { %2069 = shalt.err (!%p2066_p13)
}
  0xae   : > { %s3551_s14 = smov 8   ;;  %s3552_s16 = smov 128  }
  0xaf   : > { %1769 = dma.hbm_to_vmem [thread:$0]  (!%p3549_p7), %s2672_s4, 512, %s2677_s6, %s2681_s5, %s3552_s16, %s3552_s16, %s3551_s14  }
  0xb0   : > { %p3553_p0 = scmp.eq.s32.totalorder %s2629_s17, 0  ;;  %p3554_p9 = pneg %p2663_p5 }
  0xb1   : > { %s2070_s21 = scalar_lea.hbm %s2590_s11, 256  ;;  %p3556_p6 = scmp.ne.s32.totalorder %s3536_s1, 0 }
  0xb2   : > { %p2715_p1 = pnand %p3554_p9, %p3553_p0  ;;  %p2071_p4 = scmp.ne.s32.totalorder %s2590_s11, %s2070_s21 }
  0xb3   : > { %s2075_s8 = scalar_lea.hbm %s3537_s2, 512  ;;  %p2076_p7 = scmp.lt.u32.totalorder %s2590_s11, %s3537_s2 }
  0xb4   : > { %p2073_p8 = pnand %p2071_p4, %p3556_p6  ;;  %p2077_p10 = scmp.lt.u32.totalorder %s2075_s8, %s2070_s21 }
  0xb5   : > { %p2079_p11 = scmp.lt.u32.totalorder %s2070_s21, %s2590_s11 }
  0xb6   : > { %p2074_p3 = pneg %p2073_p8  ;;  %p2078_p2 = por %p2077_p10, %p2076_p7 }
  0xb8   : > { %p2080_p12 = por %p2079_p11, %p2078_p2 }
  0xba   : > { %p2081_p13 = pnand %p2080_p12, %p2074_p3 }
  0xbc   : > { %2084 = shalt.err (!%p2081_p13)
}
  0xbd   : > { %s2085_s5 = scalar_lea.vmem %s2592_s3, 256  ;;  %s2325_s4 = smov [#allocation9]  }
  0xbe   : > { %p2086_p0 = scmp.ne.s32.totalorder %s2592_s3, %s2085_s5  ;;  %s2090_s6 = sshll.u32 %s2325_s4, 4  ;;  %s2091_s6 = int_to_ptr.vmem [resolvable:$false] %s2090_s6 }
  0xbf   : > { %s2092_s19 = scalar_lea.vmem %s2091_s6, 512  ;;  %p2093_p8 = scmp.lt.s32.totalorder %s2592_s3, %s2091_s6 }
  0xc0   : > { %p2088_p9 = pnand %p2086_p0, %p3556_p6  ;;  %p2094_p5 = scmp.lt.s32.totalorder %s2092_s19, %s2085_s5 }
  0xc2   : > { %p2089_p4 = pneg %p2088_p9  ;;  %p2095_p7 = por %p2094_p5, %p2093_p8 }
  0xc4   : > { %p2096_p10 = pnand %p2095_p7, %p2089_p4 }
  0xc6   : > { %2099 = shalt.err (!%p2096_p10)
}
  0xc7   : > { %p3557_p3 = scmp.ne.s32.totalorder %s3530_s18, 0  ;;  %s3558_s21 = scalar_lea.sflag [#allocation8], %s2468_s22 }
  0xc8   : > { %s1652_s26 = sshll.u32 %s2307_s13, 4  ;;  %s3559_s27 = sld [smem:[#allocation59_spill]] }
  0xc9   : > { %1775 = dma.hbm_to_vmem [thread:$0]  (!%p3557_p3), %s2590_s11, 256, %s2592_s3, %s3558_s21, %s3552_s16, %s3552_s16, %s3551_s14  }
  0xca   : > { %p2102_p2 = pneg %p2715_p1 }
  0xce   : > { %s3560_s4 = smov %s3559_s27  ;;  %s2100_s5 = scalar_lea.hbm %s3559_s27, 32 }
  0xcf   : > { %p2101_p5 = scmp.ne.s32.totalorder %s3560_s4, %s2100_s5  ;;  %p2107_p13 = scmp.lt.u32.totalorder %s2100_s5, %s3560_s4 }
  0xd1   : > { %p2103_p11 = pnand %p2102_p2, %p2101_p5 }
  0xd3   : > { %p2104_p12 = pneg %p2103_p11 }
  0xd5   : > { %p2109_p0 = pnand %p2107_p13, %p2104_p12 }
  0xd7   : > { %2112 = shalt.err (!%p2109_p0)
}
  0xd8   : > { %s2326_s3 = smov [#allocation16]   ;;  %s3561_s8 = sld [smem:[#allocation56_spill]] }
  0xd9   : > { %1765 = dma.hbm_to_smem (!%p2715_p1), %s3560_s4, 32, %s2326_s3, [#allocation6]  }
  0xda   : > { %s386_s0 = scalar_lea.vmem [#allocation12], %s2516_s23 }
  0xdb   : > { %s393_s2 = sshll.u32 %s386_s0, 4  ;;  %s394_s2 = int_to_ptr.vmem [resolvable:$true] %s393_s2 }
  0xde   : > { %s2765_s7 = scalar_lea.hbm %s3561_s8, %s1652_s26  ;;  %s2118_s6 = scalar_lea.hbm %s3561_s8, 32 }
  0xdf   : > { %s2113_s27 = scalar_lea.hbm %s2765_s7, 16  ;;  %p2119_p1 = scmp.lt.u32.totalorder %s2765_s7, %s3561_s8 }
  0xe0   : > { %p2114_p9 = scmp.ne.s32.totalorder %s2765_s7, %s2113_s27  ;;  %p2120_p7 = scmp.lt.u32.totalorder %s2118_s6, %s2113_s27 }
  0xe1   : > { %p2122_p5 = scmp.lt.u32.totalorder %s2113_s27, %s2765_s7 }
  0xe2   : > { %p2116_p4 = pnand %p2114_p9, %p3556_p6  ;;  %p2121_p10 = por %p2120_p7, %p2119_p1 }
  0xe4   : > { %p2117_p8 = pneg %p2116_p4  ;;  %p2123_p2 = por %p2122_p5, %p2121_p10 }
  0xe6   : > { %p2124_p11 = pnand %p2123_p2, %p2117_p8 }
  0xe8   : > { %2127 = shalt.err (!%p2124_p11)
}
  0xe9   : > { %s2128_s26 = scalar_lea.vmem %s394_s2, 16  ;;  %s2327_s11 = smov [#allocation12]  }
  0xea   : > { %p2129_p12 = scmp.ne.s32.totalorder %s394_s2, %s2128_s26  ;;  %s2133_s14 = sshll.u32 %s2327_s11, 4  ;;  %s2134_s14 = int_to_ptr.vmem [resolvable:$false] %s2133_s14 }
  0xeb   : > { %s2135_s16 = scalar_lea.vmem %s2134_s14, 32  ;;  %p2136_p9 = scmp.lt.s32.totalorder %s394_s2, %s2134_s14 }
  0xec   : > { %p2131_p13 = pnand %p2129_p12, %p3556_p6  ;;  %p2137_p4 = scmp.lt.s32.totalorder %s2135_s16, %s2128_s26 }
  0xee   : > { %p2132_p0 = pneg %p2131_p13  ;;  %p2138_p3 = por %p2137_p4, %p2136_p9 }
  0xf0   : > { %p2139_p1 = pnand %p2138_p3, %p2132_p0 }
  0xf2   : > { %2142 = shalt.err (!%p2139_p1)
}
  0xf3   : > { %p3562_p7 = scmp.ne.s32.totalorder %s3530_s18, 0  ;;  %s3563_s21 = scalar_lea.sflag [#allocation11], %s2468_s22 }
  0xf4   : > { %s1710_s0 = sshll.u32 %s2307_s13, 9  ;;  %s3564_s27 = sshll.u32 %s2516_s23, 5 }
  0xf5   : > { %1781 = dma.hbm_to_vmem [thread:$0]  (!%p3562_p7), %s2765_s7, 16, %s394_s2, %s3563_s21  }
  0xf6   : > { %s425_s25 = scalar_lea.vmem [#allocation15], %s3564_s27  ;;  %s3565_s3 = sld [smem:[#allocation58_spill]] }
  0xf7   : > { %s432_s5 = sshll.u32 %s425_s25, 4  ;;  %s2795_s5 = int_to_ptr.vmem [resolvable:$true] %s432_s5 }
  0xfc   : > { %s2793_s26 = scalar_lea.hbm %s3565_s3, %s1710_s0  ;;  %s2148_s2 = scalar_lea.hbm %s3565_s3, 1024 }
  0xfd   : > { %s2143_s11 = scalar_lea.hbm %s2793_s26, 512  ;;  %p2149_p5 = scmp.lt.u32.totalorder %s2793_s26, %s3565_s3 }
  0xfe   : > { %p2144_p3 = scmp.ne.s32.totalorder %s2793_s26, %s2143_s11  ;;  %p2150_p2 = scmp.lt.u32.totalorder %s2148_s2, %s2143_s11 }
  0xff   : > { %p2152_p12 = scmp.lt.u32.totalorder %s2143_s11, %s2793_s26 }
 0x100   : > { %p2146_p8 = pnand %p2144_p3, %p3556_p6  ;;  %p2151_p11 = por %p2150_p2, %p2149_p5 }
 0x102   : > { %p2147_p10 = pneg %p2146_p8  ;;  %p2153_p13 = por %p2152_p12, %p2151_p11 }
 0x104   : > { %p2154_p0 = pnand %p2153_p13, %p2147_p10 }
 0x106   : > { %2157 = shalt.err (!%p2154_p0)
}
 0x107   : > { %s2158_s21 = scalar_lea.vmem %s2795_s5, 512  ;;  %s2328_s0 = smov [#allocation15]  }
 0x108   : > { %p2159_p9 = scmp.ne.s32.totalorder %s2795_s5, %s2158_s21  ;;  %s2163_s27 = sshll.u32 %s2328_s0, 4  ;;  %s2164_s27 = int_to_ptr.vmem [resolvable:$false] %s2163_s27 }
 0x109   : > { %s2165_s25 = scalar_lea.vmem %s2164_s27, 1024  ;;  %p2166_p3 = scmp.lt.s32.totalorder %s2795_s5, %s2164_s27 }
 0x10a   : > { %p2161_p4 = pnand %p2159_p9, %p3556_p6  ;;  %p2167_p8 = scmp.lt.s32.totalorder %s2165_s25, %s2158_s21 }
 0x10c   : > { %p2162_p1 = pneg %p2161_p4  ;;  %p2168_p5 = por %p2167_p8, %p2166_p3 }
 0x10e   : > { %p2169_p2 = pnand %p2168_p5, %p2162_p1 }
 0x110   : > { %2172 = shalt.err (!%p2169_p2)
}
 0x111   : > { %s3566_s6 = smov 4   ;;  %s3567_s19 = smov 64  }
 0x112   : > { %s3568_s11 = scalar_lea.sflag [#allocation14], %s2468_s22  ;;  %p3569_p6 = scmp.ne.s32.totalorder %s3545_s24, 0 }
 0x113   : > { %1787 = dma.hbm_to_vmem [thread:$0]  (!%p3562_p7), %s2793_s26, 512, %s2795_s5, %s3568_s11, %s3567_s19, %s3567_s19, %s3566_s6  }
 0x114   : > { %444 = sbr.rel (%p3569_p6) target bundleno = 1121 (0x461), region = 52 }
 0x11b   : > { %s2826_s1 = sand.u32 1, %s2291_s9   ;;  %p3570_p10 = scmp.ne.s32.totalorder %s3539_s12, 0 }
 0x11c   : > { %s1660_s7 = sshll.u32 %s2826_s1, 5  ;;  %s447_s23 = scalar_lea.sflag [#allocation4], %s2826_s1 }
 0x11d   : > { %s2830_s18 = scalar_lea.vmem [#allocation3], %s1660_s7 }
 0x11e   : > { %2246 = dma.done.wait (%p3570_p10), %s447_s23, 512  }
 0x11f   : > { %2248 = vsyncadd (%p3570_p10), %s447_s23, 4294966784  ;;  %s455_s22 = sand.u32 1, %s2629_s17   ;;  %s2837_s5 = scalar_lea.vmem [#allocation7], %s1660_s7 }
 0x120   : > { %s456_s24 = scalar_lea.sflag [#allocation8], %s455_s22 }
 0x121   : > { %2250 = dma.done.wait (%p3570_p10), %s456_s24, 512  }
 0x122   : > { %2252 = vsyncadd (%p3570_p10), %s456_s24, 4294966784  ;;  %s2844_s26 = sand.u32 1, %s2279_s28   ;;  %p3571_p7 = scmp.ne.s32.totalorder %s3540_s29, 0 }
 0x123   : > { %s1662_s2 = sshll.u32 %s2844_s26, 4 }
 0x124   : > { %s2847_s14 = scalar_lea.vmem [#allocation9], %s1662_s2 }
 0x125   : > { %2254 = dma.done.wait (%p3571_p7), %s456_s24, 256  }
 0x126   : > { %2256 = vsyncadd (%p3571_p7), %s456_s24, 4294967040  ;;  %s1663_s16 = sshll.u32 %s2844_s26, 3  ;;  %s474_s21 = scalar_lea.sflag [#allocation11], %s455_s22 }
 0x127   : > { %s2854_s0 = scalar_lea.vmem [#allocation10], %s1663_s16 }
 0x128   : > { %2258 = dma.done.wait (%p3571_p7), %s474_s21, 144  }
 0x129   : > { %2260 = vsyncadd (%p3571_p7), %s474_s21, 4294967152  ;;  %s485_s12 = scalar_lea.vmem [#allocation12], %s2844_s26  ;;  %s491_s27 = scalar_lea.sflag [#allocation14], %s455_s22 }
 0x12a   : > { %s2861_s25 = scalar_lea.vmem [#allocation13], %s1662_s2 }
 0x12b   : > { %2262 = dma.done.wait (%p3571_p7), %s491_s27, 768  }
 0x12c   : > { %2264 = vsyncadd (%p3571_p7), %s491_s27, 4294966528  ;;  %s1665_s6 = sshll.u32 %s2844_s26, 5  ;;  %p3572_p11 = scmp.eq.s32.totalorder %s2629_s17, 0 }
 0x12d   : > { %s2868_s19 = scalar_lea.vmem [#allocation15], %s1665_s6 }
 0x12e   : > { %2266 = dma.done.wait (%p3572_p11), [#allocation6], 32   ;;  %p3573_p12 = pmov %p3572_p11 }
 0x130   : > { %2268 = vsyncadd (%p3573_p12), [#allocation6], 4294967264 }
 0x131   : > { %512 = sfence }
 0x132   : > { %s2874_s11 = scalar_lea.vmem [#allocation17], %s1660_s7  ;;  %s3574_s23 = sld [smem:[#allocation26_spill]] }
 0x138   : > { %p1668_p13 = scmp.ne.s32.totalorder %s3574_s23, 0 }
 0x139   : > { %v578_v0 = vld [vmem:[%s2830_s18] sm:$0xff] (!%p1668_p13)  ;;  %vm582_vm0 = vcmask (!%p1668_p13), 261120   ;;  %v579_v1 = vld [vmem:[%s2830_s18 + $0x8] sm:$0xff] (!%p1668_p13)  ;;  %v580_v2 = vld [vmem:[%s2830_s18 + $0x10] sm:$0xff] (!%p1668_p13) }
 0x13a   : > { %577 = sbr.rel (%p1668_p13) target bundleno = 321 (0x141), region = 88  ;;  %583 = vst.msk [vmem:[#allocation2] sm:$0xff] (!%p1668_p13), %vm582_vm0, %v578_v0  ;;  %584 = vst.msk [vmem:[#allocation2 + $0x8] sm:$0xff] (!%p1668_p13), %vm582_vm0, %v579_v1  ;;  %v581_v3 = vld [vmem:[%s2830_s18 + $0x18] sm:$0xff] (!%p1668_p13) }
 0x13b   : > { %585 = vst.msk [vmem:[#allocation2 + $0x10] sm:$0xff] (!%p1668_p13), %vm582_vm0, %v580_v2  ;;  %586 = vst.msk [vmem:[#allocation2 + $0x18] sm:$0xff] (!%p1668_p13), %vm582_vm0, %v581_v3 }
 0x141 PF: > { %v2882_v4 = vld [vmem:[%s2837_s5] sm:$0xff]  ;;  %v2329_v5 = vmov 1   ;;  %v2330_v6 = vmov 0   ;;  %v2887_v7 = vld [vmem:[%s2837_s5 + $0x8] sm:$0xff]  ;;  %v2892_v8 = vld [vmem:[%s2837_s5 + $0x10] sm:$0xff]  ;;  %v2331_v10 = vmov 2   ;;  %v595_v21 = vlaneseq }
 0x142   : > { %1904 = vset.pattern.permute.xlu1 %v2329_v5  ;;  %1903 = vset.pattern.permute.xlu0 %v2330_v6  ;;  %v2895_v9 = vld [vmem:[%s2837_s5 + $0x18] sm:$0xff]  ;;  %v2332_v11 = vmov 3   ;;  %v2333_v12 = vmov 4   ;;  %v2334_v13 = vmov 5   ;;  %v2335_v14 = vmov 7   ;;  %v2941_v22 = vld [vmem:[#allocation2 + $0x10] sm:$0xff] }
 0x143   : > { %654 = vperm.xlu1 %1904, %v2882_v4   ;;  %609 = vperm.xlu0 %1903, %v2882_v4   ;;  %v2336_v15 = vmov 8   ;;  %v2337_v16 = vmov 9   ;;  %v2338_v17 = vmov 10   ;;  %v2339_v18 = vmov 11   ;;  %v2943_v23 = vld [vmem:[#allocation2] sm:$0xff]  ;;  %v2945_v24 = vld [vmem:[#allocation2 + $0x18] sm:$0xff] }
 0x144   : > { %v2340_v19 = vmov 12   ;;  %3575 = vst [vmem:[#allocation34_spill] sm:$0xff] %v2943_v23  ;;  %v2947_v25 = vshrl.u32 %v595_v21, 7  ;;  %v593_v27 = vrot.slane %v2941_v22, 2  ;;  %v643_v28 = vrot.slane %v2943_v23, 3  ;;  %v1928_v3 = vld [vmem:[%s2861_s25] sm:$0xff]  }
 0x145   : > { %v646_v29 = vrot.slane %v2945_v24, 3  ;;  %v591_v30 = vrot.slane %v2943_v23, 2  ;;  %v594_v31 = vrot.slane %v2945_v24, 2  ;;  %v3499_v32 = vrot.slane %v2941_v22, 3  ;;  %v2990_v45 = vld [vmem:[%s2847_s14 + $0x1] ss:$0 sm:$0xff]  ;;  %1722 = vmatprep.subr.bf16.mxu0 %v1928_v3 }
 0x146   : > { %vm647_vm1 = vcmp.lt.s32.totalorder %v2947_v25, 5  ;;  %vm597_vm2 = vcmp.lt.s32.totalorder %v2947_v25, 6  ;;  %v685_v40 = vrot.slane %v2943_v23, 4  ;;  %v688_v41 = vrot.slane %v2945_v24, 4  ;;  %v2993_v46 = vld [vmem:[%s2847_s14] ss:$0 sm:$0xff]  ;;  %1723 = vmatpush3.bf16.msra.mxu0 %v1928_v3 }
 0x147   : > { %658 = vperm.xlu1 %1904, %v2887_v7   ;;  %614 = vperm.xlu0 %1903, %v2887_v7   ;;  %v2963_v34 = vsel %vm597_vm2, %v593_v27, %v594_v31  ;;  %v2969_v35 = vsel %vm647_vm1, %v646_v29, %v643_v28  ;;  %v2975_v37 = vsel %vm597_vm2, %v594_v31, %v591_v30  ;;  %vm689_vm3 = vcmp.lt.s32.totalorder %v2947_v25, 4  ;;  %v3007_v54 = vld [vmem:[%s2847_s14 + $0x2] ss:$0 sm:$0xff]  ;;  %v3097_v3 = vld [vmem:[%s2847_s14 + $0x3] ss:$0 sm:$0xff]  ;;  %s3614_s17 = sld [smem:[#allocation26_spill]] }
 0x148   : > { %3576 = vst [vmem:[#allocation35_spill] sm:$0xff] %v2963_v34  ;;  %3577 = vst [vmem:[#allocation36_spill] sm:$0xff] %v2969_v35  ;;  %v2981_v38 = vsel %vm647_vm1, %v3499_v32, %v646_v29  ;;  %v3002_v50 = vsel %vm689_vm3, %v688_v41, %v685_v40  ;;  %v3498_v60 = vrot.slane %v2941_v22, 4  ;;  %vm731_vm4 = vcmp.lt.s32.totalorder %v2947_v25, 3 }
 0x149   : > { %3578 = vst [vmem:[#allocation37_spill] sm:$0xff] %v2975_v37  ;;  %3579 = vst [vmem:[#allocation38_spill] sm:$0xff] %v2981_v38  ;;  %vm773_vm5 = vcmp.lt.s32.totalorder %v2947_v25, 2  ;;  %vm815_vm6 = vcmp.lt.s32.totalorder %v2947_v25, 1  ;;  %vm870_vm7 = vcmp.lt.s32.totalorder %v2947_v25, 7  ;;  %vm1174_vm8 = vcmask 261120  }
 0x14a   : > { %3580 = vst [vmem:[#allocation39_spill] sm:$0xff] %v3002_v50  ;;  %v3020_v62 = vsel %vm689_vm3, %v3498_v60, %v688_v41  ;;  %v3060_v41 = vld [vmem:[#allocation2 + $0x8] sm:$0xff]  ;;  %vm1305_vm9 = vcmask 523264  }
 0x14b   : > { %1905 = vset.pattern.permute.xlu1 %v2330_v6  ;;  %619 = vperm.xlu0 %1903, %v2892_v8   ;;  %3581 = vst [vmem:[#allocation40_spill] sm:$0xff] %v3020_v62  ;;  %v770_v60 = vrot.slane %v3060_v41, 6  ;;  %v3286_v25 = vld [vmem:[%s2847_s14 + $0xc] ss:$0 sm:$0xff] }
 0x14c   : > { %624 = vperm.xlu1 %1905, %v2895_v9  }
 0x14d   : > { %s1683_s29 = sshll.u32 %s3614_s17, 7  ;;  %p1700_p0 = scmp.ne.s32.totalorder %s3614_s17, 1 }
 0x14e   : > { %s1119_s7 = sld [smem:[#allocation16 + %s1683_s29]]  ;;  %s1120_s18 = sadd.s32 1, %s1683_s29 }
 0x14f   : > { %1906 = vset.pattern.permute.xlu0 %v2329_v5  ;;  %s1121_s22 = sld [smem:[#allocation16 + %s1120_s18]] }
 0x150   : > { %1907 = vset.pattern.permute.xlu1 %v2329_v5  ;;  %662 = vperm.xlu0 %1906, %v2892_v8  }
 0x151   : > { %666 = vperm.xlu1 %1907, %v2895_v9  }
 0x154   : > { %1909 = vset.pattern.permute.xlu0 %v2331_v10 }
 0x155   : > { %1908 = vset.pattern.permute.xlu1 %v2331_v10  ;;  %700 = vperm.xlu0 %1909, %v2887_v7  }
 0x156   : > { %696 = vperm.xlu1 %1908, %v2882_v4  }
 0x159   : > { %1910 = vset.pattern.permute.xlu0 %v2332_v11 }
 0x15a   : > { %704 = vperm.xlu1 %1908, %v2892_v8   ;;  %738 = vperm.xlu0 %1910, %v2882_v4  }
 0x15e   : > { %708 = vperm.xlu1 %1908, %v2895_v9   ;;  %750 = vperm.xlu0 %1910, %v2895_v9  }
 0x162   : > { %1911 = vset.pattern.permute.xlu1 %v2332_v11  ;;  %1913 = vset.pattern.permute.xlu0 %v2333_v12 }
 0x163   : > { %742 = vperm.xlu1 %1911, %v2887_v7   ;;  %784 = vperm.xlu0 %1913, %v2887_v7  }
 0x167   : > { %746 = vperm.xlu1 %1911, %v2892_v8   ;;  %1914 = vset.pattern.permute.xlu0 %v2334_v13 }
 0x168   : > { %822 = vperm.xlu0 %1914, %v2882_v4  }
 0x16b   : > { %1912 = vset.pattern.permute.xlu1 %v2333_v12 }
 0x16c   : > { %780 = vperm.xlu1 %1912, %v2882_v4   ;;  %834 = vperm.xlu0 %1914, %v2895_v9  }
 0x170   : > { %788 = vperm.xlu1 %1912, %v2892_v8   ;;  %1917 = vset.pattern.permute.xlu0 %v2335_v14 }
 0x171   : > { %881 = vperm.xlu0 %1917, %v2887_v7  }
 0x174   : > { %792 = vperm.xlu1 %1912, %v2895_v9  }
 0x175   : > { %1918 = vset.pattern.permute.xlu0 %v2336_v15 }
 0x176   : > { %910 = vperm.xlu0 %1918, %v2882_v4  }
 0x178   : > { %1915 = vset.pattern.permute.xlu1 %v2334_v13 }
 0x179   : > { %826 = vperm.xlu1 %1915, %v2887_v7  }
 0x17a   : > { %922 = vperm.xlu0 %1918, %v2895_v9  }
 0x17d   : > { %830 = vperm.xlu1 %1915, %v2892_v8  }
 0x17e   : > { %1921 = vset.pattern.permute.xlu0 %v2337_v16 }
 0x17f   : > { %947 = vperm.xlu0 %1921, %v2887_v7  }
 0x181   : > { %1916 = vset.pattern.permute.xlu1 %v2335_v14 }
 0x182   : > { %877 = vperm.xlu1 %1916, %v2882_v4  }
 0x183   : > { %1922 = vset.pattern.permute.xlu0 %v2338_v17 }
 0x184   : > { %976 = vperm.xlu0 %1922, %v2882_v4  }
 0x186   : > { %885 = vperm.xlu1 %1916, %v2892_v8  }
 0x188   : > { %988 = vperm.xlu0 %1922, %v2895_v9  }
 0x18a   : > { %889 = vperm.xlu1 %1916, %v2895_v9  }
 0x18c   : > { %1925 = vset.pattern.permute.xlu0 %v2339_v18 }
 0x18d   : > { %1013 = vperm.xlu0 %1925, %v2887_v7  }
 0x18e   : > { %1919 = vset.pattern.permute.xlu1 %v2336_v15 }
 0x18f   : > { %914 = vperm.xlu1 %1919, %v2887_v7  }
 0x191   : > { %1926 = vset.pattern.permute.xlu0 %v2340_v19 }
 0x192   : > { %1042 = vperm.xlu0 %1926, %v2882_v4  }
 0x193   : > { %918 = vperm.xlu1 %1919, %v2892_v8  }
 0x196   : > { %1054 = vperm.xlu0 %1926, %v2895_v9  }
 0x197   : > { %1920 = vset.pattern.permute.xlu1 %v2337_v16 }
 0x198   : > { %943 = vperm.xlu1 %1920, %v2882_v4  }
 0x19c   : > { %951 = vperm.xlu1 %1920, %v2892_v8  }
 0x1a0   : > { %955 = vperm.xlu1 %1920, %v2895_v9  }
 0x1a4   : > { %1923 = vset.pattern.permute.xlu1 %v2338_v17 }
 0x1a5   : > { %980 = vperm.xlu1 %1923, %v2887_v7  }
 0x1a9   : > { %984 = vperm.xlu1 %1923, %v2892_v8  }
 0x1ad   : > { %1924 = vset.pattern.permute.xlu1 %v2339_v18 }
 0x1ae   : > { %1009 = vperm.xlu1 %1924, %v2882_v4   ;;  %v1929_v4 = vld [vmem:[%s2861_s25 + $0x8] sm:$0xff]  }
 0x1af   : > { %1724 = vmatprep.subr.bf16.mxu0 %v1929_v4 }
 0x1b0   : > { %1725 = vmatpush3.bf16.msra.mxu0 %v1929_v4  ;;  %v728_v4 = vrot.slane %v3060_v41, 5 }
 0x1b2   : > { %1017 = vperm.xlu1 %1924, %v2892_v8  }
 0x1b6   : > { %1021 = vperm.xlu1 %1924, %v2895_v9  }
 0x1ba   : > { %1927 = vset.pattern.permute.xlu1 %v2340_v19 }
 0x1bb   : > { %1046 = vperm.xlu1 %1927, %v2887_v7  }
 0x1bf   : > { %1050 = vperm.xlu1 %1927, %v2892_v8  }
 0x1c2   : > { %v655_v20 = vpop.permute.xlu1 %654  ;;  %v610_v36 = vpop.permute.xlu0 %609 }
 0x1c3   : > { %v669_v42 = vmul.f32 %v655_v20, %v2969_v35  ;;  %v627_v43 = vmul.f32 %v610_v36, %v2975_v37  ;;  %v727_v36 = vrot.slane %v2943_v23, 5 }
 0x1c5   : > { %v677_v51 = vmul.f32 %v2990_v45, %v669_v42  ;;  %v635_v52 = vmul.f32 %v2993_v46, %v627_v43  ;;  %v772_v42 = vrot.slane %v2945_v24, 6 }
 0x1c6   : > { %v2949_v26 = vpop.permute.xlu1 %658  ;;  %v3022_v63 = vpop.permute.xlu0 %614 }
 0x1c7   : > { %v681_v57 = vadd.f32 %v677_v51, %v635_v52  ;;  %v592_v51 = vrot.slane %v3060_v41, 2  ;;  %v686_v52 = vrot.slane %v3060_v41, 4 }
 0x1c9   : > { %v3111_v32 = vsel %vm597_vm2, %v592_v51, %v593_v27 }
 0x1ca   : > { %v3028_v5 = vpop.permute.xlu0 %619 }
 0x1cb   : > { %v625_v33 = vpop.permute.xlu1 %624 }
 0x1cc   : > { %v630_v39 = vmul.f32 %v625_v33, %v2963_v34 }
 0x1ce   : > { %v638_v48 = vmul.f32 %v2993_v46, %v630_v39  ;;  %v730_v39 = vrot.slane %v2945_v24, 5 }
 0x1cf   : > { %v3036_v9 = vpop.permute.xlu0 %662 }
 0x1d0   : > { %v667_v44 = vpop.permute.xlu1 %666 }
 0x1d1   : > { %v672_v47 = vmul.f32 %v667_v44, %v2981_v38  ;;  %v3590_v38 = vrot.slane %v2941_v22, 4 }
 0x1d3   : > { %v680_v49 = vmul.f32 %v2990_v45, %v672_v47  ;;  %v644_v47 = vrot.slane %v3060_v41, 3  ;;  %v3130_v27 = vsel %vm689_vm3, %v686_v52, %v3590_v38 }
 0x1d4   : > { %v701_v11 = vpop.permute.xlu0 %700 }
 0x1d5   : > { %v684_v53 = vadd.f32 %v680_v49, %v638_v48  ;;  %v697_v55 = vpop.permute.xlu1 %696  ;;  %v3071_v48 = vsel %vm731_vm4, %v730_v39, %v727_v36  ;;  %v769_v49 = vrot.slane %v2943_v23, 6 }
 0x1d6   : > { %v711_v56 = vmul.f32 %v697_v55, %v3002_v50  ;;  %3584 = vst [vmem:[#allocation43_spill] sm:$0xff] %v3071_v48 }
 0x1d7   : > { %v3080_v55 = vsel %vm773_vm5, %v772_v42, %v769_v49 }
 0x1d8   : > { %v719_v58 = vmul.f32 %v3007_v54, %v711_v56  ;;  %3585 = vst [vmem:[#allocation44_spill] sm:$0xff] %v3080_v55  ;;  %v811_v56 = vrot.slane %v2943_v23, 7 }
 0x1d9   : > { %v3011_v59 = vpop.permute.xlu1 %704  ;;  %v739_v13 = vpop.permute.xlu0 %738 }
 0x1da   : > { %v3014_v61 = vadd.f32 %v719_v58, %v681_v57  ;;  %v814_v57 = vrot.slane %v2945_v24, 7 }
 0x1dd   : > { %v709_v0 = vpop.permute.xlu1 %708  ;;  %v751_v15 = vpop.permute.xlu0 %750 }
 0x1de   : > { %v714_v1 = vmul.f32 %v709_v0, %v3020_v62  ;;  %v753_v0 = vmul.f32 %v739_v13, %v3071_v48  ;;  %v3105_v13 = vsel %vm597_vm2, %v591_v30, %v592_v51  ;;  %v3588_v48 = vrot.slane %v2941_v22, 3 }
 0x1e0   : > { %v722_v2 = vmul.f32 %v3007_v54, %v714_v1  ;;  %v3124_v30 = vsel %vm647_vm1, %v644_v47, %v3588_v48  ;;  %v866_v48 = vrot.slane %v2943_v23, 1 }
 0x1e1   : > { %3589 = vst [vmem:[#allocation47_spill] sm:$0xff] %v3124_v30 }
 0x1e2   : > { %v3030_v6 = vadd.f32 %v722_v2, %v684_v53  ;;  %v3032_v7 = vpop.permute.xlu1 %742  ;;  %v3046_v18 = vpop.permute.xlu0 %784  ;;  %v729_v53 = vrot.slane %v2941_v22, 5  ;;  %v3094_v2 = vsel %vm647_vm1, %v643_v28, %v644_v47  ;;  %v3117_v28 = vsel %vm689_vm3, %v685_v40, %v686_v52 }
 0x1e3   : > { %v819_v40 = vsel %vm815_vm6, %v814_v57, %v811_v56  ;;  %v670_v38 = vmul.f32 %v2949_v26, %v3094_v2  ;;  %v628_v52 = vmul.f32 %v3022_v63, %v3105_v13 }
 0x1e4   : > { %v3134_v51 = vsel %vm731_vm4, %v729_v53, %v730_v39  ;;  %v3148_v39 = vsel %vm731_vm4, %v727_v36, %v728_v4  ;;  %v867_v36 = vrot.slane %v3060_v41, 1 }
 0x1e5   : > { %3591 = vst [vmem:[#allocation48_spill] sm:$0xff] %v3134_v51  ;;  %v756_v35 = vmul.f32 %v751_v15, %v3134_v51  ;;  %v754_v51 = vmul.f32 %v3032_v7, %v3148_v39 }
 0x1e6   : > { %v3034_v8 = vpop.permute.xlu1 %746  ;;  %v873_v15 = vsel %vm870_vm7, %v866_v48, %v867_v36 }
 0x1e7   : > { %v823_v19 = vpop.permute.xlu0 %822  ;;  %v764_v37 = vmul.f32 %v3097_v3, %v756_v35  ;;  %v762_v35 = vmul.f32 %v3097_v3, %v754_v51 }
 0x1e8   : > { %v837_v26 = vmul.f32 %v823_v19, %v819_v40  ;;  %v3594_v19 = vrot.slane %v2941_v22, 7  ;;  %v812_v40 = vrot.slane %v3060_v41, 7 }
 0x1e9   : > { %v768_v51 = vadd.f32 %v764_v37, %v3030_v6  ;;  %v3238_v6 = vld [vmem:[%s2847_s14 + $0x8] ss:$0 sm:$0xff] }
 0x1eb   : > { %v781_v10 = vpop.permute.xlu1 %780  ;;  %v3050_v21 = vpop.permute.xlu0 %834 }
 0x1ec   : > { %v795_v62 = vmul.f32 %v781_v10, %v3080_v55  ;;  %v761_v10 = vmul.f32 %v3097_v3, %v753_v0  ;;  %v771_v55 = vrot.slane %v2941_v22, 6  ;;  %v3155_v0 = vsel %vm773_vm5, %v769_v49, %v770_v60 }
 0x1ed   : > { %v3169_v49 = vsel %vm731_vm4, %v728_v4, %v729_v53  ;;  %v678_v53 = vmul.f32 %v2990_v45, %v670_v38  ;;  %v636_v4 = vmul.f32 %v2993_v46, %v628_v52 }
 0x1ee   : > { %v3162_v63 = vsel %vm773_vm5, %v771_v55, %v772_v42  ;;  %v816_v42 = vsel %vm815_vm6, %v3594_v19, %v814_v57  ;;  %v629_v57 = vmul.f32 %v3028_v5, %v3111_v32  ;;  %v671_v19 = vmul.f32 %v3036_v9, %v3124_v30 }
 0x1ef   : > { %v3038_v12 = vpop.permute.xlu1 %788  ;;  %3593 = vst [vmem:[#allocation50_spill] sm:$0xff] %v3162_v63  ;;  %v3203_v7 = vsel %vm773_vm5, %v770_v60, %v771_v55  ;;  %v796_v5 = vmul.f32 %v3046_v18, %v3155_v0  ;;  %v818_v9 = vsel %vm815_vm6, %v811_v56, %v812_v40  ;;  %v840_v55 = vmul.f32 %v3050_v21, %v816_v42  ;;  %v3226_v21 = vld [vmem:[%s2847_s14 + $0x7] ss:$0 sm:$0xff] }
 0x1f0   : > { %v3054_v31 = vpop.permute.xlu0 %881  ;;  %v637_v18 = vmul.f32 %v2993_v46, %v629_v57 }
 0x1f3   : > { %v3040_v14 = vpop.permute.xlu1 %792 }
 0x1f5   : > { %v3064_v43 = vpop.permute.xlu0 %910 }
 0x1f8   : > { %v3042_v16 = vpop.permute.xlu1 %826 }
 0x1f9   : > { %v3084_v58 = vpop.permute.xlu0 %922 }
 0x1fa   : > { %3586 = vst [vmem:[#allocation45_spill] sm:$0xff] %v3084_v58 }
 0x1fc   : > { %v3044_v17 = vpop.permute.xlu1 %830 }
 0x1fe   : > { %v3157_v47 = vpop.permute.xlu0 %947 }
 0x1ff   : > { %3592 = vst [vmem:[#allocation49_spill] sm:$0xff] %v3157_v47 }
 0x201   : > { %v3048_v20 = vpop.permute.xlu1 %877 }
 0x205   : > { %v3052_v29 = vpop.permute.xlu1 %885 }
 0x206   : > { %3582 = vst [vmem:[#allocation41_spill] sm:$0xff] %v3052_v29  ;;  %v712_v29 = vmul.f32 %v701_v11, %v3117_v28  ;;  %v3182_v11 = vld [vmem:[%s2847_s14 + $0x6] ss:$0 sm:$0xff] }
 0x208   : > { %v720_v52 = vmul.f32 %v3007_v54, %v712_v29  ;;  %v892_v29 = vmul.f32 %v3048_v20, %v873_v15  ;;  %v713_v20 = vmul.f32 %v3011_v59, %v3130_v27  ;;  %v838_v15 = vmul.f32 %v3042_v16, %v818_v9  ;;  %v3259_v9 = vld [vmem:[%s2847_s14 + $0x9] ss:$0 sm:$0xff] }
 0x209   : > { %v3056_v33 = vpop.permute.xlu1 %889  ;;  %v755_v59 = vmul.f32 %v3034_v8, %v3169_v49  ;;  %v3596_v16 = vrot.slane %v2941_v22, 7 }
 0x20a   : > { %v900_v46 = vmul.f32 %v3226_v21, %v892_v29 }
 0x20e   : > { %v3066_v44 = vpop.permute.xlu1 %914 }
 0x20f   : > { %3583 = vst [vmem:[#allocation42_spill] sm:$0xff] %v3066_v44  ;;  %v3172_v44 = vld [vmem:[%s2847_s14 + $0x5] ss:$0 sm:$0xff] }
 0x210   : > { %v845_v38 = vmul.f32 %v3172_v44, %v837_v26  ;;  %v682_v26 = vadd.f32 %v678_v53, %v636_v4  ;;  %v848_v37 = vmul.f32 %v3172_v44, %v840_v55  ;;  %v846_v8 = vmul.f32 %v3172_v44, %v838_v15  ;;  %v3270_v55 = vld [vmem:[%s2847_s14 + $0xa] ss:$0 sm:$0xff] }
 0x211   : > { %v3597_v15 = vld [vmem:[#allocation37_spill] sm:$0xff] }
 0x212   : > { %v3088_v1 = vpop.permute.xlu1 %918  ;;  %v724_v30 = vadd.f32 %v720_v52, %v682_v26  ;;  %v797_v52 = vmul.f32 %v3038_v12, %v3203_v7 }
 0x213   : > { %3587 = vst [vmem:[#allocation46_spill] sm:$0xff] %v3088_v1  ;;  %v3151_v1 = vld [vmem:[%s2847_s14 + $0x4] ss:$0 sm:$0xff] }
 0x214   : > { %v803_v50 = vmul.f32 %v3151_v1, %v795_v62  ;;  %v765_v62 = vadd.f32 %v761_v10, %v3014_v61  ;;  %v798_v61 = vmul.f32 %v3040_v14, %v3162_v63  ;;  %v977_v10 = vpop.permute.xlu0 %976  ;;  %v858_v14 = vmul.f32 %v3182_v11, %v2943_v23 }
 0x215   : > { %v679_v63 = vmul.f32 %v2990_v45, %v671_v19  ;;  %v804_v42 = vmul.f32 %v3151_v1, %v796_v5  ;;  %v925_v45 = vmul.f32 %v3064_v43, %v3105_v13  ;;  %v766_v53 = vadd.f32 %v762_v35, %v724_v30 }
 0x216   : > { %v807_v58 = vadd.f32 %v803_v50, %v765_v62  ;;  %v868_v50 = vrot.slane %v2941_v22, 1  ;;  %v806_v60 = vmul.f32 %v3151_v1, %v798_v61  ;;  %v817_v61 = vsel %vm815_vm6, %v812_v40, %v3596_v16 }
 0x217   : > { %v944_v34 = vpop.permute.xlu1 %943  ;;  %v721_v30 = vmul.f32 %v3007_v54, %v713_v20  ;;  %v933_v40 = vmul.f32 %v3238_v6, %v925_v45  ;;  %v991_v29 = vmul.f32 %v977_v10, %v3117_v28 }
 0x218   : > { %v3216_v23 = vpop.permute.xlu0 %988  ;;  %v849_v56 = vadd.f32 %v845_v38, %v807_v58  ;;  %v810_v4 = vadd.f32 %v806_v60, %v768_v51  ;;  %v958_v43 = vmul.f32 %v944_v34, %v3094_v2  ;;  %v872_v19 = vsel %vm870_vm7, %v867_v36, %v868_v50 }
 0x219   : > { %v808_v2 = vadd.f32 %v804_v42, %v766_v53  ;;  %v859_v36 = vmul.f32 %v3182_v11, %v3060_v41  ;;  %v839_v60 = vmul.f32 %v3044_v17, %v817_v61  ;;  %v3598_v42 = vld [vmem:[#allocation45_spill] sm:$0xff]  ;;  %v3599_v17 = vld [vmem:[#allocation42_spill] sm:$0xff]  ;;  %v999_v53 = vmul.f32 %v3270_v55, %v991_v29 }
 0x21a   : > { %v862_v57 = vadd.f32 %v858_v14, %v849_v56  ;;  %v852_v54 = vadd.f32 %v848_v37, %v810_v4  ;;  %v861_v14 = vmul.f32 %v3182_v11, %v2945_v24  ;;  %v966_v12 = vmul.f32 %v3259_v9, %v958_v43 }
 0x21b   : > { %v3192_v47 = vpop.permute.xlu1 %951  ;;  %v805_v56 = vmul.f32 %v3151_v1, %v797_v52  ;;  %v928_v28 = vmul.f32 %v3598_v42, %v3597_v15  ;;  %v847_v37 = vmul.f32 %v3172_v44, %v839_v60  ;;  %v3604_v44 = vld [vmem:[#allocation39_spill] sm:$0xff] }
 0x21c   : > { %3595 = vst [vmem:[#allocation51_spill] sm:$0xff] %v3192_v47  ;;  %v869_v47 = vrot.slane %v2945_v24, 1  ;;  %v3249_v38 = vpop.permute.xlu0 %1013  ;;  %v904_v5 = vadd.f32 %v900_v46, %v862_v57  ;;  %v865_v45 = vadd.f32 %v861_v14, %v852_v54  ;;  %v994_v52 = vmul.f32 %v3216_v23, %v3604_v44 }
 0x21d   : > { %v860_v14 = vmul.f32 %v3182_v11, %v2941_v22  ;;  %v3607_v11 = vld [vmem:[#allocation44_spill] sm:$0xff] }
 0x21e   : > { %v874_v58 = vsel %vm870_vm7, %v869_v47, %v866_v48  ;;  %v683_v48 = vadd.f32 %v679_v63, %v637_v18  ;;  %v763_v63 = vmul.f32 %v3097_v3, %v755_v59  ;;  %v893_v3 = vmul.f32 %v3054_v31, %v872_v19  ;;  %v3600_v59 = vld [vmem:[#allocation36_spill] sm:$0xff] }
 0x21f   : > { %v956_v62 = vpop.permute.xlu1 %955  ;;  %v895_v34 = vmul.f32 %v3056_v33, %v874_v58  ;;  %v850_v33 = vadd.f32 %v846_v8, %v808_v2  ;;  %v937_v20 = vadd.f32 %v933_v40, %v904_v5  ;;  %v871_v46 = vsel %vm870_vm7, %v868_v50, %v869_v47  ;;  %v3602_v8 = vld [vmem:[#allocation47_spill] sm:$0xff] }
 0x220   : > { %v725_v35 = vadd.f32 %v721_v30, %v683_v48  ;;  %v1043_v18 = vpop.permute.xlu0 %1042  ;;  %v926_v31 = vmul.f32 %v3599_v17, %v3111_v32  ;;  %v961_v1 = vmul.f32 %v956_v62, %v3600_v59  ;;  %v901_v61 = vmul.f32 %v3226_v21, %v893_v3  ;;  %v3601_v48 = vld [vmem:[#allocation41_spill] sm:$0xff] }
 0x221   : > { %v903_v51 = vmul.f32 %v3226_v21, %v895_v34  ;;  %v970_v58 = vadd.f32 %v966_v12, %v937_v20  ;;  %v1057_v4 = vmul.f32 %v1043_v18, %v3155_v0  ;;  %v863_v16 = vadd.f32 %v859_v36, %v850_v33  ;;  %v3603_v0 = vld [vmem:[#allocation49_spill] sm:$0xff]  ;;  %v3605_v18 = vld [vmem:[#allocation35_spill] sm:$0xff] }
 0x222   : > { %v767_v10 = vadd.f32 %v763_v63, %v725_v35  ;;  %v936_v32 = vmul.f32 %v3238_v6, %v928_v28  ;;  %v894_v30 = vmul.f32 %v3601_v48, %v871_v46  ;;  %v934_v62 = vmul.f32 %v3238_v6, %v926_v31  ;;  %v1680_v5 = vld [vmem:[%s2847_s14 + $0xb] ss:$0 sm:$0xff]  ;;  %v3612_v48 = vld [vmem:[#allocation48_spill] sm:$0xff] }
 0x223   : > { %v907_v50 = vadd.f32 %v903_v51, %v865_v45  ;;  %v959_v19 = vmul.f32 %v3603_v0, %v3602_v8  ;;  %v1003_v40 = vadd.f32 %v999_v53, %v970_v58  ;;  %v969_v34 = vmul.f32 %v3259_v9, %v961_v1  ;;  %v1682_v51 = vld [vmem:[%s2854_s0] ss:$0 sm:$0xff] }
 0x224   : > { %v981_v13 = vpop.permute.xlu1 %980  ;;  %v809_v47 = vadd.f32 %v805_v56, %v767_v10  ;;  %v1065_v63 = vmul.f32 %v3286_v25, %v1057_v4  ;;  %v1055_v29 = vpop.permute.xlu0 %1054  ;;  %v902_v23 = vmul.f32 %v3226_v21, %v894_v30  ;;  %v3606_v56 = vld [vmem:[#allocation46_spill] sm:$0xff]  ;;  %v1002_v42 = vmul.f32 %v3270_v55, %v994_v52  ;;  %v3609_v46 = vld [vmem:[#allocation51_spill] sm:$0xff] }
 0x225   : > { %v992_v36 = vmul.f32 %v981_v13, %v3130_v27  ;;  %v940_v35 = vadd.f32 %v936_v32, %v907_v50  ;;  %v967_v3 = vmul.f32 %v3259_v9, %v959_v19  ;;  %v927_v20 = vmul.f32 %v3606_v56, %v3605_v18  ;;  %v3608_v13 = vld [vmem:[#allocation38_spill] sm:$0xff]  ;;  %v3610_v53 = vld [vmem:[#allocation43_spill] sm:$0xff] }
 0x226   : > { %v851_v54 = vadd.f32 %v847_v37, %v809_v47  ;;  %v1060_v10 = vmul.f32 %v1055_v29, %v3607_v11  ;;  %v960_v45 = vmul.f32 %v3609_v46, %v3608_v13  ;;  %v1025_v21 = vmul.f32 %v3249_v38, %v3169_v49 }
 0x227   : > { %v973_v15 = vadd.f32 %v969_v34, %v940_v35  ;;  %v1000_v17 = vmul.f32 %v3270_v55, %v992_v36  ;;  %v935_v37 = vmul.f32 %v3238_v6, %v927_v20 }
 0x228   : > { %v3265_v26 = vpop.permute.xlu1 %984  ;;  %v864_v27 = vadd.f32 %v860_v14, %v851_v54  ;;  %v1068_v32 = vmul.f32 %v3286_v25, %v1060_v10  ;;  %v968_v49 = vmul.f32 %v3259_v9, %v960_v45 }
 0x22a   : > { %v906_v1 = vadd.f32 %v902_v23, %v864_v27 }
 0x22c   : > { %v939_v0 = vadd.f32 %v935_v37, %v906_v1  ;;  %v1122_v1 = vstv %s1119_s7 }
 0x22d   : > { %v1010_v57 = vpop.permute.xlu1 %1009 }
 0x22e   : > { %v1024_v43 = vmul.f32 %v1010_v57, %v3148_v39  ;;  %v905_v39 = vadd.f32 %v901_v61, %v863_v16  ;;  %v3611_v16 = vld [vmem:[#allocation40_spill] sm:$0xff]  ;;  %v1006_v57 = vadd.f32 %v1002_v42, %v973_v15 }
 0x22f   : > { %v993_v61 = vmul.f32 %v3265_v26, %v3611_v16 }
 0x230   : > { %v1032_v2 = vmul.f32 %v1680_v5, %v1024_v43  ;;  %v938_v60 = vadd.f32 %v934_v62, %v905_v39  ;;  %v1033_v43 = vmul.f32 %v1680_v5, %v1025_v21 }
 0x231   : > { %v1018_v12 = vpop.permute.xlu1 %1017  ;;  %v1001_v26 = vmul.f32 %v3270_v55, %v993_v61 }
 0x232   : > { %v1036_v33 = vadd.f32 %v1032_v2, %v1003_v40  ;;  %v971_v4 = vadd.f32 %v967_v3, %v938_v60  ;;  %v1026_v30 = vmul.f32 %v1018_v12, %v3612_v48  ;;  %v972_v40 = vadd.f32 %v968_v49, %v939_v0  ;;  %v3613_v12 = vld [vmem:[#allocation50_spill] sm:$0xff] }
 0x234   : > { %v1069_v28 = vadd.f32 %v1065_v63, %v1036_v33  ;;  %v1004_v38 = vadd.f32 %v1000_v17, %v971_v4  ;;  %v1034_v2 = vmul.f32 %v1680_v5, %v1026_v30  ;;  %v1005_v14 = vadd.f32 %v1001_v26, %v972_v40  ;;  %v1684_v30 = vld [vmem:[%s2854_s0 + $0x1] ss:$0 sm:$0xff] }
 0x235   : > { %v1022_v31 = vpop.permute.xlu1 %1021 }
 0x236   : > { %v3314_v58 = vadd.f32 %v1682_v51, %v1069_v28  ;;  %v1027_v59 = vmul.f32 %v1022_v31, %v3610_v53  ;;  %v1037_v34 = vadd.f32 %v1033_v43, %v1004_v38  ;;  %v1038_v55 = vadd.f32 %v1034_v2, %v1005_v14  ;;  %v3615_v38 = vld [vmem:[#allocation34_spill] sm:$0xff]  ;;  %v1931_v14 = vld [vmem:[%s2868_s19 + $0x8] sm:$0xff]  }
 0x238   : > { %v1082_v47 = vmul.f32 %v3314_v58, %v3314_v58  ;;  %v1035_v50 = vmul.f32 %v1680_v5, %v1027_v59 }
 0x23a   : > { %v1086_v62 = vmul.f32 %v1082_v47, %v3314_v58  ;;  %v1039_v8 = vadd.f32 %v1035_v50, %v1006_v57  ;;  %v1047_v6 = vpop.permute.xlu1 %1046 }
 0x23b   : > { %v1058_v19 = vmul.f32 %v1047_v6, %v3203_v7 }
 0x23c   : > { %v1090_v44 = vmul.f32 0.044715, %v1086_v62  ;;  %v1072_v52 = vadd.f32 %v1068_v32, %v1039_v8 }
 0x23d   : > { %v1066_v9 = vmul.f32 %v3286_v25, %v1058_v19  ;;  %v1685_v19 = vld [vmem:[%s2854_s0 + $0x2] ss:$0 sm:$0xff] }
 0x23e   : > { %v1094_v63 = vadd.f32 %v1090_v44, %v3314_v58  ;;  %v1081_v54 = vadd.f32 %v1682_v51, %v1072_v52  ;;  %v1051_v39 = vpop.permute.xlu1 %1050 }
 0x23f   : > { %v1070_v36 = vadd.f32 %v1066_v9, %v1037_v34  ;;  %v1059_v29 = vmul.f32 %v1051_v39, %v3613_v12  ;;  %v1933_v12 = vld [vmem:[%s2868_s19 + $0x18] sm:$0xff]  }
 0x240   : > { %v1098_v35 = vmul.f32 0.7978846, %v1094_v63  ;;  %v1085_v33 = vmul.f32 %v1081_v54, %v1081_v54 }
 0x241   : > { %v1079_v23 = vadd.f32 %v1682_v51, %v1070_v36  ;;  %v1067_v7 = vmul.f32 %v3286_v25, %v1059_v29  ;;  %v1932_v36 = vld [vmem:[%s2868_s19 + $0x10] sm:$0xff]   ;;  %v1686_v29 = vld [vmem:[%s485_s12] ss:$0 sm:$0xff] }
 0x242   : > { %1934 = vtanh.f32 %v1098_v35  ;;  %v1089_v60 = vmul.f32 %v1085_v33, %v1081_v54 }
 0x243   : > { %v1083_v5 = vmul.f32 %v1079_v23, %v1079_v23  ;;  %v1071_v3 = vadd.f32 %v1067_v7, %v1038_v55 }
 0x244   : > { %v1093_v18 = vmul.f32 0.044715, %v1089_v60 }
 0x245   : > { %v1087_v56 = vmul.f32 %v1083_v5, %v1079_v23  ;;  %v1080_v20 = vadd.f32 %v1682_v51, %v1071_v3 }
 0x246   : > { %v1097_v15 = vadd.f32 %v1093_v18, %v1081_v54 }
 0x247   : > { %v1091_v42 = vmul.f32 0.044715, %v1087_v56  ;;  %v1084_v28 = vmul.f32 %v1080_v20, %v1080_v20 }
 0x248   : > { %v1101_v11 = vmul.f32 0.7978846, %v1097_v15 }
 0x249   : > { %v1095_v10 = vadd.f32 %v1091_v42, %v1079_v23  ;;  %v1088_v27 = vmul.f32 %v1084_v28, %v1080_v20 }
 0x24a   : > { %1936 = vtanh.f32 %v1101_v11 }
 0x24b   : > { %v1099_v13 = vmul.f32 0.7978846, %v1095_v10  ;;  %v1092_v46 = vmul.f32 0.044715, %v1088_v27 }
 0x24c   : > { %v1935_v45 = vpop.eup %1934 }
 0x24d   : > { %1938 = vtanh.f32 %v1099_v13  ;;  %v1096_v25 = vadd.f32 %v1092_v46, %v1080_v20  ;;  %v1106_v17 = vadd.f32 1.0, %v1935_v45 }
 0x24f   : > { %v1100_v21 = vmul.f32 0.7978846, %v1096_v25  ;;  %v1110_v31 = vmul.f32 0.5, %v1106_v17 }
 0x251   : > { %1940 = vtanh.f32 %v1100_v21  ;;  %v1114_v53 = vmul.f32 %v1110_v31, %v3314_v58 }
 0x253   : > { %v1123_v61 = vmul.f32 %v1122_v1, %v1114_v53 }
 0x254   : > { %v1937_v51 = vpop.eup %1936 }
 0x255   : > { %v1109_v59 = vadd.f32 1.0, %v1937_v51  ;;  %v1127_v43 = vadd.f32 %v1123_v61, %v3615_v38 }
 0x257   : > { %v1939_v4 = vpop.eup %1938  ;;  %v1113_v37 = vmul.f32 0.5, %v1109_v59  ;;  %v1136_v0 = vmul.f32 %v1684_v30, %v1127_v43 }
 0x258   : > { %v1107_v16 = vadd.f32 1.0, %v1939_v4 }
 0x259   : > { %v1117_v57 = vmul.f32 %v1113_v37, %v1081_v54  ;;  %v3341_v40 = vadd.f32 %v1685_v19, %v1136_v0 }
 0x25a   : > { %v1111_v47 = vmul.f32 0.5, %v1107_v16 }
 0x25b   : > { %v1941_v50 = vpop.eup %1940  ;;  %v1126_v48 = vmul.f32 %v1122_v1, %v1117_v57 }
 0x25c   : > { %v1108_v32 = vadd.f32 1.0, %v1941_v50  ;;  %v1115_v49 = vmul.f32 %v1111_v47, %v1079_v23 }
 0x25d   : > { %v1130_v26 = vadd.f32 %v1126_v48, %v2945_v24 }
 0x25e   : > { %v1112_v62 = vmul.f32 0.5, %v1108_v32  ;;  %v1124_v8 = vmul.f32 %v1122_v1, %v1115_v49 }
 0x25f   : > { %v1139_v9 = vmul.f32 %v1684_v30, %v1130_v26  ;;  %v1691_v26 = vld [vmem:[%s2854_s0 + $0x3] ss:$0 sm:$0xff] }
 0x260   : > { %v1116_v6 = vmul.f32 %v1112_v62, %v1080_v20  ;;  %v1128_v58 = vadd.f32 %v1124_v8, %v3060_v41 }
 0x261   : > { %v3351_v54 = vadd.f32 %v1685_v19, %v1139_v9 }
 0x262   : > { %v1137_v44 = vmul.f32 %v1684_v30, %v1128_v58  ;;  %v1125_v52 = vmul.f32 %v1122_v1, %v1116_v6 }
 0x264   : > { %v3343_v34 = vadd.f32 %v1685_v19, %v1137_v44  ;;  %v1129_v2 = vadd.f32 %v1125_v52, %v2941_v22  ;;  %v1930_v22 = vld [vmem:[%s2868_s19] sm:$0xff]   ;;  %v1361_v44 = vstv %s1121_s22 }
 0x265   : > { %1730 = vmatprep.subr.bf16.mxu1 %v1930_v22 }
 0x266   : > { %v1149_v41 = vpack.c.bf16 %v3343_v34, %v3341_v40  ;;  %v1138_v63 = vmul.f32 %v1684_v30, %v1129_v2  ;;  %1731 = vmatpush3.bf16.msra.mxu1 %v1930_v22 }
 0x267   : > { %1732 = vmatprep.subr.bf16.mxu1 %v1931_v14 }
 0x268   : > { %1726 = vmatprep.mubr.msk.bf16.mxu0 %vm1174_vm8, %v1149_v41  ;;  %v3349_v24 = vadd.f32 %v1685_v19, %v1138_v63 }
 0x26a   : > { %v1150_v39 = vpack.c.bf16 %v3351_v54, %v3349_v24  ;;  %1733 = vmatpush3.bf16.msra.mxu1 %v1931_v14  ;;  %v1698_v14 = vld [vmem:[%s2854_s0 + $0x4] ss:$0 sm:$0xff] }
 0x26b   : > { %1734 = vmatprep.subr.bf16.mxu1 %v1932_v36 }
 0x26c   : > { %1727 = vmatmul.mubr.msk.bf16.vlgmr.msra.gmra.mrb[0].mxu0 %vm1174_vm8, %v1150_v39 }
 0x26e   : > { %1735 = vmatpush3.bf16.msra.mxu1 %v1932_v36 }
 0x26f   : > { %1736 = vmatprep.subr.bf16.mxu1 %v1933_v12 }
 0x272   : > { %1737 = vmatpush3.bf16.msra.mxu1 %v1933_v12 }
 0x33f   : > { %v1728_v35 = vpop.f32.mrb[0].mxu0 }
 0x340   : > { %v1224_v33 = vadd.f32 %v1728_v35, %v1686_v29  ;;  %v1215_v55 = vpop.f32.mrb[1].mxu0 }
 0x341   : > { %v1216_v23 = vadd.f32 %v1686_v29, %v1215_v55  ;;  %v1729_v7 = vpop.f32.mrb[2].mxu0 }
 0x342   : > { %v1232_v60 = vmul.f32 %v1224_v33, %v1224_v33  ;;  %v1227_v5 = vadd.f32 %v1729_v7, %v1686_v29  ;;  %v1218_v3 = vpop.f32.mrb[3].mxu0 }
 0x343   : > { %v1230_v18 = vmul.f32 %v1216_v23, %v1216_v23  ;;  %v1219_v56 = vadd.f32 %v1686_v29, %v1218_v3 }
 0x344   : > { %v1236_v20 = vmul.f32 %v1232_v60, %v1224_v33  ;;  %v1233_v15 = vmul.f32 %v1227_v5, %v1227_v5 }
 0x345   : > { %v1234_v42 = vmul.f32 %v1230_v18, %v1216_v23  ;;  %v1231_v28 = vmul.f32 %v1219_v56, %v1219_v56 }
 0x346   : > { %v1240_v11 = vmul.f32 0.044715, %v1236_v20  ;;  %v1237_v10 = vmul.f32 %v1233_v15, %v1227_v5 }
 0x347   : > { %v1238_v27 = vmul.f32 0.044715, %v1234_v42  ;;  %v1235_v13 = vmul.f32 %v1231_v28, %v1219_v56 }
 0x348   : > { %v1244_v46 = vadd.f32 %v1240_v11, %v1224_v33  ;;  %v1241_v45 = vmul.f32 0.044715, %v1237_v10 }
 0x349   : > { %v1242_v25 = vadd.f32 %v1238_v27, %v1216_v23  ;;  %v1239_v17 = vmul.f32 0.044715, %v1235_v13 }
 0x34a   : > { %v1248_v21 = vmul.f32 0.7978846, %v1244_v46  ;;  %v1245_v31 = vadd.f32 %v1241_v45, %v1227_v5 }
 0x34b   : > { %v1246_v51 = vmul.f32 0.7978846, %v1242_v25  ;;  %v1243_v53 = vadd.f32 %v1239_v17, %v1219_v56 }
 0x34c   : > { %1942 = vtanh.f32 %v1248_v21  ;;  %v1249_v59 = vmul.f32 0.7978846, %v1245_v31 }
 0x34d   : > { %v1247_v1 = vmul.f32 0.7978846, %v1243_v53  ;;  %1944 = vtanh.f32 %v1246_v51 }
 0x34e   : > { %1946 = vtanh.f32 %v1249_v59 }
 0x34f   : > { %1948 = vtanh.f32 %v1247_v1 }
 0x356   : > { %v1943_v4 = vpop.eup %1942 }
 0x357   : > { %v1945_v37 = vpop.eup %1944  ;;  %v1256_v16 = vadd.f32 1.0, %v1943_v4 }
 0x358   : > { %v1947_v61 = vpop.eup %1946  ;;  %v1254_v57 = vadd.f32 1.0, %v1945_v37 }
 0x359   : > { %v1949_v47 = vpop.eup %1948  ;;  %v1260_v50 = vmul.f32 0.5, %v1256_v16  ;;  %v1257_v32 = vadd.f32 1.0, %v1947_v61 }
 0x35a   : > { %v1255_v49 = vadd.f32 1.0, %v1949_v47  ;;  %v1258_v38 = vmul.f32 0.5, %v1254_v57 }
 0x35b   : > { %v1261_v43 = vmul.f32 0.5, %v1257_v32  ;;  %v1264_v30 = vmul.f32 %v1260_v50, %v1224_v33  ;;  %v1699_v33 = vld [vmem:[%s2854_s0 + $0x5] ss:$0 sm:$0xff] }
 0x35c   : > { %v1259_v48 = vmul.f32 0.5, %v1255_v49  ;;  %v1262_v8 = vmul.f32 %v1258_v38, %v1216_v23 }
 0x35d   : > { %v1265_v62 = vmul.f32 %v1261_v43, %v1227_v5 }
 0x35e   : > { %v1263_v6 = vmul.f32 %v1259_v48, %v1219_v56 }
 0x35f   : > { %v1267_v58 = vpack.c.bf16 %v1265_v62, %v1264_v30 }
 0x360   : > { %v1266_v0 = vpack.c.bf16 %v1263_v6, %v1262_v8 }
 0x362   : > { %1738 = vmatprep.mubr.msk.bf16.mxu1 %vm1305_vm9, %v1266_v0 }
 0x363   : > { %1739 = vmatmul.mubr.msk.bf16.vlgmr.msra.gmra.mrb[0].mxu1 %vm1305_vm9, %v1267_v58 }
 0x436   : > { %v1740_v19 = vpop.f32.mrb[0].mxu1 }
 0x437   : > { %v1355_v52 = vadd.f32 %v1740_v19, %v1691_v26  ;;  %v1346_v2 = vpop.f32.mrb[1].mxu1 }
 0x438   : > { %v1347_v9 = vadd.f32 %v1691_v26, %v1346_v2  ;;  %v1741_v41 = vpop.f32.mrb[2].mxu1 }
 0x439   : > { %v1364_v63 = vmul.f32 %v1361_v44, %v1355_v52  ;;  %v1358_v39 = vadd.f32 %v1741_v41, %v1691_v26  ;;  %v1349_v22 = vpop.f32.mrb[3].mxu1 }
 0x43a   : > { %v1362_v36 = vmul.f32 %v1361_v44, %v1347_v9  ;;  %v1350_v12 = vadd.f32 %v1691_v26, %v1349_v22 }
 0x43b   : > { %v1368_v29 = vadd.f32 %v1364_v63, %v3349_v24  ;;  %v1365_v35 = vmul.f32 %v1361_v44, %v1358_v39 }
 0x43c   : > { %v1366_v55 = vadd.f32 %v1362_v36, %v3341_v40  ;;  %v1363_v23 = vmul.f32 %v1361_v44, %v1350_v12 }
 0x43d   : > { %v1377_v7 = vmul.f32 %v1698_v14, %v1368_v29  ;;  %v1369_v60 = vadd.f32 %v1365_v35, %v3351_v54 }
 0x43e   : > { %v1375_v5 = vmul.f32 %v1698_v14, %v1366_v55  ;;  %v1367_v3 = vadd.f32 %v1363_v23, %v3343_v34  ;;  %1395 = sbr.rel (%p1700_p0) target bundleno = 1093 (0x445), region = 92 }
 0x43f   : > { %v1386_v18 = vadd.f32 %v1699_v33, %v1377_v7  ;;  %v1378_v56 = vmul.f32 %v1698_v14, %v1369_v60 }
 0x440   : > { %v1384_v20 = vadd.f32 %v1699_v33, %v1375_v5  ;;  %v1376_v15 = vmul.f32 %v1698_v14, %v1367_v3 }
 0x441   : > { %1390 = vst.msk [vmem:[#allocation2 + $0x10] sm:$0xff] %vm1174_vm8, %v1386_v18  ;;  %v1387_v42 = vadd.f32 %v1699_v33, %v1378_v56  ;;  %1398 = vst.msk [vmem:[%s2874_s11 + $0x10] sm:$0xff] (!%p1700_p0), %vm1174_vm8, %v1386_v18 }
 0x442   : > { %1388 = vst.msk [vmem:[#allocation2] sm:$0xff] %vm1174_vm8, %v1384_v20  ;;  %v1385_v24 = vadd.f32 %v1699_v33, %v1376_v15  ;;  %1396 = vst.msk [vmem:[%s2874_s11] sm:$0xff] (!%p1700_p0), %vm1174_vm8, %v1384_v20 }
 0x443   : > { %1391 = vst.msk [vmem:[#allocation2 + $0x18] sm:$0xff] %vm1174_vm8, %v1387_v42  ;;  %1399 = vst.msk [vmem:[%s2874_s11 + $0x18] sm:$0xff] (!%p1700_p0), %vm1174_vm8, %v1387_v42 }
 0x444   : > { %1389 = vst.msk [vmem:[#allocation2 + $0x8] sm:$0xff] %vm1174_vm8, %v1385_v24  ;;  %1397 = vst.msk [vmem:[%s2874_s11 + $0x8] sm:$0xff] (!%p1700_p0), %vm1174_vm8, %v1385_v24 }
 0x445 PF: > { %s3616_s24 = sld [smem:[#allocation27_spill]]  ;;  %s1414_s0 = sshll.u32 %s2874_s11, 4  ;;  %s3391_s0 = int_to_ptr.vmem [resolvable:$true] %s1414_s0 }
 0x446   : > { %s3617_s14 = sld [smem:[#allocation60_spill]]  ;;  %s1401_s12 = scalar_lea.sflag [#allocation5], %s2826_s1 }
 0x447   : > { %s2173_s27 = scalar_lea.vmem %s3391_s0, 512  ;;  %p3619_p4 = scmp.ne.s32.totalorder %s3542_s20, 0 }
 0x448   : > { %p2174_p9 = scmp.ne.s32.totalorder %s3391_s0, %s2173_s27  ;;  %s2341_s25 = smov [#allocation17]  }
 0x449   : > { %s2177_s6 = sshll.u32 %s2341_s25, 4  ;;  %s2178_s6 = int_to_ptr.vmem [resolvable:$false] %s2177_s6 }
 0x44a   : > { %p2175_p1 = pnand %p2174_p9, %p3619_p4  ;;  %s2179_s19 = scalar_lea.vmem %s2178_s6, 1024 }
 0x44b   : > { %s1711_s5 = sshll.u32 %s3616_s24, 9  ;;  %p2180_p8 = scmp.lt.s32.totalorder %s3391_s0, %s2178_s6 }
 0x44c   : > { %s3618_s16 = smov %s3617_s14  ;;  %s3388_s21 = scalar_lea.hbm %s3617_s14, %s1711_s5 }
 0x44d   : > { %p2176_p3 = pneg %p2175_p1  ;;  %p2181_p5 = scmp.lt.s32.totalorder %s2179_s19, %s2173_s27 }
 0x44f   : > { %p2182_p2 = por %p2181_p5, %p2180_p8 }
 0x451   : > { %p2183_p6 = pnand %p2182_p2, %p2176_p3 }
 0x453   : > { %2186 = shalt.err (!%p2183_p6)
}
 0x454   : > { %s2187_s11 = scalar_lea.hbm %s3388_s21, 512  ;;  %s2191_s29 = scalar_lea.hbm %s3618_s16, 1024 }
 0x455   : > { %p2188_p10 = scmp.ne.s32.totalorder %s3388_s21, %s2187_s11  ;;  %p2192_p12 = scmp.lt.u32.totalorder %s3388_s21, %s3618_s16 }
 0x456   : > { %p2193_p13 = scmp.lt.u32.totalorder %s2191_s29, %s2187_s11  ;;  %p2195_p9 = scmp.lt.u32.totalorder %s2187_s11, %s3388_s21 }
 0x457   : > { %p2189_p7 = pnand %p2188_p10, %p3619_p4 }
 0x458   : > { %p2194_p0 = por %p2193_p13, %p2192_p12 }
 0x459   : > { %p2190_p11 = pneg %p2189_p7 }
 0x45a   : > { %p2196_p1 = por %p2195_p9, %p2194_p0 }
 0x45c   : > { %p2197_p3 = pnand %p2196_p1, %p2190_p11 }
 0x45e   : > { %2200 = shalt.err (!%p2197_p3)
}
 0x45f   : > { %s2342_s22 = smov 128   ;;  %s2343_s24 = smov 8  }
 0x460   : > { %1760 = dma.vmem_to_hbm [thread:$0]  (%p3619_p4), %s3391_s0, 512, %s3388_s21, %s1401_s12, %s2342_s22, %s2342_s22, %s2343_s24  }
 0x461 PF: > { %s3620_s5 = sld [smem:[#allocation33_spill]]  ;;  %p1795_p8 = scmp.ge.s32.totalorder %s2315_s15, 2 }
 0x462   : > { %s1429_s26 = sand.u32 1, %s2287_s30  }
 0x463   : > { %s1430_s2 = scalar_lea.sflag [#allocation5], %s1429_s26 }
 0x467   : > { %p3621_p5 = scmp.ne.s32.totalorder %s3620_s5, 0 }
 0x469   : > { %p1789_p2 = pnand %p1795_p8, %p3621_p5 }
 0x46b   : > { %2270 = dma.done.wait (!%p1789_p2), %s1430_s2, 512  }
 0x46c   : > { %2272 = vsyncadd (!%p1789_p2), %s1430_s2, 4294966784  ;;  %s34_s15 = sadd.s32 1, %s2315_s15   ;;  %s3622_s14 = sld [smem:[#allocation25_spill]] }
 0x46d   : > { %p31_p6 = scmp.ge.s32.totalorder %s34_s15, 6   ;;  %s3623_s29 = sld [smem:[#allocation31_spill]] }
 0x46e   : > { %s3624_s20 = sld [smem:[#allocation32_spill]]  ;;  %s3625_s12 = sld [smem:[#allocation28_spill]] }
 0x46f   : > { %s3626_s1 = sld [smem:[#allocation29_spill]]  ;;  %s3627_s21 = sld [smem:[#allocation30_spill]] }
 0x470   : > { %s3628_s27 = smov %s2279_s28  ;;  %s3630_s30 = smov %s2291_s9 }
 0x471   : > { %s3631_s9 = smov %s2295_s10  ;;  %s3633_s11 = smov %s2307_s13 }
 0x472   : > { %s3629_s28 = smov %s3622_s14  ;;  %33 = sbr.rel (!%p31_p6) target bundleno = 26 (0x1a), region = 182 }
 0x474   : > { %s3632_s10 = smov %s3624_s20 }
 0x475   : > { %s3634_s13 = smov %s3626_s1  ;;  %s3635_s14 = smov %s3627_s21 }
 0x479   :  { %1435 = vsyncpa [#allocation4], 1 }
 0x47a   :  { %1437 = vsyncpa [#allocation4 + $0x1], 1 }
 0x47b   :  { %1438 = vsyncpa [#allocation8], 1 }
 0x47c   :  { %1440 = vsyncpa [#allocation8 + $0x1], 1 }
 0x47d   :  { %1441 = vsyncpa [#allocation11], 1 }
 0x47e   :  { %1443 = vsyncpa [#allocation11 + $0x1], 1 }
 0x47f   :  { %1444 = vsyncpa [#allocation14], 1 }
 0x480   :  { %1446 = vsyncpa [#allocation14 + $0x1], 1 }
 0x481   :  { %1447 = vsyncpa [#allocation5], 1 }
 0x482   :  { %1449 = vsyncpa [#allocation5 + $0x1], 1 }
 0x483   :  { %1450 = vsyncpa [#allocation6], 1 }
 0x484   :  { %1452 = vsyncpa [#allocation6 + $0x1], 1 }

</bundles_post_ra>
